<compile_context>
chip_gen: v5e
topology: v5e:2x2
jax: 0.10.0
libtpu: 0.0.40
codegen_flags: <defaults>
</compile_context>

<pallas_src>
import jax
import jax.numpy as jnp
from jax.experimental import pallas as pl
from jax.experimental.pallas import tpu as pltpu

# ----------------------------- model dimensions ------------------------------
F_HAND, F_FACE, F_BODY = 84, 140, 75          # src feature split (84/140/75 = 299)
F_TOTAL = F_HAND + F_FACE + F_BODY
H_ENC  = 32                                   # encoder LSTM hidden size (per modality)
H_PAD  = 128                                  # padded joint hidden (3*32 real + 32 pad)
H_FUSE = 32                                   # fusion / context dim
EMB    = 16                                   # decoder embedding dim
H_DEC  = 32                                   # decoder LSTM hidden size
VOCAB  = 32                                   # decoder.fc.out_features


# =============================== Pallas kernels ===============================

def _encoder_fusion_kernel(pre_ref, w_ref, whh_ref, wf_ref, bf_ref,
                           ctx_ref, h_scr, c_scr):
    """One grid step == TS time steps of the joint (3-in-1) encoder LSTM + fusion.

    pre_ref : (TS, B, 4*HP)  hoisted x@W_ih + b pre-activations (time chunk)
    w_ref   : (TS, B, 1)     context weights (t < len[b]) / max(len[b], 1)
    whh_ref : (HP, 4*HP)     block-diagonal, gate-grouped W_hh^T (resident)
    wf_ref  : (HP, H_FUSE)   stacked fusion weights [w1; w2; w3; 0]   (resident)
    bf_ref  : (1, H_FUSE)    fusion bias                               (resident)
    ctx_ref : (B, H_FUSE)    OUTPUT accumulator (masked-mean context, resident)
    h_scr/c_scr : (B, HP)    joint hidden/cell carried across grid steps (VMEM)
    """
    HP = whh_ref.shape[0]
    TS = pre_ref.shape[0]

    @pl.when(pl.program_id(0) == 0)
    def _():
        h_scr[...] = jnp.zeros_like(h_scr)
        c_scr[...] = jnp.zeros_like(c_scr)
        ctx_ref[...] = jnp.zeros_like(ctx_ref)

    whh = whh_ref[...]
    wf = wf_ref[...]
    bf = bf_ref[...]

    def step(s, carry):
        h, c, ctx = carry
        # only the recurrent matmul remains on the serial critical path
        gates = pre_ref[s] + jnp.dot(h, whh, preferred_element_type=jnp.float32)
        i = jax.nn.sigmoid(gates[:, 0 * HP:1 * HP])
        f = jax.nn.sigmoid(gates[:, 1 * HP:2 * HP])
        g = jnp.tanh(gates[:, 2 * HP:3 * HP])
        o = jax.nn.sigmoid(gates[:, 3 * HP:4 * HP])
        c = f * c + i * g
        h = o * jnp.tanh(c)
        # steps with t >= len[b] (and time padding) get weight 0, so the continued
        # recurrence never pollutes the (only consumed) masked-mean context.
        fused = jnp.tanh(jnp.dot(h, wf, preferred_element_type=jnp.float32) + bf)
        ctx = ctx + w_ref[s] * fused
        return h, c, ctx

    h, c, ctx = jax.lax.fori_loop(0, TS, step,
                                  (h_scr[...], c_scr[...], ctx_ref[...]),
                                  unroll=True)
    h_scr[...] = h
    c_scr[...] = c
    ctx_ref[...] = ctx


def _decoder_seq_kernel(tf_ref, trg1h_ref, ctxg_ref, wev_ref, wh_ref, wfc_ref, bfc_ref,
                        out_ref):
    """Whole decoder loop in ONE grid step (single weight DMA, single logits writeback).

    tf_ref    : (T-1,) f32 SMEM  1.0 -> teacher forcing, 0.0 -> greedy (tf[0] == 1)
    trg1h_ref : (T-1, B, V)      one-hots of trg[:, 0:T-1] (teacher-forced tokens)
    ctxg_ref  : (B, 4H)          hoisted ctx @ W_xc + b (constant over steps)
    wev_ref   : (V, 4H)          fused embedding->gates projection  (emb @ W_xe)
    wh_ref    : (H, 4H)          W_hh^T
    wfc/bfc   : (H, V)/(1, V)    output projection
    out_ref   : (T-1, B, V)      logits for steps t = 1..T-1 (resident, one writeback)
    """
    Tm1, B, V = out_ref.shape
    H4 = wh_ref.shape[1]
    H = H4 // 4

    ctx_gates = ctxg_ref[...]
    wev = wev_ref[...]
    wh = wh_ref[...]
    wfc = wfc_ref[...]
    bfc = bfc_ref[...]

    h = jnp.zeros((B, H), jnp.float32)
    c = jnp.zeros((B, H), jnp.float32)
    prev = jnp.zeros((B, V), jnp.float32)
    lane = jax.lax.broadcasted_iota(jnp.int32, (B, V), 1).astype(jnp.float32)

    # Tm1 is small and static; a static unrolled loop keeps all indices constant.
    for s in range(Tm1):
        # greedy token of previous step as first-max one-hot (matches argmax tie-break)
        row_max = jnp.max(prev, axis=-1, keepdims=True)
        cand = jnp.where(prev == row_max, lane, float(V))
        arg = jnp.min(cand, axis=-1, keepdims=True)
        pred_1h = (lane == arg).astype(jnp.float32)                       # (B, V)

        tf = tf_ref[s]                                                    # scalar 0/1
        in_1h = tf * trg1h_ref[s] + (1.0 - tf) * pred_1h                  # (B, V)

        gates = (jnp.dot(in_1h, wev, preferred_element_type=jnp.float32)
                 + jnp.dot(h, wh, preferred_element_type=jnp.float32)
                 + ctx_gates)                                             # (B, 4H)
        i = jax.nn.sigmoid(gates[:, 0 * H:1 * H])
        f = jax.nn.sigmoid(gates[:, 1 * H:2 * H])
        g = jnp.tanh(gates[:, 2 * H:3 * H])
        o = jax.nn.sigmoid(gates[:, 3 * H:4 * H])
        c = f * c + i * g
        h = o * jnp.tanh(c)

        logits = jnp.dot(h, wfc, preferred_element_type=jnp.float32) + bfc  # (B, V)
        out_ref[s] = logits
        prev = logits


# ================================ JAX wrappers ================================

def encode_and_fuse(pre, step_w, enc, *, ts):
    """pre: [S_pad,B,4*HP] hoisted pre-activations; step_w: [S_pad,B,1] -> ctx [B,Hf]."""
    S_pad, B, G = pre.shape
    HP = G // 4
    Hf = enc["wf"].shape[1]
    return pl.pallas_call(
        _encoder_fusion_kernel,
        out_shape=jax.ShapeDtypeStruct((B, Hf), jnp.float32),
        grid_spec=pltpu.PrefetchScalarGridSpec(
            num_scalar_prefetch=0,
            grid=(S_pad // ts,),
            in_specs=[
                pl.BlockSpec((ts, B, G), lambda t: (t, 0, 0)),     # streamed pre-acts
                pl.BlockSpec((ts, B, 1), lambda t: (t, 0, 0)),     # streamed ctx weights
                pl.BlockSpec((HP, G), lambda t: (0, 0)),           # W_hh^T (resident)
                pl.BlockSpec((HP, Hf), lambda t: (0, 0)),          # fusion weights
                pl.BlockSpec((1, Hf), lambda t: (0, 0)),           # fusion bias
            ],
            out_specs=pl.BlockSpec((B, Hf), lambda t: (0, 0)),     # resident accumulator
            scratch_shapes=[pltpu.VMEM((B, HP), jnp.float32),
                            pltpu.VMEM((B, HP), jnp.float32)],
        ),
        compiler_params=pltpu.CompilerParams(dimension_semantics=("arbitrary",)),
    )(pre, step_w, enc["whh"], enc["wf"], enc["bf"])


def decode_sequence(tf_flags, trg_1h, ctx_gates, dec):
    """tf_flags: [T-1] f32 (scalar-prefetch); trg_1h: [T-1,B,V]; ctx_gates: [B,4H]."""
    Tm1, B, V = trg_1h.shape
    H4 = dec["wh"].shape[1]
    H = H4 // 4
    return pl.pallas_call(
        _decoder_seq_kernel,
        out_shape=jax.ShapeDtypeStruct((Tm1, B, V), jnp.float32),
        grid_spec=pltpu.PrefetchScalarGridSpec(
            num_scalar_prefetch=1,                                   # tf_flags -> SMEM
            grid=(1,),                                               # single grid step
            in_specs=[
                pl.BlockSpec((Tm1, B, V), lambda s, tf: (0, 0, 0)),  # teacher one-hots
                pl.BlockSpec((B, H4), lambda s, tf: (0, 0)),         # hoisted ctx gates
                pl.BlockSpec((V, H4), lambda s, tf: (0, 0)),         # fused emb@W_xe
                pl.BlockSpec((H, H4), lambda s, tf: (0, 0)),         # W_hh^T
                pl.BlockSpec((H, V), lambda s, tf: (0, 0)),          # fc weight
                pl.BlockSpec((1, V), lambda s, tf: (0, 0)),          # fc bias
            ],
            out_specs=pl.BlockSpec((Tm1, B, V), lambda s, tf: (0, 0, 0)),
        ),
        compiler_params=pltpu.CompilerParams(dimension_semantics=("arbitrary",)),
    )(tf_flags, trg_1h, ctx_gates, dec["wev"], dec["wh"], dec["wfc"], dec["bfc"])


# ============================== parameter setup ===============================

def _init_lstm(key, in_dim, hidden, scale=0.1):
    k1, k2, k3 = jax.random.split(key, 3)
    wx = scale * jax.random.normal(k1, (in_dim, 4 * hidden), jnp.float32)   # W_ih^T
    wh = scale * jax.random.normal(k2, (hidden, 4 * hidden), jnp.float32)   # W_hh^T
    b = scale * jax.random.normal(k3, (1, 4 * hidden), jnp.float32)         # b_ih + b_hh
    return wx, wh, b


def init_params(key):
    ks = jax.random.split(key, 8)
    return {
        "hand": _init_lstm(ks[0], F_HAND, H_ENC),
        "face": _init_lstm(ks[1], F_FACE, H_ENC),
        "body": _init_lstm(ks[2], F_BODY, H_ENC),
        "fusion": {
            "w1": 0.1 * jax.random.normal(ks[3], (H_ENC, H_FUSE), jnp.float32),
            "w2": 0.1 * jax.random.normal(ks[4], (H_ENC, H_FUSE), jnp.float32),
            "w3": 0.1 * jax.random.normal(ks[5], (H_ENC, H_FUSE), jnp.float32),
            "bias": jnp.zeros((1, H_FUSE), jnp.float32),
        },
        "dec": {
            "emb": 0.1 * jax.random.normal(ks[6], (VOCAB, EMB), jnp.float32),
            "lstm": _init_lstm(ks[7], EMB + H_FUSE, H_DEC),
            "w_fc": 0.1 * jax.random.normal(jax.random.fold_in(key, 99),
                                            (H_DEC, VOCAB), jnp.float32),
            "b_fc": jnp.zeros((1, VOCAB), jnp.float32),
        },
    }


def pack_params(params):
    """One-time conversion of per-modality PyTorch-style weights into kernel layout:
    block-diagonal, gate-grouped joint encoder LSTM (padded to H_PAD=128), plus the
    decoder's fused embedding->gates projection W_ev = emb @ W_xe and split W_xc."""
    H = H_ENC
    HP = H_PAD
    Fs = (F_HAND, F_FACE, F_BODY)
    mods = (params["hand"], params["face"], params["body"])
    fp = params["fusion"]
    fuse_ws = (fp["w1"], fp["w2"], fp["w3"])

    wih = jnp.zeros((F_TOTAL, 4 * HP), jnp.float32)
    whh = jnp.zeros((HP, 4 * HP), jnp.float32)
    b = jnp.zeros((1, 4 * HP), jnp.float32)
    wf = jnp.zeros((HP, H_FUSE), jnp.float32)

    row = 0
    for m, ((wx_m, wh_m, b_m), wf_m) in enumerate(zip(mods, fuse_ws)):
        Fm = Fs[m]
        for gi in range(4):                                  # i, f, g, o
            c0 = gi * HP + m * H
            wih = wih.at[row:row + Fm, c0:c0 + H].set(wx_m[:, gi * H:(gi + 1) * H])
            whh = whh.at[m * H:(m + 1) * H, c0:c0 + H].set(wh_m[:, gi * H:(gi + 1) * H])
            b = b.at[:, c0:c0 + H].set(b_m[:, gi * H:(gi + 1) * H])
        wf = wf.at[m * H:(m + 1) * H, :].set(wf_m)
        row += Fm

    dp = params["dec"]
    wx_d, wh_d, b_d = dp["lstm"]
    wxe = wx_d[:EMB]                  # embedding rows of W_ih^T
    wxc = wx_d[EMB:]                  # context rows of W_ih^T
    wev = dp["emb"] @ wxe             # (V, 4H): fused one-hot -> gates projection
    return {
        "enc": {"wih": wih, "whh": whh, "b": b, "wf": wf, "bf": fp["bias"]},
        "dec": {"wev": wev, "wxc": wxc, "wh": wh_d, "b": b_d,
                "wfc": dp["w_fc"], "bfc": dp["b_fc"]},
    }


# =============================== Seq2Seq.forward ==============================

def seq2seq_forward(packed, src, trg, keypoint_lengths, rng_key,
                    teacher_forcing_ratio=0.5):
    """src: [B,S,299] f32, trg: [B,T] int32, keypoint_lengths: [B] int -> [B,T,VOCAB]."""
    B, S, _ = src.shape
    T = trg.shape[1]
    lengths = jnp.asarray(keypoint_lengths, jnp.int32).reshape(B)

    # ---- batch padding to a multiple of 8 (f32 sublanes) ---------------------
    B_pad = ((B + 7) // 8) * 8
    pad_b = B_pad - B
    src_p = jnp.pad(src, ((0, pad_b), (0, 0), (0, 0)))
    trg_p = jnp.pad(trg, ((0, pad_b), (0, 0)))
    lengths_p = jnp.pad(lengths, (0, pad_b))                 # padded rows: length 0

    # ---- encoders + fusion ----------------------------------------------------
    enc = packed["enc"]
    x_tbf = jnp.transpose(src_p, (1, 0, 2))                                # (S,B,299)
    # Hoisted non-recurrent input projection: one XLA matmul over all S*B rows.
    pre = jnp.einsum("sbf,fg->sbg", x_tbf, enc["wih"]) + enc["b"]          # (S,B,4*HP)

    t_idx = jnp.arange(S, dtype=jnp.int32)[:, None]                        # (S,1)
    mask = (t_idx < lengths_p[None, :]).astype(jnp.float32)                # (S,B)
    inv_len = 1.0 / jnp.maximum(lengths_p, 1).astype(jnp.float32)          # (B,)
    step_w = (mask * inv_len[None, :])[:, :, None]                         # (S,B,1)

    TS = 8                                                   # time steps per grid step
    S_pad = ((S + TS - 1) // TS) * TS
    pre = jnp.pad(pre, ((0, S_pad - S), (0, 0), (0, 0)))
    step_w = jnp.pad(step_w, ((0, S_pad - S), (0, 0), (0, 0)))

    context = encode_and_fuse(pre, step_w, enc, ts=TS)                     # (B_pad,Hf)

    # ---- decoder ---------------------------------------------------------------
    dec = packed["dec"]
    # Hoisted constant context projection (invariant across decode steps).
    ctx_gates = context @ dec["wxc"] + dec["b"]                            # (B_pad,4H)

    u = jax.random.uniform(rng_key, (T - 1,))
    coins = (u < teacher_forcing_ratio).astype(jnp.float32)
    # step s uses: teacher token always at s==0; coin drawn at t==s for s>=1
    tf_flags = jnp.concatenate([jnp.ones((1,), jnp.float32), coins[:T - 2]])
    trg_1h = jax.nn.one_hot(trg_p[:, :T - 1], VOCAB, dtype=jnp.float32)    # (B_pad,T-1,V)
    trg_1h = jnp.transpose(trg_1h, (1, 0, 2))                              # (T-1,B_pad,V)

    dec_out = decode_sequence(tf_flags, trg_1h, ctx_gates, dec)            # (T-1,B_pad,V)

    outputs = jnp.concatenate(
        [jnp.zeros((B_pad, 1, VOCAB), jnp.float32), jnp.transpose(dec_out, (1, 0, 2))],
        axis=1)                                                            # (B_pad,T,V)
    return outputs[:B]


# ============================ pure-JAX reference ==============================

def _reference_forward(params, src, trg, lengths, tf_flags):
    """Mirror of the module semantics using the raw (unpacked) parameters."""
    B, S, _ = src.shape
    T = trg.shape[1]
    lengths = lengths.astype(jnp.int32)

    def run_lstm(x, wx, wh, b):
        H = wh.shape[0]
        h = jnp.zeros((B, H), jnp.float32)
        c = jnp.zeros((B, H), jnp.float32)
        hs = []
        for t in range(S):
            gates = x[:, t] @ wx + h @ wh + b
            i = jax.nn.sigmoid(gates[:, :H]); f = jax.nn.sigmoid(gates[:, H:2 * H])
            g = jnp.tanh(gates[:, 2 * H:3 * H]); o = jax.nn.sigmoid(gates[:, 3 * H:])
            c = f * c + i * g
            h = o * jnp.tanh(c)
            hs.append(h)
        return jnp.stack(hs, axis=1)                                      # (B,S,H)

    hand = run_lstm(src[:, :, :F_HAND], *params["hand"])
    face = run_lstm(src[:, :, F_HAND:F_HAND + F_FACE], *params["face"])
    body = run_lstm(src[:, :, F_HAND + F_FACE:], *params["body"])
    fp = params["fusion"]
    fused = jnp.tanh(hand @ fp["w1"] + face @ fp["w2"] + body @ fp["w3"] + fp["bias"])
    mask = (jnp.arange(S)[None, :, None] < lengths[:, None, None]).astype(jnp.float32)
    ctx = (fused * mask).sum(axis=1) / jnp.maximum(lengths, 1).astype(jnp.float32)[:, None]

    dp = params["dec"]
    wx, wh, b = dp["lstm"]
    H = H_DEC
    h = jnp.zeros((B, H), jnp.float32)
    c = jnp.zeros((B, H), jnp.float32)
    outs = [jnp.zeros((B, VOCAB), jnp.float32)]
    prev = jnp.zeros((B, VOCAB), jnp.float32)
    for s in range(T - 1):
        tok = jnp.where(tf_flags[s] > 0.5, trg[:, s], jnp.argmax(prev, axis=-1))
        xin = jnp.concatenate([dp["emb"][tok], ctx], axis=-1)
        gates = xin @ wx + h @ wh + b
        i = jax.nn.sigmoid(gates[:, :H]); f = jax.nn.sigmoid(gates[:, H:2 * H])
        g = jnp.tanh(gates[:, 2 * H:3 * H]); o = jax.nn.sigmoid(gates[:, 3 * H:])
        c = f * c + i * g
        h = o * jnp.tanh(c)
        prev = h @ dp["w_fc"] + dp["b_fc"]
        outs.append(prev)
    return jnp.stack(outs, axis=1)                                        # (B,T,V)


# ===================================== main ===================================

if __name__ == "__main__":
    key = jax.random.PRNGKey(0)
    pkey, skey, tkey, rkey = jax.random.split(key, 4)

    B, S, T = 2, 8, 6
    raw_params = init_params(pkey)
    packed = pack_params(raw_params)

    src = jax.random.normal(skey, (B, S, F_TOTAL), jnp.float32)
    trg = jax.random.randint(tkey, (B, T), 0, VOCAB, dtype=jnp.int32)
    keypoint_lengths = jnp.array([8, 5], jnp.int32)              # variable lengths
    ratio = 0.5

    fwd = jax.jit(seq2seq_forward, static_argnames=("teacher_forcing_ratio",))
    out = fwd(packed, src, trg, keypoint_lengths, rkey, teacher_forcing_ratio=ratio)
    out = jax.block_until_ready(out)

    assert out.shape == (B, T, VOCAB)
    assert bool(jnp.all(jnp.isfinite(out)))

    # correctness check against a pure-JAX reference (same teacher-forcing draws)
    u = jax.random.uniform(rkey, (T - 1,))
    coins = (u < ratio).astype(jnp.float32)
    tf_flags = jnp.concatenate([jnp.ones((1,), jnp.float32), coins[:T - 2]])
    ref = _reference_forward(raw_params, src, trg, keypoint_lengths, tf_flags)
    assert float(jnp.max(jnp.abs(out - ref))) < 1e-3

    print("KERNEL_OK")
</pallas_src>

<mosaic_0001>
module attributes {stable_mosaic.version = 11 : i64} {
  func.func @_decoder_seq_kernel(%arg0: i32, %arg1: memref<5xf32, #tpu.memory_space<smem>>, %arg2: memref<5x8x32xf32, #tpu.memory_space<vmem>>, %arg3: memref<8x128xf32, #tpu.memory_space<vmem>>, %arg4: memref<32x128xf32, #tpu.memory_space<vmem>>, %arg5: memref<32x128xf32, #tpu.memory_space<vmem>>, %arg6: memref<32x32xf32, #tpu.memory_space<vmem>>, %arg7: memref<1x32xf32, #tpu.memory_space<vmem>>, %arg8: memref<5x8x32xf32, #tpu.memory_space<vmem>>) attributes {dimension_semantics = [#tpu.dimension_semantics<arbitrary>], iteration_bounds = array<i64: 1>, scalar_prefetch = 1 : i64, scratch_operands = 0 : i64, tpu.core_type = #tpu.core_type<tc>, window_params = [{pipeline_mode = #tpu.pipeline_mode<synchronous>, transform_indices = @transform_0, window_bounds = array<i64: 5, 8, 32>}, {pipeline_mode = #tpu.pipeline_mode<synchronous>, transform_indices = @transform_1, window_bounds = array<i64: 8, 128>}, {pipeline_mode = #tpu.pipeline_mode<synchronous>, transform_indices = @transform_2, window_bounds = array<i64: 32, 128>}, {pipeline_mode = #tpu.pipeline_mode<synchronous>, transform_indices = @transform_3, window_bounds = array<i64: 32, 128>}, {pipeline_mode = #tpu.pipeline_mode<synchronous>, transform_indices = @transform_4, window_bounds = array<i64: 32, 32>}, {pipeline_mode = #tpu.pipeline_mode<synchronous>, transform_indices = @transform_5, window_bounds = array<i64: 1, 32>}, {pipeline_mode = #tpu.pipeline_mode<synchronous>, transform_indices = @transform_6, window_bounds = array<i64: 5, 8, 32>}]} {
    %c0 = arith.constant 0 : index
    %c0_0 = arith.constant 0 : index
    %0 = vector.load %arg3[%c0, %c0_0] : memref<8x128xf32, #tpu.memory_space<vmem>>, vector<8x128xf32>
    %c0_1 = arith.constant 0 : index
    %c0_2 = arith.constant 0 : index
    %1 = vector.load %arg4[%c0_1, %c0_2] : memref<32x128xf32, #tpu.memory_space<vmem>>, vector<32x128xf32>
    %c0_3 = arith.constant 0 : index
    %c0_4 = arith.constant 0 : index
    %2 = vector.load %arg5[%c0_3, %c0_4] : memref<32x128xf32, #tpu.memory_space<vmem>>, vector<32x128xf32>
    %c0_5 = arith.constant 0 : index
    %c0_6 = arith.constant 0 : index
    %3 = vector.load %arg6[%c0_5, %c0_6] : memref<32x32xf32, #tpu.memory_space<vmem>>, vector<32x32xf32>
    %c0_7 = arith.constant 0 : index
    %c0_8 = arith.constant 0 : index
    %4 = vector.load %arg7[%c0_7, %c0_8] : memref<1x32xf32, #tpu.memory_space<vmem>>, vector<1x32xf32>
    %cst = arith.constant 0.000000e+00 : f32
    %5 = vector.broadcast %cst : f32 to vector<8x32xf32>
    %cst_9 = arith.constant 0.000000e+00 : f32
    %6 = vector.broadcast %cst_9 : f32 to vector<8x32xf32>
    %cst_10 = arith.constant 0.000000e+00 : f32
    %7 = vector.broadcast %cst_10 : f32 to vector<8x32xf32>
    %8 = tpu.iota {dimensions = array<i32: 1>} : vector<8x32xi32>
    %9 = arith.sitofp %8 : vector<8x32xi32> to vector<8x32xf32>
    %cst_11 = arith.constant dense<0xFF800000> : vector<8xf32>
    %10 = vector.multi_reduction <maximumf>, %7, %cst_11 [1] : vector<8x32xf32> to vector<8xf32>
    %11 = vector.shape_cast %10 : vector<8xf32> to vector<8x1xf32>
    %12 = vector.broadcast %11 : vector<8x1xf32> to vector<8x32xf32>
    %13 = arith.cmpf oeq, %7, %12 : vector<8x32xf32>
    %cst_12 = arith.constant 3.200000e+01 : f32
    %14 = vector.broadcast %cst_12 : f32 to vector<8x32xf32>
    %15 = arith.select %13, %9, %14 : vector<8x32xi1>, vector<8x32xf32>
    %cst_13 = arith.constant dense<0x7F800000> : vector<8xf32>
    %16 = vector.multi_reduction <minimumf>, %15, %cst_13 [1] : vector<8x32xf32> to vector<8xf32>
    %17 = vector.shape_cast %16 : vector<8xf32> to vector<8x1xf32>
    %18 = vector.broadcast %17 : vector<8x1xf32> to vector<8x32xf32>
    %19 = arith.cmpf oeq, %9, %18 : vector<8x32xf32>
    %20 = arith.extui %19 : vector<8x32xi1> to vector<8x32xi32>
    %21 = arith.sitofp %20 : vector<8x32xi32> to vector<8x32xf32>
    %c0_14 = arith.constant 0 : index
    %22 = memref.load %arg1[%c0_14] : memref<5xf32, #tpu.memory_space<smem>>
    %c0_15 = arith.constant 0 : index
    %c0_16 = arith.constant 0 : index
    %c0_17 = arith.constant 0 : index
    %23 = vector.load %arg2[%c0_15, %c0_16, %c0_17] : memref<5x8x32xf32, #tpu.memory_space<vmem>>, vector<1x8x32xf32>
    %24 = vector.shape_cast %23 : vector<1x8x32xf32> to vector<8x32xf32>
    %25 = vector.broadcast %22 : f32 to vector<8x32xf32>
    %26 = arith.mulf %25, %24 : vector<8x32xf32>
    %cst_18 = arith.constant 1.000000e+00 : f32
    %27 = arith.subf %cst_18, %22 : f32
    %28 = vector.broadcast %27 : f32 to vector<8x32xf32>
    %29 = arith.mulf %28, %21 : vector<8x32xf32>
    %30 = arith.addf %26, %29 : vector<8x32xf32>
    %cst_19 = arith.constant dense<0.000000e+00> : vector<8x128xf32>
    %31 = tpu.matmul %30, %1, %cst_19 {dimension_numbers = #tpu.dot_dimension_numbers<[1], [0], [0], [1], [0, 0, 1, 1], [], []>} : vector<8x32xf32>, vector<32x128xf32>, vector<8x128xf32> -> vector<8x128xf32>
    %cst_20 = arith.constant dense<0.000000e+00> : vector<8x128xf32>
    %32 = tpu.matmul %5, %2, %cst_20 {dimension_numbers = #tpu.dot_dimension_numbers<[1], [0], [0], [1], [0, 0, 1, 1], [], []>} : vector<8x32xf32>, vector<32x128xf32>, vector<8x128xf32> -> vector<8x128xf32>
    %33 = arith.addf %31, %32 : vector<8x128xf32>
    %34 = arith.addf %33, %0 : vector<8x128xf32>
    %35 = vector.extract_strided_slice %34 {offsets = [0, 0], sizes = [8, 32], strides = [1, 1]} : vector<8x128xf32> to vector<8x32xf32>
    %36 = arith.negf %35 : vector<8x32xf32>
    %37 = math.exp %36 : vector<8x32xf32>
    %cst_21 = arith.constant 1.000000e+00 : f32
    %38 = vector.broadcast %cst_21 : f32 to vector<8x32xf32>
    %39 = arith.addf %38, %37 : vector<8x32xf32>
    %40 = arith.divf %38, %39 : vector<8x32xf32>
    %41 = vector.extract_strided_slice %34 {offsets = [0, 32], sizes = [8, 32], strides = [1, 1]} : vector<8x128xf32> to vector<8x32xf32>
    %42 = arith.negf %41 : vector<8x32xf32>
    %43 = math.exp %42 : vector<8x32xf32>
    %cst_22 = arith.constant 1.000000e+00 : f32
    %44 = vector.broadcast %cst_22 : f32 to vector<8x32xf32>
    %45 = arith.addf %44, %43 : vector<8x32xf32>
    %46 = arith.divf %44, %45 : vector<8x32xf32>
    %47 = vector.extract_strided_slice %34 {offsets = [0, 64], sizes = [8, 32], strides = [1, 1]} : vector<8x128xf32> to vector<8x32xf32>
    %48 = math.tanh %47 : vector<8x32xf32>
    %49 = vector.extract_strided_slice %34 {offsets = [0, 96], sizes = [8, 32], strides = [1, 1]} : vector<8x128xf32> to vector<8x32xf32>
    %50 = arith.negf %49 : vector<8x32xf32>
    %51 = math.exp %50 : vector<8x32xf32>
    %cst_23 = arith.constant 1.000000e+00 : f32
    %52 = vector.broadcast %cst_23 : f32 to vector<8x32xf32>
    %53 = arith.addf %52, %51 : vector<8x32xf32>
    %54 = arith.divf %52, %53 : vector<8x32xf32>
    %55 = arith.mulf %46, %6 : vector<8x32xf32>
    %56 = arith.mulf %40, %48 : vector<8x32xf32>
    %57 = arith.addf %55, %56 : vector<8x32xf32>
    %58 = math.tanh %57 : vector<8x32xf32>
    %59 = arith.mulf %54, %58 : vector<8x32xf32>
    %cst_24 = arith.constant dense<0.000000e+00> : vector<8x32xf32>
    %60 = tpu.matmul %59, %3, %cst_24 {dimension_numbers = #tpu.dot_dimension_numbers<[1], [0], [0], [1], [0, 0, 1, 1], [], []>} : vector<8x32xf32>, vector<32x32xf32>, vector<8x32xf32> -> vector<8x32xf32>
    %61 = vector.broadcast %4 : vector<1x32xf32> to vector<8x32xf32>
    %62 = arith.addf %60, %61 : vector<8x32xf32>
    %c0_25 = arith.constant 0 : index
    %c0_26 = arith.constant 0 : index
    %c0_27 = arith.constant 0 : index
    %63 = vector.load %arg8[%c0_25, %c0_26, %c0_27] : memref<5x8x32xf32, #tpu.memory_space<vmem>>, vector<1x8x32xf32>
    %64 = vector.shape_cast %63 : vector<1x8x32xf32> to vector<8x32xf32>
    %65 = vector.shape_cast %62 : vector<8x32xf32> to vector<1x8x32xf32>
    tpu.vector_store %arg8[%c0_25, %c0_26, %c0_27], %65 {strides = array<i32>} : memref<5x8x32xf32, #tpu.memory_space<vmem>>, vector<1x8x32xf32>,
    %cst_28 = arith.constant dense<0xFF800000> : vector<8xf32>
    %66 = vector.multi_reduction <maximumf>, %62, %cst_28 [1] : vector<8x32xf32> to vector<8xf32>
    %67 = vector.shape_cast %66 : vector<8xf32> to vector<8x1xf32>
    %68 = vector.broadcast %67 : vector<8x1xf32> to vector<8x32xf32>
    %69 = arith.cmpf oeq, %62, %68 : vector<8x32xf32>
    %cst_29 = arith.constant 3.200000e+01 : f32
    %70 = vector.broadcast %cst_29 : f32 to vector<8x32xf32>
    %71 = arith.select %69, %9, %70 : vector<8x32xi1>, vector<8x32xf32>
    %cst_30 = arith.constant dense<0x7F800000> : vector<8xf32>
    %72 = vector.multi_reduction <minimumf>, %71, %cst_30 [1] : vector<8x32xf32> to vector<8xf32>
    %73 = vector.shape_cast %72 : vector<8xf32> to vector<8x1xf32>
    %74 = vector.broadcast %73 : vector<8x1xf32> to vector<8x32xf32>
    %75 = arith.cmpf oeq, %9, %74 : vector<8x32xf32>
    %76 = arith.extui %75 : vector<8x32xi1> to vector<8x32xi32>
    %77 = arith.sitofp %76 : vector<8x32xi32> to vector<8x32xf32>
    %c1 = arith.constant 1 : index
    %78 = memref.load %arg1[%c1] : memref<5xf32, #tpu.memory_space<smem>>
    %c1_31 = arith.constant 1 : index
    %c0_32 = arith.constant 0 : index
    %c0_33 = arith.constant 0 : index
    %79 = vector.load %arg2[%c1_31, %c0_32, %c0_33] : memref<5x8x32xf32, #tpu.memory_space<vmem>>, vector<1x8x32xf32>
    %80 = vector.shape_cast %79 : vector<1x8x32xf32> to vector<8x32xf32>
    %81 = vector.broadcast %78 : f32 to vector<8x32xf32>
    %82 = arith.mulf %81, %80 : vector<8x32xf32>
    %cst_34 = arith.constant 1.000000e+00 : f32
    %83 = arith.subf %cst_34, %78 : f32
    %84 = vector.broadcast %83 : f32 to vector<8x32xf32>
    %85 = arith.mulf %84, %77 : vector<8x32xf32>
    %86 = arith.addf %82, %85 : vector<8x32xf32>
    %cst_35 = arith.constant dense<0.000000e+00> : vector<8x128xf32>
    %87 = tpu.matmul %86, %1, %cst_35 {dimension_numbers = #tpu.dot_dimension_numbers<[1], [0], [0], [1], [0, 0, 1, 1], [], []>} : vector<8x32xf32>, vector<32x128xf32>, vector<8x128xf32> -> vector<8x128xf32>
    %cst_36 = arith.constant dense<0.000000e+00> : vector<8x128xf32>
    %88 = tpu.matmul %59, %2, %cst_36 {dimension_numbers = #tpu.dot_dimension_numbers<[1], [0], [0], [1], [0, 0, 1, 1], [], []>} : vector<8x32xf32>, vector<32x128xf32>, vector<8x128xf32> -> vector<8x128xf32>
    %89 = arith.addf %87, %88 : vector<8x128xf32>
    %90 = arith.addf %89, %0 : vector<8x128xf32>
    %91 = vector.extract_strided_slice %90 {offsets = [0, 0], sizes = [8, 32], strides = [1, 1]} : vector<8x128xf32> to vector<8x32xf32>
    %92 = arith.negf %91 : vector<8x32xf32>
    %93 = math.exp %92 : vector<8x32xf32>
    %cst_37 = arith.constant 1.000000e+00 : f32
    %94 = vector.broadcast %cst_37 : f32 to vector<8x32xf32>
    %95 = arith.addf %94, %93 : vector<8x32xf32>
    %96 = arith.divf %94, %95 : vector<8x32xf32>
    %97 = vector.extract_strided_slice %90 {offsets = [0, 32], sizes = [8, 32], strides = [1, 1]} : vector<8x128xf32> to vector<8x32xf32>
    %98 = arith.negf %97 : vector<8x32xf32>
    %99 = math.exp %98 : vector<8x32xf32>
    %cst_38 = arith.constant 1.000000e+00 : f32
    %100 = vector.broadcast %cst_38 : f32 to vector<8x32xf32>
    %101 = arith.addf %100, %99 : vector<8x32xf32>
    %102 = arith.divf %100, %101 : vector<8x32xf32>
    %103 = vector.extract_strided_slice %90 {offsets = [0, 64], sizes = [8, 32], strides = [1, 1]} : vector<8x128xf32> to vector<8x32xf32>
    %104 = math.tanh %103 : vector<8x32xf32>
    %105 = vector.extract_strided_slice %90 {offsets = [0, 96], sizes = [8, 32], strides = [1, 1]} : vector<8x128xf32> to vector<8x32xf32>
    %106 = arith.negf %105 : vector<8x32xf32>
    %107 = math.exp %106 : vector<8x32xf32>
    %cst_39 = arith.constant 1.000000e+00 : f32
    %108 = vector.broadcast %cst_39 : f32 to vector<8x32xf32>
    %109 = arith.addf %108, %107 : vector<8x32xf32>
    %110 = arith.divf %108, %109 : vector<8x32xf32>
    %111 = arith.mulf %102, %57 : vector<8x32xf32>
    %112 = arith.mulf %96, %104 : vector<8x32xf32>
    %113 = arith.addf %111, %112 : vector<8x32xf32>
    %114 = math.tanh %113 : vector<8x32xf32>
    %115 = arith.mulf %110, %114 : vector<8x32xf32>
    %cst_40 = arith.constant dense<0.000000e+00> : vector<8x32xf32>
    %116 = tpu.matmul %115, %3, %cst_40 {dimension_numbers = #tpu.dot_dimension_numbers<[1], [0], [0], [1], [0, 0, 1, 1], [], []>} : vector<8x32xf32>, vector<32x32xf32>, vector<8x32xf32> -> vector<8x32xf32>
    %117 = vector.broadcast %4 : vector<1x32xf32> to vector<8x32xf32>
    %118 = arith.addf %116, %117 : vector<8x32xf32>
    %c1_41 = arith.constant 1 : index
    %c0_42 = arith.constant 0 : index
    %c0_43 = arith.constant 0 : index
    %119 = vector.load %arg8[%c1_41, %c0_42, %c0_43] : memref<5x8x32xf32, #tpu.memory_space<vmem>>, vector<1x8x32xf32>
    %120 = vector.shape_cast %119 : vector<1x8x32xf32> to vector<8x32xf32>
    %121 = vector.shape_cast %118 : vector<8x32xf32> to vector<1x8x32xf32>
    tpu.vector_store %arg8[%c1_41, %c0_42, %c0_43], %121 {strides = array<i32>} : memref<5x8x32xf32, #tpu.memory_space<vmem>>, vector<1x8x32xf32>,
    %cst_44 = arith.constant dense<0xFF800000> : vector<8xf32>
    %122 = vector.multi_reduction <maximumf>, %118, %cst_44 [1] : vector<8x32xf32> to vector<8xf32>
    %123 = vector.shape_cast %122 : vector<8xf32> to vector<8x1xf32>
    %124 = vector.broadcast %123 : vector<8x1xf32> to vector<8x32xf32>
    %125 = arith.cmpf oeq, %118, %124 : vector<8x32xf32>
    %cst_45 = arith.constant 3.200000e+01 : f32
    %126 = vector.broadcast %cst_45 : f32 to vector<8x32xf32>
    %127 = arith.select %125, %9, %126 : vector<8x32xi1>, vector<8x32xf32>
    %cst_46 = arith.constant dense<0x7F800000> : vector<8xf32>
    %128 = vector.multi_reduction <minimumf>, %127, %cst_46 [1] : vector<8x32xf32> to vector<8xf32>
    %129 = vector.shape_cast %128 : vector<8xf32> to vector<8x1xf32>
    %130 = vector.broadcast %129 : vector<8x1xf32> to vector<8x32xf32>
    %131 = arith.cmpf oeq, %9, %130 : vector<8x32xf32>
    %132 = arith.extui %131 : vector<8x32xi1> to vector<8x32xi32>
    %133 = arith.sitofp %132 : vector<8x32xi32> to vector<8x32xf32>
    %c2 = arith.constant 2 : index
    %134 = memref.load %arg1[%c2] : memref<5xf32, #tpu.memory_space<smem>>
    %c2_47 = arith.constant 2 : index
    %c0_48 = arith.constant 0 : index
    %c0_49 = arith.constant 0 : index
    %135 = vector.load %arg2[%c2_47, %c0_48, %c0_49] : memref<5x8x32xf32, #tpu.memory_space<vmem>>, vector<1x8x32xf32>
    %136 = vector.shape_cast %135 : vector<1x8x32xf32> to vector<8x32xf32>
    %137 = vector.broadcast %134 : f32 to vector<8x32xf32>
    %138 = arith.mulf %137, %136 : vector<8x32xf32>
    %cst_50 = arith.constant 1.000000e+00 : f32
    %139 = arith.subf %cst_50, %134 : f32
    %140 = vector.broadcast %139 : f32 to vector<8x32xf32>
    %141 = arith.mulf %140, %133 : vector<8x32xf32>
    %142 = arith.addf %138, %141 : vector<8x32xf32>
    %cst_51 = arith.constant dense<0.000000e+00> : vector<8x128xf32>
    %143 = tpu.matmul %142, %1, %cst_51 {dimension_numbers = #tpu.dot_dimension_numbers<[1], [0], [0], [1], [0, 0, 1, 1], [], []>} : vector<8x32xf32>, vector<32x128xf32>, vector<8x128xf32> -> vector<8x128xf32>
    %cst_52 = arith.constant dense<0.000000e+00> : vector<8x128xf32>
    %144 = tpu.matmul %115, %2, %cst_52 {dimension_numbers = #tpu.dot_dimension_numbers<[1], [0], [0], [1], [0, 0, 1, 1], [], []>} : vector<8x32xf32>, vector<32x128xf32>, vector<8x128xf32> -> vector<8x128xf32>
    %145 = arith.addf %143, %144 : vector<8x128xf32>
    %146 = arith.addf %145, %0 : vector<8x128xf32>
    %147 = vector.extract_strided_slice %146 {offsets = [0, 0], sizes = [8, 32], strides = [1, 1]} : vector<8x128xf32> to vector<8x32xf32>
    %148 = arith.negf %147 : vector<8x32xf32>
    %149 = math.exp %148 : vector<8x32xf32>
    %cst_53 = arith.constant 1.000000e+00 : f32
    %150 = vector.broadcast %cst_53 : f32 to vector<8x32xf32>
    %151 = arith.addf %150, %149 : vector<8x32xf32>
    %152 = arith.divf %150, %151 : vector<8x32xf32>
    %153 = vector.extract_strided_slice %146 {offsets = [0, 32], sizes = [8, 32], strides = [1, 1]} : vector<8x128xf32> to vector<8x32xf32>
    %154 = arith.negf %153 : vector<8x32xf32>
    %155 = math.exp %154 : vector<8x32xf32>
    %cst_54 = arith.constant 1.000000e+00 : f32
    %156 = vector.broadcast %cst_54 : f32 to vector<8x32xf32>
    %157 = arith.addf %156, %155 : vector<8x32xf32>
    %158 = arith.divf %156, %157 : vector<8x32xf32>
    %159 = vector.extract_strided_slice %146 {offsets = [0, 64], sizes = [8, 32], strides = [1, 1]} : vector<8x128xf32> to vector<8x32xf32>
    %160 = math.tanh %159 : vector<8x32xf32>
    %161 = vector.extract_strided_slice %146 {offsets = [0, 96], sizes = [8, 32], strides = [1, 1]} : vector<8x128xf32> to vector<8x32xf32>
    %162 = arith.negf %161 : vector<8x32xf32>
    %163 = math.exp %162 : vector<8x32xf32>
    %cst_55 = arith.constant 1.000000e+00 : f32
    %164 = vector.broadcast %cst_55 : f32 to vector<8x32xf32>
    %165 = arith.addf %164, %163 : vector<8x32xf32>
    %166 = arith.divf %164, %165 : vector<8x32xf32>
    %167 = arith.mulf %158, %113 : vector<8x32xf32>
    %168 = arith.mulf %152, %160 : vector<8x32xf32>
    %169 = arith.addf %167, %168 : vector<8x32xf32>
    %170 = math.tanh %169 : vector<8x32xf32>
    %171 = arith.mulf %166, %170 : vector<8x32xf32>
    %cst_56 = arith.constant dense<0.000000e+00> : vector<8x32xf32>
    %172 = tpu.matmul %171, %3, %cst_56 {dimension_numbers = #tpu.dot_dimension_numbers<[1], [0], [0], [1], [0, 0, 1, 1], [], []>} : vector<8x32xf32>, vector<32x32xf32>, vector<8x32xf32> -> vector<8x32xf32>
    %173 = vector.broadcast %4 : vector<1x32xf32> to vector<8x32xf32>
    %174 = arith.addf %172, %173 : vector<8x32xf32>
    %c2_57 = arith.constant 2 : index
    %c0_58 = arith.constant 0 : index
    %c0_59 = arith.constant 0 : index
    %175 = vector.load %arg8[%c2_57, %c0_58, %c0_59] : memref<5x8x32xf32, #tpu.memory_space<vmem>>, vector<1x8x32xf32>
    %176 = vector.shape_cast %175 : vector<1x8x32xf32> to vector<8x32xf32>
    %177 = vector.shape_cast %174 : vector<8x32xf32> to vector<1x8x32xf32>
    tpu.vector_store %arg8[%c2_57, %c0_58, %c0_59], %177 {strides = array<i32>} : memref<5x8x32xf32, #tpu.memory_space<vmem>>, vector<1x8x32xf32>,
    %cst_60 = arith.constant dense<0xFF800000> : vector<8xf32>
    %178 = vector.multi_reduction <maximumf>, %174, %cst_60 [1] : vector<8x32xf32> to vector<8xf32>
    %179 = vector.shape_cast %178 : vector<8xf32> to vector<8x1xf32>
    %180 = vector.broadcast %179 : vector<8x1xf32> to vector<8x32xf32>
    %181 = arith.cmpf oeq, %174, %180 : vector<8x32xf32>
    %cst_61 = arith.constant 3.200000e+01 : f32
    %182 = vector.broadcast %cst_61 : f32 to vector<8x32xf32>
    %183 = arith.select %181, %9, %182 : vector<8x32xi1>, vector<8x32xf32>
    %cst_62 = arith.constant dense<0x7F800000> : vector<8xf32>
    %184 = vector.multi_reduction <minimumf>, %183, %cst_62 [1] : vector<8x32xf32> to vector<8xf32>
    %185 = vector.shape_cast %184 : vector<8xf32> to vector<8x1xf32>
    %186 = vector.broadcast %185 : vector<8x1xf32> to vector<8x32xf32>
    %187 = arith.cmpf oeq, %9, %186 : vector<8x32xf32>
    %188 = arith.extui %187 : vector<8x32xi1> to vector<8x32xi32>
    %189 = arith.sitofp %188 : vector<8x32xi32> to vector<8x32xf32>
    %c3 = arith.constant 3 : index
    %190 = memref.load %arg1[%c3] : memref<5xf32, #tpu.memory_space<smem>>
    %c3_63 = arith.constant 3 : index
    %c0_64 = arith.constant 0 : index
    %c0_65 = arith.constant 0 : index
    %191 = vector.load %arg2[%c3_63, %c0_64, %c0_65] : memref<5x8x32xf32, #tpu.memory_space<vmem>>, vector<1x8x32xf32>
    %192 = vector.shape_cast %191 : vector<1x8x32xf32> to vector<8x32xf32>
    %193 = vector.broadcast %190 : f32 to vector<8x32xf32>
    %194 = arith.mulf %193, %192 : vector<8x32xf32>
    %cst_66 = arith.constant 1.000000e+00 : f32
    %195 = arith.subf %cst_66, %190 : f32
    %196 = vector.broadcast %195 : f32 to vector<8x32xf32>
    %197 = arith.mulf %196, %189 : vector<8x32xf32>
    %198 = arith.addf %194, %197 : vector<8x32xf32>
    %cst_67 = arith.constant dense<0.000000e+00> : vector<8x128xf32>
    %199 = tpu.matmul %198, %1, %cst_67 {dimension_numbers = #tpu.dot_dimension_numbers<[1], [0], [0], [1], [0, 0, 1, 1], [], []>} : vector<8x32xf32>, vector<32x128xf32>, vector<8x128xf32> -> vector<8x128xf32>
    %cst_68 = arith.constant dense<0.000000e+00> : vector<8x128xf32>
    %200 = tpu.matmul %171, %2, %cst_68 {dimension_numbers = #tpu.dot_dimension_numbers<[1], [0], [0], [1], [0, 0, 1, 1], [], []>} : vector<8x32xf32>, vector<32x128xf32>, vector<8x128xf32> -> vector<8x128xf32>
    %201 = arith.addf %199, %200 : vector<8x128xf32>
    %202 = arith.addf %201, %0 : vector<8x128xf32>
    %203 = vector.extract_strided_slice %202 {offsets = [0, 0], sizes = [8, 32], strides = [1, 1]} : vector<8x128xf32> to vector<8x32xf32>
    %204 = arith.negf %203 : vector<8x32xf32>
    %205 = math.exp %204 : vector<8x32xf32>
    %cst_69 = arith.constant 1.000000e+00 : f32
    %206 = vector.broadcast %cst_69 : f32 to vector<8x32xf32>
    %207 = arith.addf %206, %205 : vector<8x32xf32>
    %208 = arith.divf %206, %207 : vector<8x32xf32>
    %209 = vector.extract_strided_slice %202 {offsets = [0, 32], sizes = [8, 32], strides = [1, 1]} : vector<8x128xf32> to vector<8x32xf32>
    %210 = arith.negf %209 : vector<8x32xf32>
    %211 = math.exp %210 : vector<8x32xf32>
    %cst_70 = arith.constant 1.000000e+00 : f32
    %212 = vector.broadcast %cst_70 : f32 to vector<8x32xf32>
    %213 = arith.addf %212, %211 : vector<8x32xf32>
    %214 = arith.divf %212, %213 : vector<8x32xf32>
    %215 = vector.extract_strided_slice %202 {offsets = [0, 64], sizes = [8, 32], strides = [1, 1]} : vector<8x128xf32> to vector<8x32xf32>
    %216 = math.tanh %215 : vector<8x32xf32>
    %217 = vector.extract_strided_slice %202 {offsets = [0, 96], sizes = [8, 32], strides = [1, 1]} : vector<8x128xf32> to vector<8x32xf32>
    %218 = arith.negf %217 : vector<8x32xf32>
    %219 = math.exp %218 : vector<8x32xf32>
    %cst_71 = arith.constant 1.000000e+00 : f32
    %220 = vector.broadcast %cst_71 : f32 to vector<8x32xf32>
    %221 = arith.addf %220, %219 : vector<8x32xf32>
    %222 = arith.divf %220, %221 : vector<8x32xf32>
    %223 = arith.mulf %214, %169 : vector<8x32xf32>
    %224 = arith.mulf %208, %216 : vector<8x32xf32>
    %225 = arith.addf %223, %224 : vector<8x32xf32>
    %226 = math.tanh %225 : vector<8x32xf32>
    %227 = arith.mulf %222, %226 : vector<8x32xf32>
    %cst_72 = arith.constant dense<0.000000e+00> : vector<8x32xf32>
    %228 = tpu.matmul %227, %3, %cst_72 {dimension_numbers = #tpu.dot_dimension_numbers<[1], [0], [0], [1], [0, 0, 1, 1], [], []>} : vector<8x32xf32>, vector<32x32xf32>, vector<8x32xf32> -> vector<8x32xf32>
    %229 = vector.broadcast %4 : vector<1x32xf32> to vector<8x32xf32>
    %230 = arith.addf %228, %229 : vector<8x32xf32>
    %c3_73 = arith.constant 3 : index
    %c0_74 = arith.constant 0 : index
    %c0_75 = arith.constant 0 : index
    %231 = vector.load %arg8[%c3_73, %c0_74, %c0_75] : memref<5x8x32xf32, #tpu.memory_space<vmem>>, vector<1x8x32xf32>
    %232 = vector.shape_cast %231 : vector<1x8x32xf32> to vector<8x32xf32>
    %233 = vector.shape_cast %230 : vector<8x32xf32> to vector<1x8x32xf32>
    tpu.vector_store %arg8[%c3_73, %c0_74, %c0_75], %233 {strides = array<i32>} : memref<5x8x32xf32, #tpu.memory_space<vmem>>, vector<1x8x32xf32>,
    %cst_76 = arith.constant dense<0xFF800000> : vector<8xf32>
    %234 = vector.multi_reduction <maximumf>, %230, %cst_76 [1] : vector<8x32xf32> to vector<8xf32>
    %235 = vector.shape_cast %234 : vector<8xf32> to vector<8x1xf32>
    %236 = vector.broadcast %235 : vector<8x1xf32> to vector<8x32xf32>
    %237 = arith.cmpf oeq, %230, %236 : vector<8x32xf32>
    %cst_77 = arith.constant 3.200000e+01 : f32
    %238 = vector.broadcast %cst_77 : f32 to vector<8x32xf32>
    %239 = arith.select %237, %9, %238 : vector<8x32xi1>, vector<8x32xf32>
    %cst_78 = arith.constant dense<0x7F800000> : vector<8xf32>
    %240 = vector.multi_reduction <minimumf>, %239, %cst_78 [1] : vector<8x32xf32> to vector<8xf32>
    %241 = vector.shape_cast %240 : vector<8xf32> to vector<8x1xf32>
    %242 = vector.broadcast %241 : vector<8x1xf32> to vector<8x32xf32>
    %243 = arith.cmpf oeq, %9, %242 : vector<8x32xf32>
    %244 = arith.extui %243 : vector<8x32xi1> to vector<8x32xi32>
    %245 = arith.sitofp %244 : vector<8x32xi32> to vector<8x32xf32>
    %c4 = arith.constant 4 : index
    %246 = memref.load %arg1[%c4] : memref<5xf32, #tpu.memory_space<smem>>
    %c4_79 = arith.constant 4 : index
    %c0_80 = arith.constant 0 : index
    %c0_81 = arith.constant 0 : index
    %247 = vector.load %arg2[%c4_79, %c0_80, %c0_81] : memref<5x8x32xf32, #tpu.memory_space<vmem>>, vector<1x8x32xf32>
    %248 = vector.shape_cast %247 : vector<1x8x32xf32> to vector<8x32xf32>
    %249 = vector.broadcast %246 : f32 to vector<8x32xf32>
    %250 = arith.mulf %249, %248 : vector<8x32xf32>
    %cst_82 = arith.constant 1.000000e+00 : f32
    %251 = arith.subf %cst_82, %246 : f32
    %252 = vector.broadcast %251 : f32 to vector<8x32xf32>
    %253 = arith.mulf %252, %245 : vector<8x32xf32>
    %254 = arith.addf %250, %253 : vector<8x32xf32>
    %cst_83 = arith.constant dense<0.000000e+00> : vector<8x128xf32>
    %255 = tpu.matmul %254, %1, %cst_83 {dimension_numbers = #tpu.dot_dimension_numbers<[1], [0], [0], [1], [0, 0, 1, 1], [], []>} : vector<8x32xf32>, vector<32x128xf32>, vector<8x128xf32> -> vector<8x128xf32>
    %cst_84 = arith.constant dense<0.000000e+00> : vector<8x128xf32>
    %256 = tpu.matmul %227, %2, %cst_84 {dimension_numbers = #tpu.dot_dimension_numbers<[1], [0], [0], [1], [0, 0, 1, 1], [], []>} : vector<8x32xf32>, vector<32x128xf32>, vector<8x128xf32> -> vector<8x128xf32>
    %257 = arith.addf %255, %256 : vector<8x128xf32>
    %258 = arith.addf %257, %0 : vector<8x128xf32>
    %259 = vector.extract_strided_slice %258 {offsets = [0, 0], sizes = [8, 32], strides = [1, 1]} : vector<8x128xf32> to vector<8x32xf32>
    %260 = arith.negf %259 : vector<8x32xf32>
    %261 = math.exp %260 : vector<8x32xf32>
    %cst_85 = arith.constant 1.000000e+00 : f32
    %262 = vector.broadcast %cst_85 : f32 to vector<8x32xf32>
    %263 = arith.addf %262, %261 : vector<8x32xf32>
    %264 = arith.divf %262, %263 : vector<8x32xf32>
    %265 = vector.extract_strided_slice %258 {offsets = [0, 32], sizes = [8, 32], strides = [1, 1]} : vector<8x128xf32> to vector<8x32xf32>
    %266 = arith.negf %265 : vector<8x32xf32>
    %267 = math.exp %266 : vector<8x32xf32>
    %cst_86 = arith.constant 1.000000e+00 : f32
    %268 = vector.broadcast %cst_86 : f32 to vector<8x32xf32>
    %269 = arith.addf %268, %267 : vector<8x32xf32>
    %270 = arith.divf %268, %269 : vector<8x32xf32>
    %271 = vector.extract_strided_slice %258 {offsets = [0, 64], sizes = [8, 32], strides = [1, 1]} : vector<8x128xf32> to vector<8x32xf32>
    %272 = math.tanh %271 : vector<8x32xf32>
    %273 = vector.extract_strided_slice %258 {offsets = [0, 96], sizes = [8, 32], strides = [1, 1]} : vector<8x128xf32> to vector<8x32xf32>
    %274 = arith.negf %273 : vector<8x32xf32>
    %275 = math.exp %274 : vector<8x32xf32>
    %cst_87 = arith.constant 1.000000e+00 : f32
    %276 = vector.broadcast %cst_87 : f32 to vector<8x32xf32>
    %277 = arith.addf %276, %275 : vector<8x32xf32>
    %278 = arith.divf %276, %277 : vector<8x32xf32>
    %279 = arith.mulf %270, %225 : vector<8x32xf32>
    %280 = arith.mulf %264, %272 : vector<8x32xf32>
    %281 = arith.addf %279, %280 : vector<8x32xf32>
    %282 = math.tanh %281 : vector<8x32xf32>
    %283 = arith.mulf %278, %282 : vector<8x32xf32>
    %cst_88 = arith.constant dense<0.000000e+00> : vector<8x32xf32>
    %284 = tpu.matmul %283, %3, %cst_88 {dimension_numbers = #tpu.dot_dimension_numbers<[1], [0], [0], [1], [0, 0, 1, 1], [], []>} : vector<8x32xf32>, vector<32x32xf32>, vector<8x32xf32> -> vector<8x32xf32>
    %285 = vector.broadcast %4 : vector<1x32xf32> to vector<8x32xf32>
    %286 = arith.addf %284, %285 : vector<8x32xf32>
    %c4_89 = arith.constant 4 : index
    %c0_90 = arith.constant 0 : index
    %c0_91 = arith.constant 0 : index
    %287 = vector.load %arg8[%c4_89, %c0_90, %c0_91] : memref<5x8x32xf32, #tpu.memory_space<vmem>>, vector<1x8x32xf32>
    %288 = vector.shape_cast %287 : vector<1x8x32xf32> to vector<8x32xf32>
    %289 = vector.shape_cast %286 : vector<8x32xf32> to vector<1x8x32xf32>
    tpu.vector_store %arg8[%c4_89, %c0_90, %c0_91], %289 {strides = array<i32>} : memref<5x8x32xf32, #tpu.memory_space<vmem>>, vector<1x8x32xf32>,
    return
  }
  func.func @transform_0(%arg0: i32, %arg1: memref<5xf32, #tpu.memory_space<smem>>) -> (i32, i32, i32) {
    %c0_i32 = arith.constant 0 : i32
    %c0_i32_0 = arith.constant 0 : i32
    %c0_i32_1 = arith.constant 0 : i32
    %c0_i32_2 = arith.constant 0 : i32
    return %c0_i32, %c0_i32_0, %c0_i32_1 : i32, i32, i32
  }
  func.func @transform_1(%arg0: i32, %arg1: memref<5xf32, #tpu.memory_space<smem>>) -> (i32, i32) {
    %c0_i32 = arith.constant 0 : i32
    %c0_i32_0 = arith.constant 0 : i32
    %c0_i32_1 = arith.constant 0 : i32
    return %c0_i32, %c0_i32_0 : i32, i32
  }
  func.func @transform_2(%arg0: i32, %arg1: memref<5xf32, #tpu.memory_space<smem>>) -> (i32, i32) {
    %c0_i32 = arith.constant 0 : i32
    %c0_i32_0 = arith.constant 0 : i32
    %c0_i32_1 = arith.constant 0 : i32
    return %c0_i32, %c0_i32_0 : i32, i32
  }
  func.func @transform_3(%arg0: i32, %arg1: memref<5xf32, #tpu.memory_space<smem>>) -> (i32, i32) {
    %c0_i32 = arith.constant 0 : i32
    %c0_i32_0 = arith.constant 0 : i32
    %c0_i32_1 = arith.constant 0 : i32
    return %c0_i32, %c0_i32_0 : i32, i32
  }
  func.func @transform_4(%arg0: i32, %arg1: memref<5xf32, #tpu.memory_space<smem>>) -> (i32, i32) {
    %c0_i32 = arith.constant 0 : i32
    %c0_i32_0 = arith.constant 0 : i32
    %c0_i32_1 = arith.constant 0 : i32
    return %c0_i32, %c0_i32_0 : i32, i32
  }
  func.func @transform_5(%arg0: i32, %arg1: memref<5xf32, #tpu.memory_space<smem>>) -> (i32, i32) {
    %c0_i32 = arith.constant 0 : i32
    %c0_i32_0 = arith.constant 0 : i32
    %c0_i32_1 = arith.constant 0 : i32
    return %c0_i32, %c0_i32_0 : i32, i32
  }
  func.func @transform_6(%arg0: i32, %arg1: memref<5xf32, #tpu.memory_space<smem>>) -> (i32, i32, i32) {
    %c0_i32 = arith.constant 0 : i32
    %c0_i32_0 = arith.constant 0 : i32
    %c0_i32_1 = arith.constant 0 : i32
    %c0_i32_2 = arith.constant 0 : i32
    return %c0_i32, %c0_i32_0, %c0_i32_1 : i32, i32, i32
  }
}

module attributes {stable_mosaic.version = 11 : i64} {
  func.func @_encoder_fusion_kernel(%arg0: i32, %arg1: memref<8x8x512xf32, #tpu.memory_space<vmem>>, %arg2: memref<8x8x1xf32, #tpu.memory_space<vmem>>, %arg3: memref<128x512xf32, #tpu.memory_space<vmem>>, %arg4: memref<128x32xf32, #tpu.memory_space<vmem>>, %arg5: memref<1x32xf32, #tpu.memory_space<vmem>>, %arg6: memref<8x32xf32, #tpu.memory_space<vmem>>, %arg7: memref<8x128xf32, #tpu.memory_space<vmem>>, %arg8: memref<8x128xf32, #tpu.memory_space<vmem>>) attributes {dimension_semantics = [#tpu.dimension_semantics<arbitrary>], iteration_bounds = array<i64: 1>, scalar_prefetch = 0 : i64, scratch_operands = 2 : i64, tpu.core_type = #tpu.core_type<tc>, window_params = [{transform_indices = @transform_0, window_bounds = array<i64: 8, 8, 512>}, {transform_indices = @transform_1, window_bounds = array<i64: 8, 8, 1>}, {pipeline_mode = #tpu.pipeline_mode<synchronous>, transform_indices = @transform_2, window_bounds = array<i64: 128, 512>}, {pipeline_mode = #tpu.pipeline_mode<synchronous>, transform_indices = @transform_3, window_bounds = array<i64: 128, 32>}, {pipeline_mode = #tpu.pipeline_mode<synchronous>, transform_indices = @transform_4, window_bounds = array<i64: 1, 32>}, {pipeline_mode = #tpu.pipeline_mode<synchronous>, transform_indices = @transform_5, window_bounds = array<i64: 8, 32>}]} {
    %c0_i32 = arith.constant 0 : i32
    %0 = arith.cmpi eq, %arg0, %c0_i32 : i32
    %1 = arith.extui %0 : i1 to i32
    %c0_i32_0 = arith.constant 0 : i32
    %2 = arith.cmpi ne, %1, %c0_i32_0 : i32
    scf.if %2 {
      %cst_90 = arith.constant 0.000000e+00 : f32
      %332 = vector.broadcast %cst_90 : f32 to vector<8x128xf32>
      %c0_91 = arith.constant 0 : index
      %c0_92 = arith.constant 0 : index
      %333 = vector.load %arg7[%c0_91, %c0_92] : memref<8x128xf32, #tpu.memory_space<vmem>>, vector<8x128xf32>
      tpu.vector_store %arg7[%c0_91, %c0_92], %332 {strides = array<i32>} : memref<8x128xf32, #tpu.memory_space<vmem>>, vector<8x128xf32>,
      %cst_93 = arith.constant 0.000000e+00 : f32
      %334 = vector.broadcast %cst_93 : f32 to vector<8x128xf32>
      %c0_94 = arith.constant 0 : index
      %c0_95 = arith.constant 0 : index
      %335 = vector.load %arg8[%c0_94, %c0_95] : memref<8x128xf32, #tpu.memory_space<vmem>>, vector<8x128xf32>
      tpu.vector_store %arg8[%c0_94, %c0_95], %334 {strides = array<i32>} : memref<8x128xf32, #tpu.memory_space<vmem>>, vector<8x128xf32>,
      %cst_96 = arith.constant 0.000000e+00 : f32
      %336 = vector.broadcast %cst_96 : f32 to vector<8x32xf32>
      %c0_97 = arith.constant 0 : index
      %c0_98 = arith.constant 0 : index
      %337 = vector.load %arg6[%c0_97, %c0_98] : memref<8x32xf32, #tpu.memory_space<vmem>>, vector<8x32xf32>
      tpu.vector_store %arg6[%c0_97, %c0_98], %336 {strides = array<i32>} : memref<8x32xf32, #tpu.memory_space<vmem>>, vector<8x32xf32>,
    } else {
    }
    %c0 = arith.constant 0 : index
    %c0_1 = arith.constant 0 : index
    %3 = vector.load %arg3[%c0, %c0_1] : memref<128x512xf32, #tpu.memory_space<vmem>>, vector<128x512xf32>
    %c0_2 = arith.constant 0 : index
    %c0_3 = arith.constant 0 : index
    %4 = vector.load %arg4[%c0_2, %c0_3] : memref<128x32xf32, #tpu.memory_space<vmem>>, vector<128x32xf32>
    %c0_4 = arith.constant 0 : index
    %c0_5 = arith.constant 0 : index
    %5 = vector.load %arg5[%c0_4, %c0_5] : memref<1x32xf32, #tpu.memory_space<vmem>>, vector<1x32xf32>
    %c0_6 = arith.constant 0 : index
    %c0_7 = arith.constant 0 : index
    %6 = vector.load %arg7[%c0_6, %c0_7] : memref<8x128xf32, #tpu.memory_space<vmem>>, vector<8x128xf32>
    %c0_8 = arith.constant 0 : index
    %c0_9 = arith.constant 0 : index
    %7 = vector.load %arg8[%c0_8, %c0_9] : memref<8x128xf32, #tpu.memory_space<vmem>>, vector<8x128xf32>
    %c0_10 = arith.constant 0 : index
    %c0_11 = arith.constant 0 : index
    %8 = vector.load %arg6[%c0_10, %c0_11] : memref<8x32xf32, #tpu.memory_space<vmem>>, vector<8x32xf32>
    %c0_i32_12 = arith.constant 0 : i32
    %9 = arith.index_cast %c0_i32_12 : i32 to index
    %c0_13 = arith.constant 0 : index
    %c0_14 = arith.constant 0 : index
    %10 = vector.load %arg1[%9, %c0_13, %c0_14] : memref<8x8x512xf32, #tpu.memory_space<vmem>>, vector<1x8x512xf32>
    %11 = vector.shape_cast %10 : vector<1x8x512xf32> to vector<8x512xf32>
    %cst = arith.constant dense<0.000000e+00> : vector<8x512xf32>
    %12 = tpu.matmul %6, %3, %cst {dimension_numbers = #tpu.dot_dimension_numbers<[1], [0], [0], [1], [0, 0, 1, 1], [], []>} : vector<8x128xf32>, vector<128x512xf32>, vector<8x512xf32> -> vector<8x512xf32>
    %13 = arith.addf %11, %12 : vector<8x512xf32>
    %14 = vector.extract_strided_slice %13 {offsets = [0, 0], sizes = [8, 128], strides = [1, 1]} : vector<8x512xf32> to vector<8x128xf32>
    %15 = arith.negf %14 : vector<8x128xf32>
    %16 = math.exp %15 : vector<8x128xf32>
    %cst_15 = arith.constant 1.000000e+00 : f32
    %17 = vector.broadcast %cst_15 : f32 to vector<8x128xf32>
    %18 = arith.addf %17, %16 : vector<8x128xf32>
    %19 = arith.divf %17, %18 : vector<8x128xf32>
    %20 = vector.extract_strided_slice %13 {offsets = [0, 128], sizes = [8, 128], strides = [1, 1]} : vector<8x512xf32> to vector<8x128xf32>
    %21 = arith.negf %20 : vector<8x128xf32>
    %22 = math.exp %21 : vector<8x128xf32>
    %cst_16 = arith.constant 1.000000e+00 : f32
    %23 = vector.broadcast %cst_16 : f32 to vector<8x128xf32>
    %24 = arith.addf %23, %22 : vector<8x128xf32>
    %25 = arith.divf %23, %24 : vector<8x128xf32>
    %26 = vector.extract_strided_slice %13 {offsets = [0, 256], sizes = [8, 128], strides = [1, 1]} : vector<8x512xf32> to vector<8x128xf32>
    %27 = math.tanh %26 : vector<8x128xf32>
    %28 = vector.extract_strided_slice %13 {offsets = [0, 384], sizes = [8, 128], strides = [1, 1]} : vector<8x512xf32> to vector<8x128xf32>
    %29 = arith.negf %28 : vector<8x128xf32>
    %30 = math.exp %29 : vector<8x128xf32>
    %cst_17 = arith.constant 1.000000e+00 : f32
    %31 = vector.broadcast %cst_17 : f32 to vector<8x128xf32>
    %32 = arith.addf %31, %30 : vector<8x128xf32>
    %33 = arith.divf %31, %32 : vector<8x128xf32>
    %34 = arith.mulf %25, %7 : vector<8x128xf32>
    %35 = arith.mulf %19, %27 : vector<8x128xf32>
    %36 = arith.addf %34, %35 : vector<8x128xf32>
    %37 = math.tanh %36 : vector<8x128xf32>
    %38 = arith.mulf %33, %37 : vector<8x128xf32>
    %cst_18 = arith.constant dense<0.000000e+00> : vector<8x32xf32>
    %39 = tpu.matmul %38, %4, %cst_18 {dimension_numbers = #tpu.dot_dimension_numbers<[1], [0], [0], [1], [0, 0, 1, 1], [], []>} : vector<8x128xf32>, vector<128x32xf32>, vector<8x32xf32> -> vector<8x32xf32>
    %40 = vector.broadcast %5 : vector<1x32xf32> to vector<8x32xf32>
    %41 = arith.addf %39, %40 : vector<8x32xf32>
    %42 = math.tanh %41 : vector<8x32xf32>
    %43 = arith.index_cast %c0_i32_12 : i32 to index
    %c0_19 = arith.constant 0 : index
    %c0_20 = arith.constant 0 : index
    %44 = vector.load %arg2[%43, %c0_19, %c0_20] : memref<8x8x1xf32, #tpu.memory_space<vmem>>, vector<1x8x1xf32>
    %45 = vector.shape_cast %44 : vector<1x8x1xf32> to vector<8x1xf32>
    %46 = vector.broadcast %45 : vector<8x1xf32> to vector<8x32xf32>
    %47 = arith.mulf %46, %42 : vector<8x32xf32>
    %48 = arith.addf %8, %47 : vector<8x32xf32>
    %c1_i32 = arith.constant 1 : i32
    %49 = arith.index_cast %c1_i32 : i32 to index
    %c0_21 = arith.constant 0 : index
    %c0_22 = arith.constant 0 : index
    %50 = vector.load %arg1[%49, %c0_21, %c0_22] : memref<8x8x512xf32, #tpu.memory_space<vmem>>, vector<1x8x512xf32>
    %51 = vector.shape_cast %50 : vector<1x8x512xf32> to vector<8x512xf32>
    %cst_23 = arith.constant dense<0.000000e+00> : vector<8x512xf32>
    %52 = tpu.matmul %38, %3, %cst_23 {dimension_numbers = #tpu.dot_dimension_numbers<[1], [0], [0], [1], [0, 0, 1, 1], [], []>} : vector<8x128xf32>, vector<128x512xf32>, vector<8x512xf32> -> vector<8x512xf32>
    %53 = arith.addf %51, %52 : vector<8x512xf32>
    %54 = vector.extract_strided_slice %53 {offsets = [0, 0], sizes = [8, 128], strides = [1, 1]} : vector<8x512xf32> to vector<8x128xf32>
    %55 = arith.negf %54 : vector<8x128xf32>
    %56 = math.exp %55 : vector<8x128xf32>
    %cst_24 = arith.constant 1.000000e+00 : f32
    %57 = vector.broadcast %cst_24 : f32 to vector<8x128xf32>
    %58 = arith.addf %57, %56 : vector<8x128xf32>
    %59 = arith.divf %57, %58 : vector<8x128xf32>
    %60 = vector.extract_strided_slice %53 {offsets = [0, 128], sizes = [8, 128], strides = [1, 1]} : vector<8x512xf32> to vector<8x128xf32>
    %61 = arith.negf %60 : vector<8x128xf32>
    %62 = math.exp %61 : vector<8x128xf32>
    %cst_25 = arith.constant 1.000000e+00 : f32
    %63 = vector.broadcast %cst_25 : f32 to vector<8x128xf32>
    %64 = arith.addf %63, %62 : vector<8x128xf32>
    %65 = arith.divf %63, %64 : vector<8x128xf32>
    %66 = vector.extract_strided_slice %53 {offsets = [0, 256], sizes = [8, 128], strides = [1, 1]} : vector<8x512xf32> to vector<8x128xf32>
    %67 = math.tanh %66 : vector<8x128xf32>
    %68 = vector.extract_strided_slice %53 {offsets = [0, 384], sizes = [8, 128], strides = [1, 1]} : vector<8x512xf32> to vector<8x128xf32>
    %69 = arith.negf %68 : vector<8x128xf32>
    %70 = math.exp %69 : vector<8x128xf32>
    %cst_26 = arith.constant 1.000000e+00 : f32
    %71 = vector.broadcast %cst_26 : f32 to vector<8x128xf32>
    %72 = arith.addf %71, %70 : vector<8x128xf32>
    %73 = arith.divf %71, %72 : vector<8x128xf32>
    %74 = arith.mulf %65, %36 : vector<8x128xf32>
    %75 = arith.mulf %59, %67 : vector<8x128xf32>
    %76 = arith.addf %74, %75 : vector<8x128xf32>
    %77 = math.tanh %76 : vector<8x128xf32>
    %78 = arith.mulf %73, %77 : vector<8x128xf32>
    %cst_27 = arith.constant dense<0.000000e+00> : vector<8x32xf32>
    %79 = tpu.matmul %78, %4, %cst_27 {dimension_numbers = #tpu.dot_dimension_numbers<[1], [0], [0], [1], [0, 0, 1, 1], [], []>} : vector<8x128xf32>, vector<128x32xf32>, vector<8x32xf32> -> vector<8x32xf32>
    %80 = vector.broadcast %5 : vector<1x32xf32> to vector<8x32xf32>
    %81 = arith.addf %79, %80 : vector<8x32xf32>
    %82 = math.tanh %81 : vector<8x32xf32>
    %83 = arith.index_cast %c1_i32 : i32 to index
    %c0_28 = arith.constant 0 : index
    %c0_29 = arith.constant 0 : index
    %84 = vector.load %arg2[%83, %c0_28, %c0_29] : memref<8x8x1xf32, #tpu.memory_space<vmem>>, vector<1x8x1xf32>
    %85 = vector.shape_cast %84 : vector<1x8x1xf32> to vector<8x1xf32>
    %86 = vector.broadcast %85 : vector<8x1xf32> to vector<8x32xf32>
    %87 = arith.mulf %86, %82 : vector<8x32xf32>
    %88 = arith.addf %48, %87 : vector<8x32xf32>
    %c2_i32 = arith.constant 2 : i32
    %89 = arith.index_cast %c2_i32 : i32 to index
    %c0_30 = arith.constant 0 : index
    %c0_31 = arith.constant 0 : index
    %90 = vector.load %arg1[%89, %c0_30, %c0_31] : memref<8x8x512xf32, #tpu.memory_space<vmem>>, vector<1x8x512xf32>
    %91 = vector.shape_cast %90 : vector<1x8x512xf32> to vector<8x512xf32>
    %cst_32 = arith.constant dense<0.000000e+00> : vector<8x512xf32>
    %92 = tpu.matmul %78, %3, %cst_32 {dimension_numbers = #tpu.dot_dimension_numbers<[1], [0], [0], [1], [0, 0, 1, 1], [], []>} : vector<8x128xf32>, vector<128x512xf32>, vector<8x512xf32> -> vector<8x512xf32>
    %93 = arith.addf %91, %92 : vector<8x512xf32>
    %94 = vector.extract_strided_slice %93 {offsets = [0, 0], sizes = [8, 128], strides = [1, 1]} : vector<8x512xf32> to vector<8x128xf32>
    %95 = arith.negf %94 : vector<8x128xf32>
    %96 = math.exp %95 : vector<8x128xf32>
    %cst_33 = arith.constant 1.000000e+00 : f32
    %97 = vector.broadcast %cst_33 : f32 to vector<8x128xf32>
    %98 = arith.addf %97, %96 : vector<8x128xf32>
    %99 = arith.divf %97, %98 : vector<8x128xf32>
    %100 = vector.extract_strided_slice %93 {offsets = [0, 128], sizes = [8, 128], strides = [1, 1]} : vector<8x512xf32> to vector<8x128xf32>
    %101 = arith.negf %100 : vector<8x128xf32>
    %102 = math.exp %101 : vector<8x128xf32>
    %cst_34 = arith.constant 1.000000e+00 : f32
    %103 = vector.broadcast %cst_34 : f32 to vector<8x128xf32>
    %104 = arith.addf %103, %102 : vector<8x128xf32>
    %105 = arith.divf %103, %104 : vector<8x128xf32>
    %106 = vector.extract_strided_slice %93 {offsets = [0, 256], sizes = [8, 128], strides = [1, 1]} : vector<8x512xf32> to vector<8x128xf32>
    %107 = math.tanh %106 : vector<8x128xf32>
    %108 = vector.extract_strided_slice %93 {offsets = [0, 384], sizes = [8, 128], strides = [1, 1]} : vector<8x512xf32> to vector<8x128xf32>
    %109 = arith.negf %108 : vector<8x128xf32>
    %110 = math.exp %109 : vector<8x128xf32>
    %cst_35 = arith.constant 1.000000e+00 : f32
    %111 = vector.broadcast %cst_35 : f32 to vector<8x128xf32>
    %112 = arith.addf %111, %110 : vector<8x128xf32>
    %113 = arith.divf %111, %112 : vector<8x128xf32>
    %114 = arith.mulf %105, %76 : vector<8x128xf32>
    %115 = arith.mulf %99, %107 : vector<8x128xf32>
    %116 = arith.addf %114, %115 : vector<8x128xf32>
    %117 = math.tanh %116 : vector<8x128xf32>
    %118 = arith.mulf %113, %117 : vector<8x128xf32>
    %cst_36 = arith.constant dense<0.000000e+00> : vector<8x32xf32>
    %119 = tpu.matmul %118, %4, %cst_36 {dimension_numbers = #tpu.dot_dimension_numbers<[1], [0], [0], [1], [0, 0, 1, 1], [], []>} : vector<8x128xf32>, vector<128x32xf32>, vector<8x32xf32> -> vector<8x32xf32>
    %120 = vector.broadcast %5 : vector<1x32xf32> to vector<8x32xf32>
    %121 = arith.addf %119, %120 : vector<8x32xf32>
    %122 = math.tanh %121 : vector<8x32xf32>
    %123 = arith.index_cast %c2_i32 : i32 to index
    %c0_37 = arith.constant 0 : index
    %c0_38 = arith.constant 0 : index
    %124 = vector.load %arg2[%123, %c0_37, %c0_38] : memref<8x8x1xf32, #tpu.memory_space<vmem>>, vector<1x8x1xf32>
    %125 = vector.shape_cast %124 : vector<1x8x1xf32> to vector<8x1xf32>
    %126 = vector.broadcast %125 : vector<8x1xf32> to vector<8x32xf32>
    %127 = arith.mulf %126, %122 : vector<8x32xf32>
    %128 = arith.addf %88, %127 : vector<8x32xf32>
    %c3_i32 = arith.constant 3 : i32
    %129 = arith.index_cast %c3_i32 : i32 to index
    %c0_39 = arith.constant 0 : index
    %c0_40 = arith.constant 0 : index
    %130 = vector.load %arg1[%129, %c0_39, %c0_40] : memref<8x8x512xf32, #tpu.memory_space<vmem>>, vector<1x8x512xf32>
    %131 = vector.shape_cast %130 : vector<1x8x512xf32> to vector<8x512xf32>
    %cst_41 = arith.constant dense<0.000000e+00> : vector<8x512xf32>
    %132 = tpu.matmul %118, %3, %cst_41 {dimension_numbers = #tpu.dot_dimension_numbers<[1], [0], [0], [1], [0, 0, 1, 1], [], []>} : vector<8x128xf32>, vector<128x512xf32>, vector<8x512xf32> -> vector<8x512xf32>
    %133 = arith.addf %131, %132 : vector<8x512xf32>
    %134 = vector.extract_strided_slice %133 {offsets = [0, 0], sizes = [8, 128], strides = [1, 1]} : vector<8x512xf32> to vector<8x128xf32>
    %135 = arith.negf %134 : vector<8x128xf32>
    %136 = math.exp %135 : vector<8x128xf32>
    %cst_42 = arith.constant 1.000000e+00 : f32
    %137 = vector.broadcast %cst_42 : f32 to vector<8x128xf32>
    %138 = arith.addf %137, %136 : vector<8x128xf32>
    %139 = arith.divf %137, %138 : vector<8x128xf32>
    %140 = vector.extract_strided_slice %133 {offsets = [0, 128], sizes = [8, 128], strides = [1, 1]} : vector<8x512xf32> to vector<8x128xf32>
    %141 = arith.negf %140 : vector<8x128xf32>
    %142 = math.exp %141 : vector<8x128xf32>
    %cst_43 = arith.constant 1.000000e+00 : f32
    %143 = vector.broadcast %cst_43 : f32 to vector<8x128xf32>
    %144 = arith.addf %143, %142 : vector<8x128xf32>
    %145 = arith.divf %143, %144 : vector<8x128xf32>
    %146 = vector.extract_strided_slice %133 {offsets = [0, 256], sizes = [8, 128], strides = [1, 1]} : vector<8x512xf32> to vector<8x128xf32>
    %147 = math.tanh %146 : vector<8x128xf32>
    %148 = vector.extract_strided_slice %133 {offsets = [0, 384], sizes = [8, 128], strides = [1, 1]} : vector<8x512xf32> to vector<8x128xf32>
    %149 = arith.negf %148 : vector<8x128xf32>
    %150 = math.exp %149 : vector<8x128xf32>
    %cst_44 = arith.constant 1.000000e+00 : f32
    %151 = vector.broadcast %cst_44 : f32 to vector<8x128xf32>
    %152 = arith.addf %151, %150 : vector<8x128xf32>
    %153 = arith.divf %151, %152 : vector<8x128xf32>
    %154 = arith.mulf %145, %116 : vector<8x128xf32>
    %155 = arith.mulf %139, %147 : vector<8x128xf32>
    %156 = arith.addf %154, %155 : vector<8x128xf32>
    %157 = math.tanh %156 : vector<8x128xf32>
    %158 = arith.mulf %153, %157 : vector<8x128xf32>
    %cst_45 = arith.constant dense<0.000000e+00> : vector<8x32xf32>
    %159 = tpu.matmul %158, %4, %cst_45 {dimension_numbers = #tpu.dot_dimension_numbers<[1], [0], [0], [1], [0, 0, 1, 1], [], []>} : vector<8x128xf32>, vector<128x32xf32>, vector<8x32xf32> -> vector<8x32xf32>
    %160 = vector.broadcast %5 : vector<1x32xf32> to vector<8x32xf32>
    %161 = arith.addf %159, %160 : vector<8x32xf32>
    %162 = math.tanh %161 : vector<8x32xf32>
    %163 = arith.index_cast %c3_i32 : i32 to index
    %c0_46 = arith.constant 0 : index
    %c0_47 = arith.constant 0 : index
    %164 = vector.load %arg2[%163, %c0_46, %c0_47] : memref<8x8x1xf32, #tpu.memory_space<vmem>>, vector<1x8x1xf32>
    %165 = vector.shape_cast %164 : vector<1x8x1xf32> to vector<8x1xf32>
    %166 = vector.broadcast %165 : vector<8x1xf32> to vector<8x32xf32>
    %167 = arith.mulf %166, %162 : vector<8x32xf32>
    %168 = arith.addf %128, %167 : vector<8x32xf32>
    %c4_i32 = arith.constant 4 : i32
    %169 = arith.index_cast %c4_i32 : i32 to index
    %c0_48 = arith.constant 0 : index
    %c0_49 = arith.constant 0 : index
    %170 = vector.load %arg1[%169, %c0_48, %c0_49] : memref<8x8x512xf32, #tpu.memory_space<vmem>>, vector<1x8x512xf32>
    %171 = vector.shape_cast %170 : vector<1x8x512xf32> to vector<8x512xf32>
    %cst_50 = arith.constant dense<0.000000e+00> : vector<8x512xf32>
    %172 = tpu.matmul %158, %3, %cst_50 {dimension_numbers = #tpu.dot_dimension_numbers<[1], [0], [0], [1], [0, 0, 1, 1], [], []>} : vector<8x128xf32>, vector<128x512xf32>, vector<8x512xf32> -> vector<8x512xf32>
    %173 = arith.addf %171, %172 : vector<8x512xf32>
    %174 = vector.extract_strided_slice %173 {offsets = [0, 0], sizes = [8, 128], strides = [1, 1]} : vector<8x512xf32> to vector<8x128xf32>
    %175 = arith.negf %174 : vector<8x128xf32>
    %176 = math.exp %175 : vector<8x128xf32>
    %cst_51 = arith.constant 1.000000e+00 : f32
    %177 = vector.broadcast %cst_51 : f32 to vector<8x128xf32>
    %178 = arith.addf %177, %176 : vector<8x128xf32>
    %179 = arith.divf %177, %178 : vector<8x128xf32>
    %180 = vector.extract_strided_slice %173 {offsets = [0, 128], sizes = [8, 128], strides = [1, 1]} : vector<8x512xf32> to vector<8x128xf32>
    %181 = arith.negf %180 : vector<8x128xf32>
    %182 = math.exp %181 : vector<8x128xf32>
    %cst_52 = arith.constant 1.000000e+00 : f32
    %183 = vector.broadcast %cst_52 : f32 to vector<8x128xf32>
    %184 = arith.addf %183, %182 : vector<8x128xf32>
    %185 = arith.divf %183, %184 : vector<8x128xf32>
    %186 = vector.extract_strided_slice %173 {offsets = [0, 256], sizes = [8, 128], strides = [1, 1]} : vector<8x512xf32> to vector<8x128xf32>
    %187 = math.tanh %186 : vector<8x128xf32>
    %188 = vector.extract_strided_slice %173 {offsets = [0, 384], sizes = [8, 128], strides = [1, 1]} : vector<8x512xf32> to vector<8x128xf32>
    %189 = arith.negf %188 : vector<8x128xf32>
    %190 = math.exp %189 : vector<8x128xf32>
    %cst_53 = arith.constant 1.000000e+00 : f32
    %191 = vector.broadcast %cst_53 : f32 to vector<8x128xf32>
    %192 = arith.addf %191, %190 : vector<8x128xf32>
    %193 = arith.divf %191, %192 : vector<8x128xf32>
    %194 = arith.mulf %185, %156 : vector<8x128xf32>
    %195 = arith.mulf %179, %187 : vector<8x128xf32>
    %196 = arith.addf %194, %195 : vector<8x128xf32>
    %197 = math.tanh %196 : vector<8x128xf32>
    %198 = arith.mulf %193, %197 : vector<8x128xf32>
    %cst_54 = arith.constant dense<0.000000e+00> : vector<8x32xf32>
    %199 = tpu.matmul %198, %4, %cst_54 {dimension_numbers = #tpu.dot_dimension_numbers<[1], [0], [0], [1], [0, 0, 1, 1], [], []>} : vector<8x128xf32>, vector<128x32xf32>, vector<8x32xf32> -> vector<8x32xf32>
    %200 = vector.broadcast %5 : vector<1x32xf32> to vector<8x32xf32>
    %201 = arith.addf %199, %200 : vector<8x32xf32>
    %202 = math.tanh %201 : vector<8x32xf32>
    %203 = arith.index_cast %c4_i32 : i32 to index
    %c0_55 = arith.constant 0 : index
    %c0_56 = arith.constant 0 : index
    %204 = vector.load %arg2[%203, %c0_55, %c0_56] : memref<8x8x1xf32, #tpu.memory_space<vmem>>, vector<1x8x1xf32>
    %205 = vector.shape_cast %204 : vector<1x8x1xf32> to vector<8x1xf32>
    %206 = vector.broadcast %205 : vector<8x1xf32> to vector<8x32xf32>
    %207 = arith.mulf %206, %202 : vector<8x32xf32>
    %208 = arith.addf %168, %207 : vector<8x32xf32>
    %c5_i32 = arith.constant 5 : i32
    %209 = arith.index_cast %c5_i32 : i32 to index
    %c0_57 = arith.constant 0 : index
    %c0_58 = arith.constant 0 : index
    %210 = vector.load %arg1[%209, %c0_57, %c0_58] : memref<8x8x512xf32, #tpu.memory_space<vmem>>, vector<1x8x512xf32>
    %211 = vector.shape_cast %210 : vector<1x8x512xf32> to vector<8x512xf32>
    %cst_59 = arith.constant dense<0.000000e+00> : vector<8x512xf32>
    %212 = tpu.matmul %198, %3, %cst_59 {dimension_numbers = #tpu.dot_dimension_numbers<[1], [0], [0], [1], [0, 0, 1, 1], [], []>} : vector<8x128xf32>, vector<128x512xf32>, vector<8x512xf32> -> vector<8x512xf32>
    %213 = arith.addf %211, %212 : vector<8x512xf32>
    %214 = vector.extract_strided_slice %213 {offsets = [0, 0], sizes = [8, 128], strides = [1, 1]} : vector<8x512xf32> to vector<8x128xf32>
    %215 = arith.negf %214 : vector<8x128xf32>
    %216 = math.exp %215 : vector<8x128xf32>
    %cst_60 = arith.constant 1.000000e+00 : f32
    %217 = vector.broadcast %cst_60 : f32 to vector<8x128xf32>
    %218 = arith.addf %217, %216 : vector<8x128xf32>
    %219 = arith.divf %217, %218 : vector<8x128xf32>
    %220 = vector.extract_strided_slice %213 {offsets = [0, 128], sizes = [8, 128], strides = [1, 1]} : vector<8x512xf32> to vector<8x128xf32>
    %221 = arith.negf %220 : vector<8x128xf32>
    %222 = math.exp %221 : vector<8x128xf32>
    %cst_61 = arith.constant 1.000000e+00 : f32
    %223 = vector.broadcast %cst_61 : f32 to vector<8x128xf32>
    %224 = arith.addf %223, %222 : vector<8x128xf32>
    %225 = arith.divf %223, %224 : vector<8x128xf32>
    %226 = vector.extract_strided_slice %213 {offsets = [0, 256], sizes = [8, 128], strides = [1, 1]} : vector<8x512xf32> to vector<8x128xf32>
    %227 = math.tanh %226 : vector<8x128xf32>
    %228 = vector.extract_strided_slice %213 {offsets = [0, 384], sizes = [8, 128], strides = [1, 1]} : vector<8x512xf32> to vector<8x128xf32>
    %229 = arith.negf %228 : vector<8x128xf32>
    %230 = math.exp %229 : vector<8x128xf32>
    %cst_62 = arith.constant 1.000000e+00 : f32
    %231 = vector.broadcast %cst_62 : f32 to vector<8x128xf32>
    %232 = arith.addf %231, %230 : vector<8x128xf32>
    %233 = arith.divf %231, %232 : vector<8x128xf32>
    %234 = arith.mulf %225, %196 : vector<8x128xf32>
    %235 = arith.mulf %219, %227 : vector<8x128xf32>
    %236 = arith.addf %234, %235 : vector<8x128xf32>
    %237 = math.tanh %236 : vector<8x128xf32>
    %238 = arith.mulf %233, %237 : vector<8x128xf32>
    %cst_63 = arith.constant dense<0.000000e+00> : vector<8x32xf32>
    %239 = tpu.matmul %238, %4, %cst_63 {dimension_numbers = #tpu.dot_dimension_numbers<[1], [0], [0], [1], [0, 0, 1, 1], [], []>} : vector<8x128xf32>, vector<128x32xf32>, vector<8x32xf32> -> vector<8x32xf32>
    %240 = vector.broadcast %5 : vector<1x32xf32> to vector<8x32xf32>
    %241 = arith.addf %239, %240 : vector<8x32xf32>
    %242 = math.tanh %241 : vector<8x32xf32>
    %243 = arith.index_cast %c5_i32 : i32 to index
    %c0_64 = arith.constant 0 : index
    %c0_65 = arith.constant 0 : index
    %244 = vector.load %arg2[%243, %c0_64, %c0_65] : memref<8x8x1xf32, #tpu.memory_space<vmem>>, vector<1x8x1xf32>
    %245 = vector.shape_cast %244 : vector<1x8x1xf32> to vector<8x1xf32>
    %246 = vector.broadcast %245 : vector<8x1xf32> to vector<8x32xf32>
    %247 = arith.mulf %246, %242 : vector<8x32xf32>
    %248 = arith.addf %208, %247 : vector<8x32xf32>
    %c6_i32 = arith.constant 6 : i32
    %249 = arith.index_cast %c6_i32 : i32 to index
    %c0_66 = arith.constant 0 : index
    %c0_67 = arith.constant 0 : index
    %250 = vector.load %arg1[%249, %c0_66, %c0_67] : memref<8x8x512xf32, #tpu.memory_space<vmem>>, vector<1x8x512xf32>
    %251 = vector.shape_cast %250 : vector<1x8x512xf32> to vector<8x512xf32>
    %cst_68 = arith.constant dense<0.000000e+00> : vector<8x512xf32>
    %252 = tpu.matmul %238, %3, %cst_68 {dimension_numbers = #tpu.dot_dimension_numbers<[1], [0], [0], [1], [0, 0, 1, 1], [], []>} : vector<8x128xf32>, vector<128x512xf32>, vector<8x512xf32> -> vector<8x512xf32>
    %253 = arith.addf %251, %252 : vector<8x512xf32>
    %254 = vector.extract_strided_slice %253 {offsets = [0, 0], sizes = [8, 128], strides = [1, 1]} : vector<8x512xf32> to vector<8x128xf32>
    %255 = arith.negf %254 : vector<8x128xf32>
    %256 = math.exp %255 : vector<8x128xf32>
    %cst_69 = arith.constant 1.000000e+00 : f32
    %257 = vector.broadcast %cst_69 : f32 to vector<8x128xf32>
    %258 = arith.addf %257, %256 : vector<8x128xf32>
    %259 = arith.divf %257, %258 : vector<8x128xf32>
    %260 = vector.extract_strided_slice %253 {offsets = [0, 128], sizes = [8, 128], strides = [1, 1]} : vector<8x512xf32> to vector<8x128xf32>
    %261 = arith.negf %260 : vector<8x128xf32>
    %262 = math.exp %261 : vector<8x128xf32>
    %cst_70 = arith.constant 1.000000e+00 : f32
    %263 = vector.broadcast %cst_70 : f32 to vector<8x128xf32>
    %264 = arith.addf %263, %262 : vector<8x128xf32>
    %265 = arith.divf %263, %264 : vector<8x128xf32>
    %266 = vector.extract_strided_slice %253 {offsets = [0, 256], sizes = [8, 128], strides = [1, 1]} : vector<8x512xf32> to vector<8x128xf32>
    %267 = math.tanh %266 : vector<8x128xf32>
    %268 = vector.extract_strided_slice %253 {offsets = [0, 384], sizes = [8, 128], strides = [1, 1]} : vector<8x512xf32> to vector<8x128xf32>
    %269 = arith.negf %268 : vector<8x128xf32>
    %270 = math.exp %269 : vector<8x128xf32>
    %cst_71 = arith.constant 1.000000e+00 : f32
    %271 = vector.broadcast %cst_71 : f32 to vector<8x128xf32>
    %272 = arith.addf %271, %270 : vector<8x128xf32>
    %273 = arith.divf %271, %272 : vector<8x128xf32>
    %274 = arith.mulf %265, %236 : vector<8x128xf32>
    %275 = arith.mulf %259, %267 : vector<8x128xf32>
    %276 = arith.addf %274, %275 : vector<8x128xf32>
    %277 = math.tanh %276 : vector<8x128xf32>
    %278 = arith.mulf %273, %277 : vector<8x128xf32>
    %cst_72 = arith.constant dense<0.000000e+00> : vector<8x32xf32>
    %279 = tpu.matmul %278, %4, %cst_72 {dimension_numbers = #tpu.dot_dimension_numbers<[1], [0], [0], [1], [0, 0, 1, 1], [], []>} : vector<8x128xf32>, vector<128x32xf32>, vector<8x32xf32> -> vector<8x32xf32>
    %280 = vector.broadcast %5 : vector<1x32xf32> to vector<8x32xf32>
    %281 = arith.addf %279, %280 : vector<8x32xf32>
    %282 = math.tanh %281 : vector<8x32xf32>
    %283 = arith.index_cast %c6_i32 : i32 to index
    %c0_73 = arith.constant 0 : index
    %c0_74 = arith.constant 0 : index
    %284 = vector.load %arg2[%283, %c0_73, %c0_74] : memref<8x8x1xf32, #tpu.memory_space<vmem>>, vector<1x8x1xf32>
    %285 = vector.shape_cast %284 : vector<1x8x1xf32> to vector<8x1xf32>
    %286 = vector.broadcast %285 : vector<8x1xf32> to vector<8x32xf32>
    %287 = arith.mulf %286, %282 : vector<8x32xf32>
    %288 = arith.addf %248, %287 : vector<8x32xf32>
    %c7_i32 = arith.constant 7 : i32
    %289 = arith.index_cast %c7_i32 : i32 to index
    %c0_75 = arith.constant 0 : index
    %c0_76 = arith.constant 0 : index
    %290 = vector.load %arg1[%289, %c0_75, %c0_76] : memref<8x8x512xf32, #tpu.memory_space<vmem>>, vector<1x8x512xf32>
    %291 = vector.shape_cast %290 : vector<1x8x512xf32> to vector<8x512xf32>
    %cst_77 = arith.constant dense<0.000000e+00> : vector<8x512xf32>
    %292 = tpu.matmul %278, %3, %cst_77 {dimension_numbers = #tpu.dot_dimension_numbers<[1], [0], [0], [1], [0, 0, 1, 1], [], []>} : vector<8x128xf32>, vector<128x512xf32>, vector<8x512xf32> -> vector<8x512xf32>
    %293 = arith.addf %291, %292 : vector<8x512xf32>
    %294 = vector.extract_strided_slice %293 {offsets = [0, 0], sizes = [8, 128], strides = [1, 1]} : vector<8x512xf32> to vector<8x128xf32>
    %295 = arith.negf %294 : vector<8x128xf32>
    %296 = math.exp %295 : vector<8x128xf32>
    %cst_78 = arith.constant 1.000000e+00 : f32
    %297 = vector.broadcast %cst_78 : f32 to vector<8x128xf32>
    %298 = arith.addf %297, %296 : vector<8x128xf32>
    %299 = arith.divf %297, %298 : vector<8x128xf32>
    %300 = vector.extract_strided_slice %293 {offsets = [0, 128], sizes = [8, 128], strides = [1, 1]} : vector<8x512xf32> to vector<8x128xf32>
    %301 = arith.negf %300 : vector<8x128xf32>
    %302 = math.exp %301 : vector<8x128xf32>
    %cst_79 = arith.constant 1.000000e+00 : f32
    %303 = vector.broadcast %cst_79 : f32 to vector<8x128xf32>
    %304 = arith.addf %303, %302 : vector<8x128xf32>
    %305 = arith.divf %303, %304 : vector<8x128xf32>
    %306 = vector.extract_strided_slice %293 {offsets = [0, 256], sizes = [8, 128], strides = [1, 1]} : vector<8x512xf32> to vector<8x128xf32>
    %307 = math.tanh %306 : vector<8x128xf32>
    %308 = vector.extract_strided_slice %293 {offsets = [0, 384], sizes = [8, 128], strides = [1, 1]} : vector<8x512xf32> to vector<8x128xf32>
    %309 = arith.negf %308 : vector<8x128xf32>
    %310 = math.exp %309 : vector<8x128xf32>
    %cst_80 = arith.constant 1.000000e+00 : f32
    %311 = vector.broadcast %cst_80 : f32 to vector<8x128xf32>
    %312 = arith.addf %311, %310 : vector<8x128xf32>
    %313 = arith.divf %311, %312 : vector<8x128xf32>
    %314 = arith.mulf %305, %276 : vector<8x128xf32>
    %315 = arith.mulf %299, %307 : vector<8x128xf32>
    %316 = arith.addf %314, %315 : vector<8x128xf32>
    %317 = math.tanh %316 : vector<8x128xf32>
    %318 = arith.mulf %313, %317 : vector<8x128xf32>
    %cst_81 = arith.constant dense<0.000000e+00> : vector<8x32xf32>
    %319 = tpu.matmul %318, %4, %cst_81 {dimension_numbers = #tpu.dot_dimension_numbers<[1], [0], [0], [1], [0, 0, 1, 1], [], []>} : vector<8x128xf32>, vector<128x32xf32>, vector<8x32xf32> -> vector<8x32xf32>
    %320 = vector.broadcast %5 : vector<1x32xf32> to vector<8x32xf32>
    %321 = arith.addf %319, %320 : vector<8x32xf32>
    %322 = math.tanh %321 : vector<8x32xf32>
    %323 = arith.index_cast %c7_i32 : i32 to index
    %c0_82 = arith.constant 0 : index
    %c0_83 = arith.constant 0 : index
    %324 = vector.load %arg2[%323, %c0_82, %c0_83] : memref<8x8x1xf32, #tpu.memory_space<vmem>>, vector<1x8x1xf32>
    %325 = vector.shape_cast %324 : vector<1x8x1xf32> to vector<8x1xf32>
    %326 = vector.broadcast %325 : vector<8x1xf32> to vector<8x32xf32>
    %327 = arith.mulf %326, %322 : vector<8x32xf32>
    %328 = arith.addf %288, %327 : vector<8x32xf32>
    %c8_i32 = arith.constant 8 : i32
    %c0_84 = arith.constant 0 : index
    %c0_85 = arith.constant 0 : index
    %329 = vector.load %arg7[%c0_84, %c0_85] : memref<8x128xf32, #tpu.memory_space<vmem>>, vector<8x128xf32>
    tpu.vector_store %arg7[%c0_84, %c0_85], %318 {strides = array<i32>} : memref<8x128xf32, #tpu.memory_space<vmem>>, vector<8x128xf32>,
    %c0_86 = arith.constant 0 : index
    %c0_87 = arith.constant 0 : index
    %330 = vector.load %arg8[%c0_86, %c0_87] : memref<8x128xf32, #tpu.memory_space<vmem>>, vector<8x128xf32>
    tpu.vector_store %arg8[%c0_86, %c0_87], %316 {strides = array<i32>} : memref<8x128xf32, #tpu.memory_space<vmem>>, vector<8x128xf32>,
    %c0_88 = arith.constant 0 : index
    %c0_89 = arith.constant 0 : index
    %331 = vector.load %arg6[%c0_88, %c0_89] : memref<8x32xf32, #tpu.memory_space<vmem>>, vector<8x32xf32>
    tpu.vector_store %arg6[%c0_88, %c0_89], %328 {strides = array<i32>} : memref<8x32xf32, #tpu.memory_space<vmem>>, vector<8x32xf32>,
    return
  }
  func.func @transform_0(%arg0: i32) -> (i32, i32, i32) {
    %c0_i32 = arith.constant 0 : i32
    %c0_i32_0 = arith.constant 0 : i32
    %c0_i32_1 = arith.constant 0 : i32
    return %arg0, %c0_i32, %c0_i32_0 : i32, i32, i32
  }
  func.func @transform_1(%arg0: i32) -> (i32, i32, i32) {
    %c0_i32 = arith.constant 0 : i32
    %c0_i32_0 = arith.constant 0 : i32
    %c0_i32_1 = arith.constant 0 : i32
    return %arg0, %c0_i32, %c0_i32_0 : i32, i32, i32
  }
  func.func @transform_2(%arg0: i32) -> (i32, i32) {
    %c0_i32 = arith.constant 0 : i32
    %c0_i32_0 = arith.constant 0 : i32
    %c0_i32_1 = arith.constant 0 : i32
    return %c0_i32, %c0_i32_0 : i32, i32
  }
  func.func @transform_3(%arg0: i32) -> (i32, i32) {
    %c0_i32 = arith.constant 0 : i32
    %c0_i32_0 = arith.constant 0 : i32
    %c0_i32_1 = arith.constant 0 : i32
    return %c0_i32, %c0_i32_0 : i32, i32
  }
  func.func @transform_4(%arg0: i32) -> (i32, i32) {
    %c0_i32 = arith.constant 0 : i32
    %c0_i32_0 = arith.constant 0 : i32
    %c0_i32_1 = arith.constant 0 : i32
    return %c0_i32, %c0_i32_0 : i32, i32
  }
  func.func @transform_5(%arg0: i32) -> (i32, i32) {
    %c0_i32 = arith.constant 0 : i32
    %c0_i32_0 = arith.constant 0 : i32
    %c0_i32_1 = arith.constant 0 : i32
    return %c0_i32, %c0_i32_0 : i32, i32
  }
}

</mosaic_0001>

<bundles_post_ra>
// kernel: seq2seq_forward.3
= control target key start
LH: loop header
LB: loop body
LE: loop exit
PB: predicated region body
PF: predicated region fallthrough
CT: control target
= control target key end

     0   :  { %s790_s27 = smov [#allocation3]   ;;  %s1081_s0 = inlined_call_operand.vmem [shape: f32[5], index: 0, kind: input, shape index: {}]   ;;  %s1082_s1 = inlined_call_operand.vmem [shape: f32[5,8,32], index: 1, kind: input, shape index: {}]   ;;  %s1083_s2 = inlined_call_operand.vmem [shape: f32[8,128], index: 2, kind: input, shape index: {}]   ;;  %s1084_s3 = inlined_call_operand.vmem [shape: f32[32,128], index: 3, kind: input, shape index: {}]   ;;  %s1085_s4 = inlined_call_operand.vmem [shape: f32[32,128], index: 4, kind: input, shape index: {}]   ;;  %s1086_s5 = inlined_call_operand.vmem [shape: f32[32,32], index: 5, kind: input, shape index: {}]   ;;  %s1087_s6 = inlined_call_operand.vmem [shape: f32[1,32], index: 6, kind: input, shape index: {}]   ;;  %s1088_s7 = inlined_call_operand.vmem [shape: f32[5,8,32], index: 7, kind: output, shape index: {}]  }
   0x1   :  { %s13_s26 = sshll.u32 %s1081_s0, 4  ;;  %s14_s26 = int_to_ptr.vmem [resolvable:$true] %s13_s26 }
   0x2   :  { %16 = dma.vmem_to_smem %s14_s26, 16, %s790_s27, [#allocation2] }
   0x3   :  { %788 = dma.done.wait [#allocation2], 16 }
   0x4   :  { %789 = vsyncadd [#allocation2], 4294967280 }
   0x5   :  { %19 = sfence }
   0x6   :  { %v46_v0 = vlaneseq  ;;  %vm51_vm0 = vcmask 261120   ;;  %v844_v4 = vld [vmem:[%s1085_s4 + $0x18] sm:$0xff]  ;;  %v856_v6 = vld [vmem:[%s1085_s4 + $0x10] sm:$0xff]  ;;  %v869_v8 = vld [vmem:[%s1085_s4 + $0x8] sm:$0xff]  ;;  %v791_v12 = vmov 0.0   ;;  %s792_s24 = smov 64  }
   0x7   :  { %v849_v5 = vld [vmem:[%s1084_s3 + $0x18] sm:$0xff]  ;;  %81 = vmatpush.msra.mxu0 %v844_v4  ;;  %v861_v7 = vld [vmem:[%s1084_s3 + $0x10] sm:$0xff]  ;;  %211 = vmatpush.msra.mxu3 %v844_v4  ;;  %v874_v9 = vld [vmem:[%s1084_s3 + $0x8] sm:$0xff]  ;;  %s708_s17 = sld [smem:[#allocation3 + $0x2]] }
   0x8   :  { %v47_v1 = vand.u32 127, %v46_v0  ;;  %104 = vmatpush.msra.mxu1 %v849_v5  ;;  %v879_v10 = vld [vmem:[%s1085_s4] sm:$0xff]  ;;  %v923_v46 = vld [vmem:[%s1086_s5 + $0x18] sm:$0xff]  ;;  %v928_v47 = vld [vmem:[%s1086_s5 + $0x10] sm:$0xff]  ;;  %s716_s21 = sld [smem:[#allocation3 + $0x3]] }
   0x9   :  { %82 = vmatpush.msra.mxu0 %v856_v6  ;;  %212 = vmatpush.msra.mxu3 %v856_v6  ;;  %v887_v11 = vld [vmem:[%s1084_s3] sm:$0xff]  ;;  %s58_s3 = sld [smem:[#allocation3]]  ;;  %v935_v48 = vld [vmem:[%s1086_s5 + $0x8] sm:$0xff] }
   0xa   :  { %v837_v2 = vcvt.s32.f32 %v47_v1  ;;  %105 = vmatpush.msra.mxu1 %v861_v7  ;;  %v59_v13 = vld [vmem:[%s1082_s1] sm:$0xff]  ;;  %170 = vmatpush.msra.mxu2 %v923_v46  ;;  %v701_v60 = vld [vmem:[%s1082_s1 + $0x8] sm:$0xff]  ;;  %s724_s28 = sld [smem:[#allocation3 + $0x4]] }
   0xb   :  { %83 = vmatpush.msra.mxu0 %v869_v8  ;;  %213 = vmatpush.msra.mxu3 %v869_v8  ;;  %v911_v22 = vld [vmem:[%s1083_s2] sm:$0xff]  ;;  %s793_s2 = smov 32  }
   0xc   :  { %v52_v3 = vsel %vm51_vm0, %v837_v2, inf  ;;  %106 = vmatpush.msra.mxu1 %v874_v9  ;;  %171 = vmatpush.msra.mxu2 %v928_v47  ;;  %v943_v49 = vld [vmem:[%s1086_s5] sm:$0xff] }
   0xd   :  { %53 = vmin.xlane.f32.xlu0 %v52_v3  ;;  %84 = vmatpush.msra.mxu0 %v879_v10  ;;  %v974_v53 = vld [vmem:[%s1087_s6] ss:$0 sm:$0xff]  ;;  %s700_s6 = sld [smem:[#allocation3 + $0x1]] }
   0xe   :  { %107 = vmatpush.msra.mxu1 %v887_v11  ;;  %85 = vmatmul.f32.vlgmr.msra.gmra.mxu0 %v791_v12  ;;  %s323_s18 = ssub.f32 1.0, %s708_s17 }
   0xf   :  { %214 = vmatpush.msra.mxu3 %v879_v10  ;;  %234 = vmatpush.msrb.mxu0 %v849_v5  ;;  %s62_s4 = ssub.f32 1.0, %s58_s3  ;;  %v60_v14 = vstv %s58_s3 }
  0x10   :  { %v61_v17 = vmul.f32 %v60_v14, %v59_v13  ;;  %297 = vmatpush.msrb.mxu1 %v923_v46  ;;  %172 = vmatpush.msra.mxu2 %v935_v48  ;;  %s451_s22 = ssub.f32 1.0, %s716_s21 }
  0x11   :  { %362 = vmatpush.msrb.mxu3 %v849_v5  ;;  %235 = vmatpush.msrb.mxu0 %v861_v7  ;;  %v63_v15 = vstv %s62_s4  ;;  %s579_s29 = ssub.f32 1.0, %s724_s28 }
  0x12   :  { %298 = vmatpush.msrb.mxu1 %v928_v47  ;;  %173 = vmatpush.msra.mxu2 %v943_v49 }
  0x13   :  { %363 = vmatpush.msrb.mxu3 %v861_v7  ;;  %236 = vmatpush.msrb.mxu0 %v874_v9  ;;  %s195_s12 = ssub.f32 1.0, %s700_s6  ;;  %v193_v61 = vstv %s700_s6 }
  0x14   :  { %299 = vmatpush.msrb.mxu1 %v935_v48  ;;  %339 = vmatpush.msrb.mxu2 %v844_v4  ;;  %v194_v0 = vmul.f32 %v701_v60, %v193_v61 }
  0x15   :  { %364 = vmatpush.msrb.mxu3 %v874_v9  ;;  %237 = vmatpush.msrb.mxu0 %v887_v11  ;;  %v196_v62 = vstv %s195_s12 }
  0x16   :  { %300 = vmatpush.msrb.mxu1 %v943_v49  ;;  %340 = vmatpush.msrb.mxu2 %v856_v6 }
  0x17   :  { %365 = vmatpush.msrb.mxu3 %v887_v11  ;;  %425 = vmatpush.msra.mxu0 %v923_v46 }
  0x18   :  { %341 = vmatpush.msrb.mxu2 %v869_v8 }
  0x19   :  { %426 = vmatpush.msra.mxu0 %v928_v47 }
  0x1a   :  { %342 = vmatpush.msrb.mxu2 %v879_v10 }
  0x1b   :  { %427 = vmatpush.msra.mxu0 %v935_v48 }
  0x1d   :  { %428 = vmatpush.msra.mxu0 %v943_v49 }
  0x80   :  { %v54_v16 = vpop.xlane.xlu0 %53 }
  0x81   :  { %vm55_vm1 = vcmp.eq.f32.partialorder %v837_v2, %v54_v16 }
  0x82   :  { %v695_v18 = vsel %vm55_vm1, 1.0, %v791_v12 }
  0x83   :  { %v64_v19 = vmul.f32 %v695_v18, %v63_v15 }
  0x85   :  { %v65_v20 = vadd.f32 %v64_v19, %v61_v17 }
  0x87   :  { %696 = vmatmul.msk.f32.vlgmr.msra.gmra.mxu1 %vm51_vm0, %v65_v20 }
  0x88   :  { %467 = vmatpush.msra.mxu1 %v844_v4 }
  0x8a   :  { %468 = vmatpush.msra.mxu1 %v856_v6 }
  0x8b   :  { %v86_v21 = vpop.f32.mrf.mxu0 }
  0x8c   :  { %469 = vmatpush.msra.mxu1 %v869_v8 }
  0x8e   :  { %470 = vmatpush.msra.mxu1 %v879_v10 }
 0x104   :  { %v109_v23 = vpop.f32.mrf.mxu1 }
 0x105   :  { %v110_v24 = vadd.f32 %v109_v23, %v86_v21 }
 0x107   :  { %v112_v25 = vadd.f32 %v110_v24, %v911_v22 }
 0x109   :  { %736 = vtanh.f32 %v112_v25  ;;  %v697_v27 = vmul.f32 -1.442695, %v112_v25 }
 0x10b   :  { %738 = vpow2.f32 %v697_v27 }
 0x10f   :  { %v737_v26 = vpop.eup %736 }
 0x110   :  { %135 = vrot.lane.b32.xlu0 %v737_v26, %s792_s24 }
 0x111   :  { %v739_v28 = vpop.eup %738 }
 0x112   :  { %v116_v29 = vadd.f32 1.0, %v739_v28 }
 0x114   :  { %740 = vrcp.f32 %v116_v29  ;;  %v128_v35 = vand.u32 2147483648, %v116_v29  ;;  %vm122_vm3 = vweird.f32 %v116_v29  ;;  %v126_v36 = vand.u32 2147483647, %v116_v29 }
 0x116   :  { %v129_v38 = vor.u32 1.1754944e-38, %v128_v35  ;;  %vm127_vm5 = vcmp.eq.f32.partialorder %v126_v36, 8.507059e+37 }
 0x11a   :  { %v741_v30 = vpop.eup %740 }
 0x11b   :  { %v118_v31 = vmul.f32 %v741_v30, %v116_v29  ;;  %vm123_vm2 = vweird.f32 %v741_v30 }
 0x11c   :  { %vm124_vm4 = vmor %vm122_vm3, %vm123_vm2 }
 0x11d   :  { %v119_v32 = vsub.f32 1.0, %v118_v31 }
 0x11f   :  { %v120_v33 = vmul.f32 %v741_v30, %v119_v32 }
 0x121   :  { %v121_v34 = vadd.f32 %v741_v30, %v120_v33 }
 0x123   :  { %v125_v37 = vsel %vm124_vm4, %v741_v30, %v121_v34 }
 0x124   :  { %v130_v40 = vsel %vm127_vm5, %v129_v38, %v125_v37 }
 0x125   :  { %v133_v42 = vmul.f32 0.0, %v130_v40 }
 0x182   :  { %v136_v39 = vpop.permute.xlu0 %135 }
 0x183   :  { %v138_v41 = vmul.f32 %v136_v39, %v130_v40 }
 0x185   :  { %140 = vrot.lane.b32.xlu1 %v138_v41, %s793_s2  ;;  %v321_v41 = vstv %s708_s17 }
 0x1f7   :  { %v141_v43 = vpop.permute.xlu1 %140 }
 0x1f8   :  { %v916_v44 = vadd.f32 %v141_v43, %v133_v42  ;;  %v324_v42 = vstv %s323_s18 }
 0x1fa   :  { %742 = vtanh.f32 %v916_v44 }
 0x200   :  { %v743_v45 = vpop.eup %742 }
 0x201   :  { %146 = vrot.lane.b32.xlu1 %v743_v45, %s792_s24 }
 0x273   :  { %v147_v50 = vpop.permute.xlu1 %146 }
 0x274   :  { %v149_v51 = vmul.f32 %v147_v50, %v130_v40 }
 0x276   :  { %154 = vrot.lane.b32.xlu2 %v149_v51, %s793_s2 }
 0x2d0   :  { %v155_v52 = vpop.permute.xlu2 %154 }
 0x2d1   :  { %698 = vmatmul.msk.f32.vlgmr.msra.gmra.mxu2 %vm51_vm0, %v155_v52  ;;  %702 = vmatmul.msk.f32.vlgmr.msra.gmra.mxu3 %vm51_vm0, %v155_v52 }
 0x2d2   :  { %490 = vmatpush.msra.mxu2 %v849_v5  ;;  %553 = vmatpush.msra.mxu3 %v923_v46 }
 0x2d4   :  { %491 = vmatpush.msra.mxu2 %v861_v7  ;;  %554 = vmatpush.msra.mxu3 %v928_v47 }
 0x2d6   :  { %492 = vmatpush.msra.mxu2 %v874_v9  ;;  %555 = vmatpush.msra.mxu3 %v935_v48 }
 0x2d8   :  { %493 = vmatpush.msra.mxu2 %v887_v11  ;;  %556 = vmatpush.msra.mxu3 %v943_v49 }
 0x354   :  { %v175_v54 = vpop.f32.mrf.mxu2  ;;  %v216_v14 = vpop.f32.mrf.mxu3 }
 0x355   :  { %v176_v55 = vadd.f32 %v974_v53, %v175_v54 }
 0x357   :  { %178 = vst.msk [vmem:[%s1088_s7] sm:$0xff] %vm51_vm0, %v176_v55  ;;  %v179_v56 = vsel %vm51_vm0, %v176_v55, -inf }
 0x358   :  { %180 = vmax.xlane.f32.xlu2 %v179_v56 }
 0x3cb   :  { %v181_v57 = vpop.xlane.xlu2 %180 }
 0x3cc   :  { %vm182_vm6 = vcmp.eq.f32.partialorder %v176_v55, %v181_v57 }
 0x3cd   :  { %v183_v58 = vsel %vm182_vm6, %v837_v2, 32.0 }
 0x3ce   :  { %v184_v59 = vsel %vm51_vm0, %v183_v58, inf }
 0x3cf   :  { %185 = vmin.xlane.f32.xlu1 %v184_v59 }
 0x442   :  { %v186_v63 = vpop.xlane.xlu1 %185 }
 0x443   :  { %vm187_vm7 = vcmp.eq.f32.partialorder %v837_v2, %v186_v63 }
 0x444   :  { %v699_v1 = vsel %vm187_vm7, 1.0, %v791_v12 }
 0x445   :  { %v197_v3 = vmul.f32 %v699_v1, %v196_v62 }
 0x447   :  { %v198_v13 = vadd.f32 %v197_v3, %v194_v0 }
 0x449   :  { %703 = vmatmul.msk.f32.vlgmr.msrb.gmra.mxu0 %vm51_vm0, %v198_v13 }
 0x44a   :  { %595 = vmatpush.msrb.mxu0 %v844_v4 }
 0x44c   :  { %596 = vmatpush.msrb.mxu0 %v856_v6 }
 0x44e   :  { %597 = vmatpush.msrb.mxu0 %v869_v8 }
 0x450   :  { %598 = vmatpush.msrb.mxu0 %v879_v10 }
 0x4c6   :  { %v239_v15 = vpop.f32.mrf.mxu0 }
 0x4c7   :  { %v240_v16 = vadd.f32 %v239_v15, %v216_v14 }
 0x4c9   :  { %v242_v17 = vadd.f32 %v240_v16, %v911_v22 }
 0x4cb   :  { %744 = vtanh.f32 %v242_v17  ;;  %v704_v19 = vmul.f32 -1.442695, %v242_v17 }
 0x4cd   :  { %746 = vpow2.f32 %v704_v19 }
 0x4d1   :  { %v745_v18 = vpop.eup %744 }
 0x4d2   :  { %265 = vrot.lane.b32.xlu0 %v745_v18, %s792_s24 }
 0x4d3   :  { %v747_v20 = vpop.eup %746 }
 0x4d4   :  { %v246_v21 = vadd.f32 1.0, %v747_v20 }
 0x4d6   :  { %748 = vrcp.f32 %v246_v21  ;;  %v258_v10 = vand.u32 2147483648, %v246_v21  ;;  %vm252_vm9 = vweird.f32 %v246_v21  ;;  %v256_v25 = vand.u32 2147483647, %v246_v21 }
 0x4d8   :  { %v259_v27 = vor.u32 1.1754944e-38, %v258_v10  ;;  %vm257_vm11 = vcmp.eq.f32.partialorder %v256_v25, 8.507059e+37  ;;  %v717_v25 = vld [vmem:[%s1082_s1 + $0x18] sm:$0xff] }
 0x4dc   :  { %v749_v4 = vpop.eup %748 }
 0x4dd   :  { %v248_v6 = vmul.f32 %v749_v4, %v246_v21  ;;  %vm253_vm8 = vweird.f32 %v749_v4 }
 0x4de   :  { %vm254_vm10 = vmor %vm252_vm9, %vm253_vm8 }
 0x4df   :  { %v249_v23 = vsub.f32 1.0, %v248_v6 }
 0x4e1   :  { %v250_v8 = vmul.f32 %v749_v4, %v249_v23 }
 0x4e3   :  { %v251_v24 = vadd.f32 %v749_v4, %v250_v8 }
 0x4e5   :  { %v255_v26 = vsel %vm254_vm10, %v749_v4, %v251_v24 }
 0x4e6   :  { %v260_v29 = vsel %vm257_vm11, %v259_v27, %v255_v26  ;;  %v449_v26 = vstv %s716_s21  ;;  %v452_v27 = vstv %s451_s22 }
 0x4e7   :  { %v263_v31 = vmul.f32 %v260_v29, %v916_v44 }
 0x544   :  { %v266_v28 = vpop.permute.xlu0 %265 }
 0x545   :  { %v268_v30 = vmul.f32 %v266_v28, %v260_v29 }
 0x547   :  { %270 = vrot.lane.b32.xlu0 %v268_v30, %s793_s2 }
 0x5b9   :  { %v271_v32 = vpop.permute.xlu0 %270 }
 0x5ba   :  { %v998_v33 = vadd.f32 %v271_v32, %v263_v31 }
 0x5bc   :  { %750 = vtanh.f32 %v998_v33 }
 0x5c2   :  { %v751_v34 = vpop.eup %750 }
 0x5c3   :  { %276 = vrot.lane.b32.xlu0 %v751_v34, %s792_s24 }
 0x635   :  { %v277_v35 = vpop.permute.xlu0 %276 }
 0x636   :  { %v279_v36 = vmul.f32 %v277_v35, %v260_v29  ;;  %v450_v29 = vmul.f32 %v717_v25, %v449_v26 }
 0x638   :  { %281 = vrot.lane.b32.xlu2 %v279_v36, %s793_s2 }
 0x692   :  { %v282_v37 = vpop.permute.xlu2 %281 }
 0x693   :  { %705 = vmatmul.msk.f32.vlgmr.msrb.gmra.mxu1 %vm51_vm0, %v282_v37  ;;  %710 = vmatmul.msk.f32.vlgmr.msrb.gmra.mxu2 %vm51_vm0, %v282_v37 }
 0x694   :  { %618 = vmatpush.msrb.mxu1 %v849_v5  ;;  %681 = vmatpush.msrb.mxu2 %v923_v46 }
 0x696   :  { %619 = vmatpush.msrb.mxu1 %v861_v7  ;;  %682 = vmatpush.msrb.mxu2 %v928_v47 }
 0x698   :  { %620 = vmatpush.msrb.mxu1 %v874_v9  ;;  %683 = vmatpush.msrb.mxu2 %v935_v48 }
 0x69a   :  { %621 = vmatpush.msrb.mxu1 %v887_v11  ;;  %684 = vmatpush.msrb.mxu2 %v943_v49  ;;  %v709_v11 = vld [vmem:[%s1082_s1 + $0x10] sm:$0xff] }
 0x69b   :  { %v322_v44 = vmul.f32 %v709_v11, %v321_v41 }
 0x710   :  { %v302_v38 = vpop.f32.mrf.mxu1 }
 0x711   :  { %v303_v39 = vadd.f32 %v974_v53, %v302_v38 }
 0x713   :  { %706 = vst.msk [vmem:[%s1088_s7 + $0x8] sm:$0xff] %vm51_vm0, %v303_v39  ;;  %v307_v5 = vsel %vm51_vm0, %v303_v39, -inf }
 0x714   :  { %308 = vmax.xlane.f32.xlu0 %v307_v5 }
 0x716   :  { %v344_v48 = vpop.f32.mrf.mxu2 }
 0x787   :  { %v309_v7 = vpop.xlane.xlu0 %308 }
 0x788   :  { %vm310_vm12 = vcmp.eq.f32.partialorder %v303_v39, %v309_v7 }
 0x789   :  { %v311_v9 = vsel %vm310_vm12, %v837_v2, 32.0 }
 0x78a   :  { %v312_v40 = vsel %vm51_vm0, %v311_v9, inf }
 0x78b   :  { %313 = vmin.xlane.f32.xlu1 %v312_v40 }
 0x7fe   :  { %v314_v43 = vpop.xlane.xlu1 %313 }
 0x7ff   :  { %vm315_vm13 = vcmp.eq.f32.partialorder %v837_v2, %v314_v43 }
 0x800   :  { %v707_v45 = vsel %vm315_vm13, 1.0, %v791_v12 }
 0x801   :  { %v325_v46 = vmul.f32 %v707_v45, %v324_v42 }
 0x803   :  { %v326_v47 = vadd.f32 %v325_v46, %v322_v44 }
 0x805   :  { %711 = vmatmul.msk.f32.vlgmr.msrb.gmra.mxu3 %vm51_vm0, %v326_v47 }
 0x888   :  { %v367_v49 = vpop.f32.mrf.mxu3 }
 0x889   :  { %v368_v50 = vadd.f32 %v367_v49, %v344_v48 }
 0x88b   :  { %v370_v51 = vadd.f32 %v368_v50, %v911_v22 }
 0x88d   :  { %752 = vtanh.f32 %v370_v51  ;;  %v712_v54 = vmul.f32 -1.442695, %v370_v51 }
 0x88f   :  { %754 = vpow2.f32 %v712_v54 }
 0x893   :  { %v753_v52 = vpop.eup %752 }
 0x894   :  { %393 = vrot.lane.b32.xlu1 %v753_v52, %s792_s24 }
 0x895   :  { %v755_v55 = vpop.eup %754 }
 0x896   :  { %v374_v56 = vadd.f32 1.0, %v755_v55 }
 0x898   :  { %756 = vrcp.f32 %v374_v56  ;;  %v386_v62 = vand.u32 2147483648, %v374_v56  ;;  %vm380_vm15 = vweird.f32 %v374_v56  ;;  %v384_v63 = vand.u32 2147483647, %v374_v56 }
 0x89a   :  { %v387_v1 = vor.u32 1.1754944e-38, %v386_v62  ;;  %vm385_vm2 = vcmp.eq.f32.partialorder %v384_v63, 8.507059e+37  ;;  %v725_v63 = vld [vmem:[%s1082_s1 + $0x20] sm:$0xff] }
 0x89e   :  { %v757_v57 = vpop.eup %756 }
 0x89f   :  { %v376_v58 = vmul.f32 %v757_v57, %v374_v56  ;;  %vm381_vm14 = vweird.f32 %v757_v57 }
 0x8a0   :  { %vm382_vm1 = vmor %vm380_vm15, %vm381_vm14 }
 0x8a1   :  { %v377_v59 = vsub.f32 1.0, %v376_v58 }
 0x8a3   :  { %v378_v60 = vmul.f32 %v757_v57, %v377_v59 }
 0x8a5   :  { %v379_v61 = vadd.f32 %v757_v57, %v378_v60 }
 0x8a7   :  { %v383_v0 = vsel %vm382_vm1, %v757_v57, %v379_v61 }
 0x8a8   :  { %v388_v13 = vsel %vm385_vm2, %v387_v1, %v383_v0  ;;  %v577_v0 = vstv %s724_s28  ;;  %v580_v1 = vstv %s579_s29 }
 0x8a9   :  { %v391_v15 = vmul.f32 %v388_v13, %v998_v33 }
 0x906   :  { %v394_v3 = vpop.permute.xlu1 %393 }
 0x907   :  { %v396_v14 = vmul.f32 %v394_v3, %v388_v13 }
 0x909   :  { %398 = vrot.lane.b32.xlu2 %v396_v14, %s793_s2 }
 0x963   :  { %v399_v16 = vpop.permute.xlu2 %398 }
 0x964   :  { %v401_v17 = vadd.f32 %v399_v16, %v391_v15 }
 0x966   :  { %758 = vtanh.f32 %v401_v17 }
 0x96c   :  { %v759_v18 = vpop.eup %758 }
 0x96d   :  { %404 = vrot.lane.b32.xlu2 %v759_v18, %s792_s24 }
 0x9c7   :  { %v405_v19 = vpop.permute.xlu2 %404 }
 0x9c8   :  { %v407_v20 = vmul.f32 %v405_v19, %v388_v13  ;;  %v578_v13 = vmul.f32 %v725_v63, %v577_v0 }
 0x9ca   :  { %409 = vrot.lane.b32.xlu2 %v407_v20, %s793_s2 }
 0xa24   :  { %v410_v21 = vpop.permute.xlu2 %409 }
 0xa25   :  { %713 = vmatmul.msk.f32.vlgmr.msra.gmra.mxu0 %vm51_vm0, %v410_v21  ;;  %718 = vmatmul.msk.f32.vlgmr.msra.gmra.mxu1 %vm51_vm0, %v410_v21 }
 0xaa2   :  { %v430_v4 = vpop.f32.mrf.mxu0  ;;  %v472_v33 = vpop.f32.mrf.mxu1 }
 0xaa3   :  { %v431_v6 = vadd.f32 %v974_v53, %v430_v4 }
 0xaa5   :  { %714 = vst.msk [vmem:[%s1088_s7 + $0x10] sm:$0xff] %vm51_vm0, %v431_v6  ;;  %v435_v23 = vsel %vm51_vm0, %v431_v6, -inf }
 0xaa6   :  { %436 = vmax.xlane.f32.xlu1 %v435_v23 }
 0xb19   :  { %v437_v8 = vpop.xlane.xlu1 %436 }
 0xb1a   :  { %vm438_vm3 = vcmp.eq.f32.partialorder %v431_v6, %v437_v8 }
 0xb1b   :  { %v439_v24 = vsel %vm438_vm3, %v837_v2, 32.0 }
 0xb1c   :  { %v440_v10 = vsel %vm51_vm0, %v439_v24, inf }
 0xb1d   :  { %441 = vmin.xlane.f32.xlu0 %v440_v10 }
 0xb90   :  { %v442_v28 = vpop.xlane.xlu0 %441 }
 0xb91   :  { %vm443_vm4 = vcmp.eq.f32.partialorder %v837_v2, %v442_v28 }
 0xb92   :  { %v715_v30 = vsel %vm443_vm4, 1.0, %v791_v12 }
 0xb93   :  { %v453_v31 = vmul.f32 %v715_v30, %v452_v27 }
 0xb95   :  { %v454_v32 = vadd.f32 %v453_v31, %v450_v29 }
 0xb97   :  { %719 = vmatmul.msk.f32.vlgmr.msra.gmra.mxu2 %vm51_vm0, %v454_v32 }
 0xc1a   :  { %v495_v34 = vpop.f32.mrf.mxu2 }
 0xc1b   :  { %v496_v35 = vadd.f32 %v495_v34, %v472_v33 }
 0xc1d   :  { %v498_v36 = vadd.f32 %v496_v35, %v911_v22 }
 0xc1f   :  { %760 = vtanh.f32 %v498_v36  ;;  %v720_v38 = vmul.f32 -1.442695, %v498_v36 }
 0xc21   :  { %762 = vpow2.f32 %v720_v38 }
 0xc25   :  { %v761_v37 = vpop.eup %760 }
 0xc26   :  { %521 = vrot.lane.b32.xlu2 %v761_v37, %s792_s24 }
 0xc27   :  { %v763_v39 = vpop.eup %762 }
 0xc28   :  { %v502_v5 = vadd.f32 1.0, %v763_v39 }
 0xc2a   :  { %764 = vrcp.f32 %v502_v5  ;;  %v514_v42 = vand.u32 2147483648, %v502_v5  ;;  %vm508_vm6 = vweird.f32 %v502_v5  ;;  %v512_v43 = vand.u32 2147483647, %v502_v5 }
 0xc2c   :  { %v515_v45 = vor.u32 1.1754944e-38, %v514_v42  ;;  %vm513_vm8 = vcmp.eq.f32.partialorder %v512_v43, 8.507059e+37 }
 0xc30   :  { %v765_v7 = vpop.eup %764 }
 0xc31   :  { %v504_v9 = vmul.f32 %v765_v7, %v502_v5  ;;  %vm509_vm5 = vweird.f32 %v765_v7 }
 0xc32   :  { %vm510_vm7 = vmor %vm508_vm6, %vm509_vm5 }
 0xc33   :  { %v505_v40 = vsub.f32 1.0, %v504_v9 }
 0xc35   :  { %v506_v11 = vmul.f32 %v765_v7, %v505_v40 }
 0xc37   :  { %v507_v41 = vadd.f32 %v765_v7, %v506_v11 }
 0xc39   :  { %v511_v44 = vsel %vm510_vm7, %v765_v7, %v507_v41 }
 0xc3a   :  { %v516_v47 = vsel %vm513_vm8, %v515_v45, %v511_v44 }
 0xc3b   :  { %v519_v49 = vmul.f32 %v516_v47, %v401_v17 }
 0xc80   :  { %v522_v46 = vpop.permute.xlu2 %521 }
 0xc81   :  { %v524_v48 = vmul.f32 %v522_v46, %v516_v47 }
 0xc83   :  { %526 = vrot.lane.b32.xlu0 %v524_v48, %s793_s2 }
 0xcf5   :  { %v527_v50 = vpop.permute.xlu0 %526 }
 0xcf6   :  { %v529_v51 = vadd.f32 %v527_v50, %v519_v49 }
 0xcf8   :  { %766 = vtanh.f32 %v529_v51 }
 0xcfe   :  { %v767_v52 = vpop.eup %766 }
 0xcff   :  { %532 = vrot.lane.b32.xlu2 %v767_v52, %s792_s24 }
 0xd59   :  { %v533_v54 = vpop.permute.xlu2 %532 }
 0xd5a   :  { %v535_v55 = vmul.f32 %v533_v54, %v516_v47 }
 0xd5c   :  { %537 = vrot.lane.b32.xlu2 %v535_v55, %s793_s2 }
 0xdb6   :  { %v538_v56 = vpop.permute.xlu2 %537 }
 0xdb7   :  { %721 = vmatmul.msk.f32.vlgmr.msra.gmra.mxu3 %vm51_vm0, %v538_v56  ;;  %726 = vmatmul.msk.f32.vlgmr.msrb.gmra.mxu0 %vm51_vm0, %v538_v56 }
 0xe34   :  { %v600_v17 = vpop.f32.mrf.mxu0 }
 0xe3a   :  { %v558_v57 = vpop.f32.mrf.mxu3 }
 0xe3b   :  { %v559_v58 = vadd.f32 %v974_v53, %v558_v57 }
 0xe3d   :  { %722 = vst.msk [vmem:[%s1088_s7 + $0x18] sm:$0xff] %vm51_vm0, %v559_v58  ;;  %v563_v59 = vsel %vm51_vm0, %v559_v58, -inf }
 0xe3e   :  { %564 = vmax.xlane.f32.xlu2 %v563_v59 }
 0xeb1   :  { %v565_v60 = vpop.xlane.xlu2 %564 }
 0xeb2   :  { %vm566_vm9 = vcmp.eq.f32.partialorder %v559_v58, %v565_v60 }
 0xeb3   :  { %v567_v61 = vsel %vm566_vm9, %v837_v2, 32.0 }
 0xeb4   :  { %v568_v62 = vsel %vm51_vm0, %v567_v61, inf }
 0xeb5   :  { %569 = vmin.xlane.f32.xlu0 %v568_v62 }
 0xf28   :  { %v570_v3 = vpop.xlane.xlu0 %569 }
 0xf29   :  { %vm571_vm10 = vcmp.eq.f32.partialorder %v837_v2, %v570_v3 }
 0xf2a   :  { %v723_v14 = vsel %vm571_vm10, 1.0, %v791_v12 }
 0xf2b   :  { %v581_v15 = vmul.f32 %v723_v14, %v580_v1 }
 0xf2d   :  { %v582_v16 = vadd.f32 %v581_v15, %v578_v13 }
 0xf2f   :  { %727 = vmatmul.msk.f32.vlgmr.msrb.gmra.mxu1 %vm51_vm0, %v582_v16 }
 0xfac   :  { %v623_v18 = vpop.f32.mrf.mxu1 }
 0xfad   :  { %v624_v19 = vadd.f32 %v623_v18, %v600_v17 }
 0xfaf   :  { %v626_v20 = vadd.f32 %v624_v19, %v911_v22 }
 0xfb1   :  { %768 = vtanh.f32 %v626_v20  ;;  %v728_v4 = vmul.f32 -1.442695, %v626_v20 }
 0xfb3   :  { %770 = vpow2.f32 %v728_v4 }
 0xfb7   :  { %v769_v21 = vpop.eup %768 }
 0xfb8   :  { %649 = vrot.lane.b32.xlu1 %v769_v21, %s792_s24 }
 0xfb9   :  { %v771_v6 = vpop.eup %770 }
 0xfba   :  { %v630_v23 = vadd.f32 1.0, %v771_v6 }
 0xfbc   :  { %772 = vrcp.f32 %v630_v23  ;;  %v642_v25 = vand.u32 2147483648, %v630_v23  ;;  %vm636_vm12 = vweird.f32 %v630_v23  ;;  %v640_v26 = vand.u32 2147483647, %v630_v23 }
 0xfbe   :  { %v643_v27 = vor.u32 1.1754944e-38, %v642_v25  ;;  %vm641_vm14 = vcmp.eq.f32.partialorder %v640_v26, 8.507059e+37 }
 0xfc2   :  { %v773_v2 = vpop.eup %772 }
 0xfc3   :  { %v632_v12 = vmul.f32 %v773_v2, %v630_v23  ;;  %vm637_vm11 = vweird.f32 %v773_v2 }
 0xfc4   :  { %vm638_vm13 = vmor %vm636_vm12, %vm637_vm11 }
 0xfc5   :  { %v633_v8 = vsub.f32 1.0, %v632_v12 }
 0xfc7   :  { %v634_v24 = vmul.f32 %v773_v2, %v633_v8 }
 0xfc9   :  { %v635_v10 = vadd.f32 %v773_v2, %v634_v24 }
 0xfcb   :  { %v639_v22 = vsel %vm638_vm13, %v773_v2, %v635_v10 }
 0xfcc   :  { %v644_v29 = vsel %vm641_vm14, %v643_v27, %v639_v22 }
 0xfcd   :  { %v647_v31 = vmul.f32 %v644_v29, %v529_v51 }
0x102a   :  { %v650_v28 = vpop.permute.xlu1 %649 }
0x102b   :  { %v652_v30 = vmul.f32 %v650_v28, %v644_v29 }
0x102d   :  { %654 = vrot.lane.b32.xlu1 %v652_v30, %s793_s2 }
0x109f   :  { %v655_v32 = vpop.permute.xlu1 %654 }
0x10a0   :  { %v657_v33 = vadd.f32 %v655_v32, %v647_v31 }
0x10a2   :  { %774 = vtanh.f32 %v657_v33 }
0x10a8   :  { %v775_v34 = vpop.eup %774 }
0x10a9   :  { %660 = vrot.lane.b32.xlu2 %v775_v34, %s792_s24 }
0x1103   :  { %v661_v35 = vpop.permute.xlu2 %660 }
0x1104   :  { %v663_v36 = vmul.f32 %v661_v35, %v644_v29 }
0x1106   :  { %665 = vrot.lane.b32.xlu0 %v663_v36, %s793_s2 }
0x1178   :  { %v666_v37 = vpop.permute.xlu0 %665 }
0x1179   :  { %729 = vmatmul.msk.f32.vlgmr.msrb.gmra.mxu2 %vm51_vm0, %v666_v37 }
0x11fc   :  { %v686_v38 = vpop.f32.mrf.mxu2 }
0x11fd   :  { %v687_v39 = vadd.f32 %v974_v53, %v686_v38 }
0x11ff   :  { %730 = vst.msk [vmem:[%s1088_s7 + $0x20] sm:$0xff] %vm51_vm0, %v687_v39 }

// kernel: seq2seq_forward.2
= control target key start
LH: loop header
LB: loop body
LE: loop exit
PB: predicated region body
PF: predicated region fallthrough
CT: control target
= control target key end

     0   :  { %v3694_v61 = vmov 0.0   ;;  %vm26_vm12 = vcmask 261120   ;;  %s3686_s2 = inlined_call_operand.vmem [shape: f32[128,512], index: 2, kind: input, shape index: {}]   ;;  %s3687_s3 = inlined_call_operand.vmem [shape: f32[128,32], index: 3, kind: input, shape index: {}]   ;;  %s3688_s4 = inlined_call_operand.vmem [shape: f32[1,32], index: 4, kind: input, shape index: {}]   ;;  %s3689_s0 = inlined_call_operand.vmem [shape: f32[8,8,512], index: 0, kind: input, shape index: {}]   ;;  %s3690_s1 = inlined_call_operand.vmem [shape: f32[8,8,1], index: 1, kind: input, shape index: {}]   ;;  %s3691_s5 = inlined_call_operand.vmem [shape: f32[8,32], index: 5, kind: output, shape index: {}]  }
   0x1   :  { %v1941_v0 = vld [vmem:[%s3686_s2 + $0x1e0] sm:$0xff]  ;;  %v1946_v1 = vld [vmem:[%s3686_s2 + $0x1e8] sm:$0xff]  ;;  %v1951_v2 = vld [vmem:[%s3686_s2 + $0x1f8] sm:$0xff] }
   0x2   :  { %3827 = vst [vmem:[#allocation4_spill] sm:$0xff] %v1946_v1  ;;  %116 = vmatpush.msra.mxu0 %v1941_v0  ;;  %136 = vmatpush.msra.mxu1 %v1946_v1  ;;  %v1958_v3 = vld [vmem:[%s3686_s2 + $0x1c0] sm:$0xff]  ;;  %v1963_v4 = vld [vmem:[%s3686_s2 + $0x1c8] sm:$0xff]  ;;  %v1968_v5 = vld [vmem:[%s3686_s2 + $0x1d8] sm:$0xff] }
   0x3   :  { %3828 = vst [vmem:[#allocation5_spill] sm:$0xff] %v1963_v4  ;;  %176 = vmatpush.msra.mxu3 %v1951_v2  ;;  %v1974_v6 = vld [vmem:[%s3686_s2 + $0x1a0] sm:$0xff]  ;;  %v1979_v7 = vld [vmem:[%s3686_s2 + $0x1a8] sm:$0xff]  ;;  %v1986_v8 = vld [vmem:[%s3686_s2 + $0x1b8] sm:$0xff] }
   0x4   :  { %3829 = vst [vmem:[#allocation6_spill] sm:$0xff] %v1979_v7  ;;  %117 = vmatpush.msra.mxu0 %v1958_v3  ;;  %137 = vmatpush.msra.mxu1 %v1963_v4  ;;  %v1992_v9 = vld [vmem:[%s3686_s2 + $0x180] sm:$0xff]  ;;  %v1997_v10 = vld [vmem:[%s3686_s2 + $0x188] sm:$0xff]  ;;  %v2004_v11 = vld [vmem:[%s3686_s2 + $0x198] sm:$0xff] }
   0x5   :  { %177 = vmatpush.msra.mxu3 %v1968_v5  ;;  %3830 = vst [vmem:[#allocation7_spill] sm:$0xff] %v1997_v10  ;;  %v2010_v12 = vld [vmem:[%s3686_s2 + $0x160] sm:$0xff]  ;;  %v2015_v13 = vld [vmem:[%s3686_s2 + $0x168] sm:$0xff]  ;;  %v2022_v14 = vld [vmem:[%s3686_s2 + $0x178] sm:$0xff] }
   0x6   :  { %118 = vmatpush.msra.mxu0 %v1974_v6  ;;  %138 = vmatpush.msra.mxu1 %v1979_v7  ;;  %3831 = vst [vmem:[#allocation8_spill] sm:$0xff] %v2015_v13  ;;  %v2028_v15 = vld [vmem:[%s3686_s2 + $0x140] sm:$0xff]  ;;  %v2033_v16 = vld [vmem:[%s3686_s2 + $0x148] sm:$0xff]  ;;  %v2038_v17 = vld [vmem:[%s3686_s2 + $0x1f0] sm:$0xff] }
   0x7   :  { %178 = vmatpush.msra.mxu3 %v1986_v8  ;;  %3832 = vst [vmem:[#allocation9_spill] sm:$0xff] %v2033_v16  ;;  %v2045_v18 = vld [vmem:[%s3686_s2 + $0x158] sm:$0xff]  ;;  %v2050_v19 = vld [vmem:[%s3686_s2 + $0x1d0] sm:$0xff]  ;;  %v2056_v20 = vld [vmem:[%s3686_s2 + $0x120] sm:$0xff]  ;;  %156 = vmatpush.msra.mxu2 %v2038_v17 }
   0x8   :  { %119 = vmatpush.msra.mxu0 %v1992_v9  ;;  %139 = vmatpush.msra.mxu1 %v1997_v10  ;;  %3833 = vst [vmem:[#allocation10_spill] sm:$0xff] %v2038_v17  ;;  %v2061_v21 = vld [vmem:[%s3686_s2 + $0x128] sm:$0xff]  ;;  %v2069_v22 = vld [vmem:[%s3686_s2 + $0x138] sm:$0xff]  ;;  %v2074_v23 = vld [vmem:[%s3686_s2 + $0x1b0] sm:$0xff] }
   0x9   :  { %179 = vmatpush.msra.mxu3 %v2004_v11  ;;  %3834 = vst [vmem:[#allocation11_spill] sm:$0xff] %v2050_v19  ;;  %v2080_v24 = vld [vmem:[%s3686_s2 + $0x100] sm:$0xff]  ;;  %v2085_v25 = vld [vmem:[%s3686_s2 + $0x108] sm:$0xff]  ;;  %157 = vmatpush.msra.mxu2 %v2050_v19  ;;  %v2093_v26 = vld [vmem:[%s3686_s2 + $0x118] sm:$0xff] }
   0xa   :  { %120 = vmatpush.msra.mxu0 %v2010_v12  ;;  %140 = vmatpush.msra.mxu1 %v2015_v13  ;;  %3835 = vst [vmem:[#allocation12_spill] sm:$0xff] %v2061_v21  ;;  %v2098_v27 = vld [vmem:[%s3686_s2 + $0x190] sm:$0xff]  ;;  %v2104_v28 = vld [vmem:[%s3686_s2 + $0xe0] sm:$0xff]  ;;  %v2109_v29 = vld [vmem:[%s3686_s2 + $0xe8] sm:$0xff] }
   0xb   :  { %180 = vmatpush.msra.mxu3 %v2022_v14  ;;  %3836 = vst [vmem:[#allocation13_spill] sm:$0xff] %v2085_v25  ;;  %158 = vmatpush.msra.mxu2 %v2074_v23  ;;  %v2117_v30 = vld [vmem:[%s3686_s2 + $0xf8] sm:$0xff]  ;;  %v2122_v31 = vld [vmem:[%s3686_s2 + $0x170] sm:$0xff]  ;;  %v2128_v32 = vld [vmem:[%s3686_s2 + $0xc0] sm:$0xff] }
   0xc   :  { %121 = vmatpush.msra.mxu0 %v2028_v15  ;;  %141 = vmatpush.msra.mxu1 %v2033_v16  ;;  %3837 = vst [vmem:[#allocation14_spill] sm:$0xff] %v2109_v29  ;;  %v2133_v33 = vld [vmem:[%s3686_s2 + $0xc8] sm:$0xff]  ;;  %v2141_v34 = vld [vmem:[%s3686_s2 + $0xd8] sm:$0xff]  ;;  %v2146_v35 = vld [vmem:[%s3686_s2 + $0x150] sm:$0xff] }
   0xd   :  { %181 = vmatpush.msra.mxu3 %v2045_v18  ;;  %3838 = vst [vmem:[#allocation15_spill] sm:$0xff] %v2128_v32  ;;  %159 = vmatpush.msra.mxu2 %v2098_v27  ;;  %v2152_v36 = vld [vmem:[%s3686_s2 + $0xa0] sm:$0xff]  ;;  %v2157_v37 = vld [vmem:[%s3686_s2 + $0xa8] sm:$0xff]  ;;  %v2165_v38 = vld [vmem:[%s3686_s2 + $0xb8] sm:$0xff] }
   0xe   :  { %122 = vmatpush.msra.mxu0 %v2056_v20  ;;  %142 = vmatpush.msra.mxu1 %v2061_v21  ;;  %3839 = vst [vmem:[#allocation16_spill] sm:$0xff] %v2133_v33  ;;  %v2170_v39 = vld [vmem:[%s3686_s2 + $0x130] sm:$0xff]  ;;  %v2176_v40 = vld [vmem:[%s3686_s2 + $0x80] sm:$0xff]  ;;  %v2181_v41 = vld [vmem:[%s3686_s2 + $0x88] sm:$0xff] }
   0xf   :  { %182 = vmatpush.msra.mxu3 %v2069_v22  ;;  %3840 = vst [vmem:[#allocation17_spill] sm:$0xff] %v2152_v36  ;;  %160 = vmatpush.msra.mxu2 %v2122_v31  ;;  %v2189_v42 = vld [vmem:[%s3686_s2 + $0x98] sm:$0xff]  ;;  %v2194_v43 = vld [vmem:[%s3686_s2 + $0x110] sm:$0xff]  ;;  %v2200_v44 = vld [vmem:[%s3686_s2 + $0x60] sm:$0xff] }
  0x10   :  { %123 = vmatpush.msra.mxu0 %v2080_v24  ;;  %143 = vmatpush.msra.mxu1 %v2085_v25  ;;  %3841 = vst [vmem:[#allocation18_spill] sm:$0xff] %v2157_v37  ;;  %v2205_v45 = vld [vmem:[%s3686_s2 + $0x68] sm:$0xff]  ;;  %v2213_v46 = vld [vmem:[%s3686_s2 + $0x78] sm:$0xff]  ;;  %v2218_v47 = vld [vmem:[%s3686_s2 + $0xf0] sm:$0xff] }
  0x11   :  { %183 = vmatpush.msra.mxu3 %v2093_v26  ;;  %3842 = vst [vmem:[#allocation19_spill] sm:$0xff] %v2176_v40  ;;  %161 = vmatpush.msra.mxu2 %v2146_v35  ;;  %v2224_v48 = vld [vmem:[%s3686_s2 + $0x40] sm:$0xff]  ;;  %v2229_v49 = vld [vmem:[%s3686_s2 + $0x48] sm:$0xff]  ;;  %v2237_v50 = vld [vmem:[%s3686_s2 + $0x58] sm:$0xff] }
  0x12   :  { %124 = vmatpush.msra.mxu0 %v2104_v28  ;;  %144 = vmatpush.msra.mxu1 %v2109_v29  ;;  %3843 = vst [vmem:[#allocation20_spill] sm:$0xff] %v2181_v41  ;;  %v2242_v51 = vld [vmem:[%s3686_s2 + $0xd0] sm:$0xff]  ;;  %v2248_v52 = vld [vmem:[%s3686_s2 + $0x20] sm:$0xff]  ;;  %v2253_v53 = vld [vmem:[%s3686_s2 + $0x28] sm:$0xff] }
  0x13   :  { %184 = vmatpush.msra.mxu3 %v2117_v30  ;;  %3844 = vst [vmem:[#allocation21_spill] sm:$0xff] %v2189_v42  ;;  %162 = vmatpush.msra.mxu2 %v2170_v39  ;;  %v2261_v54 = vld [vmem:[%s3686_s2 + $0x38] sm:$0xff]  ;;  %v2266_v55 = vld [vmem:[%s3686_s2 + $0xb0] sm:$0xff]  ;;  %v2272_v56 = vld [vmem:[%s3686_s2] sm:$0xff] }
  0x14   :  { %125 = vmatpush.msra.mxu0 %v2128_v32  ;;  %145 = vmatpush.msra.mxu1 %v2133_v33  ;;  %3845 = vst [vmem:[#allocation22_spill] sm:$0xff] %v2200_v44  ;;  %v2277_v57 = vld [vmem:[%s3686_s2 + $0x8] sm:$0xff]  ;;  %v2285_v58 = vld [vmem:[%s3686_s2 + $0x18] sm:$0xff]  ;;  %v2294_v59 = vld [vmem:[%s3686_s2 + $0x90] sm:$0xff] }
  0x15   :  { %185 = vmatpush.msra.mxu3 %v2141_v34  ;;  %3846 = vst [vmem:[#allocation23_spill] sm:$0xff] %v2205_v45  ;;  %163 = vmatpush.msra.mxu2 %v2194_v43  ;;  %v2299_v60 = vld [vmem:[%s3687_s3 + $0x78] sm:$0xff]  ;;  %v2308_v62 = vld [vmem:[%s3686_s2 + $0x70] sm:$0xff] }
  0x16   :  { %126 = vmatpush.msra.mxu0 %v2152_v36  ;;  %146 = vmatpush.msra.mxu1 %v2157_v37  ;;  %3847 = vst [vmem:[#allocation24_spill] sm:$0xff] %v2213_v46  ;;  %v2313_v63 = vld [vmem:[%s3687_s3 + $0x70] sm:$0xff] }
  0x17   :  { %186 = vmatpush.msra.mxu3 %v2165_v38  ;;  %3848 = vst [vmem:[#allocation25_spill] sm:$0xff] %v2224_v48  ;;  %164 = vmatpush.msra.mxu2 %v2218_v47 }
  0x18   :  { %127 = vmatpush.msra.mxu0 %v2176_v40  ;;  %147 = vmatpush.msra.mxu1 %v2181_v41  ;;  %3849 = vst [vmem:[#allocation26_spill] sm:$0xff] %v2229_v49 }
  0x19   :  { %187 = vmatpush.msra.mxu3 %v2189_v42  ;;  %3850 = vst [vmem:[#allocation27_spill] sm:$0xff] %v2237_v50  ;;  %165 = vmatpush.msra.mxu2 %v2242_v51 }
  0x1a   :  { %128 = vmatpush.msra.mxu0 %v2200_v44  ;;  %148 = vmatpush.msra.mxu1 %v2205_v45  ;;  %3851 = vst [vmem:[#allocation28_spill] sm:$0xff] %v2248_v52 }
  0x1b   :  { %188 = vmatpush.msra.mxu3 %v2213_v46  ;;  %3852 = vst [vmem:[#allocation29_spill] sm:$0xff] %v2253_v53  ;;  %166 = vmatpush.msra.mxu2 %v2266_v55  ;;  %v2353_v46 = vld [vmem:[%s3687_s3 + $0x58] sm:$0xff] }
  0x1c   :  { %129 = vmatpush.msra.mxu0 %v2224_v48  ;;  %149 = vmatpush.msra.mxu1 %v2229_v49  ;;  %3853 = vst [vmem:[#allocation30_spill] sm:$0xff] %v2261_v54 }
  0x1d   :  { %3854 = vst [vmem:[#allocation31_spill] sm:$0xff] %v2266_v55  ;;  %189 = vmatpush.msra.mxu3 %v2237_v50  ;;  %167 = vmatpush.msra.mxu2 %v2294_v59  ;;  %v2339_v50 = vld [vmem:[%s3687_s3 + $0x60] sm:$0xff] }
  0x1e   :  { %3855 = vst [vmem:[#allocation32_spill] sm:$0xff] %v2272_v56  ;;  %130 = vmatpush.msra.mxu0 %v2248_v52  ;;  %150 = vmatpush.msra.mxu1 %v2253_v53 }
  0x1f   :  { %3856 = vst [vmem:[#allocation33_spill] sm:$0xff] %v2277_v57  ;;  %190 = vmatpush.msra.mxu3 %v2261_v54  ;;  %168 = vmatpush.msra.mxu2 %v2308_v62  ;;  %v2334_v54 = vld [vmem:[%s3686_s2 + $0x30] sm:$0xff] }
  0x20   :  { %3857 = vst [vmem:[#allocation34_spill] sm:$0xff] %v2285_v58  ;;  %131 = vmatpush.msra.mxu0 %v2272_v56  ;;  %151 = vmatpush.msra.mxu1 %v2277_v57 }
  0x21   :  { %3858 = vst [vmem:[#allocation35_spill] sm:$0xff] %v2294_v59  ;;  %191 = vmatpush.msra.mxu3 %v2285_v58  ;;  %132 = vmatmul.f32.vlgmr.msra.gmra.mxu0 %v3694_v61  ;;  %v2320_v58 = vld [vmem:[%s3686_s2 + $0x50] sm:$0xff] }
  0x22   :  { %152 = vmatmul.f32.vlgmr.msra.gmra.mxu1 %v3694_v61  ;;  %192 = vmatmul.f32.vlgmr.msra.gmra.mxu3 %v3694_v61  ;;  %3859 = vst [vmem:[#allocation36_spill] sm:$0xff] %v2308_v62  ;;  %v2325_v61 = vld [vmem:[%s3687_s3 + $0x68] sm:$0xff] }
  0x23   :  { %266 = vmatpush.msrb.mxu0 %v2299_v60  ;;  %3860 = vst [vmem:[#allocation37_spill] sm:$0xff] %v2320_v58  ;;  %300 = vmatpush.msrb.mxu1 %v1941_v0 }
  0x24   :  { %340 = vmatpush.msrb.mxu3 %v2038_v17  ;;  %3861 = vst [vmem:[#allocation38_spill] sm:$0xff] %v2334_v54  ;;  %169 = vmatpush.msra.mxu2 %v2320_v58  ;;  %v2348_v17 = vld [vmem:[%s3686_s2 + $0x10] sm:$0xff] }
  0x25   :  { %267 = vmatpush.msrb.mxu0 %v2313_v63  ;;  %301 = vmatpush.msrb.mxu1 %v1958_v3  ;;  %3862 = vst [vmem:[#allocation39_spill] sm:$0xff] %v2348_v17 }
  0x26   :  { %341 = vmatpush.msrb.mxu3 %v2050_v19  ;;  %170 = vmatpush.msra.mxu2 %v2334_v54  ;;  %v3863_v19 = vmov 0.0  }
  0x27   :  { %268 = vmatpush.msrb.mxu0 %v2325_v61  ;;  %302 = vmatpush.msrb.mxu1 %v1974_v6 }
  0x28   :  { %342 = vmatpush.msrb.mxu3 %v2074_v23  ;;  %171 = vmatpush.msra.mxu2 %v2348_v17 }
  0x29   :  { %269 = vmatpush.msrb.mxu0 %v2339_v50  ;;  %303 = vmatpush.msrb.mxu1 %v1992_v9 }
  0x2a   :  { %343 = vmatpush.msrb.mxu3 %v2098_v27  ;;  %172 = vmatmul.f32.vlgmr.msra.gmra.mxu2 %v3863_v19  ;;  %v2444_v19 = vld [vmem:[%s3687_s3 + $0x50] sm:$0xff] }
  0x2b   :  { %270 = vmatpush.msrb.mxu0 %v2353_v46  ;;  %304 = vmatpush.msrb.mxu1 %v2010_v12 }
  0x2c   :  { %320 = vmatpush.msrb.mxu2 %v1946_v1  ;;  %344 = vmatpush.msrb.mxu3 %v2122_v31 }
  0x2d   :  { %305 = vmatpush.msrb.mxu1 %v2028_v15  ;;  %271 = vmatpush.msrb.mxu0 %v2444_v19 }
  0x2e   :  { %321 = vmatpush.msrb.mxu2 %v1963_v4  ;;  %345 = vmatpush.msrb.mxu3 %v2146_v35 }
  0x2f   :  { %306 = vmatpush.msrb.mxu1 %v2056_v20 }
  0x30   :  { %322 = vmatpush.msrb.mxu2 %v1979_v7  ;;  %346 = vmatpush.msrb.mxu3 %v2170_v39 }
  0x31   :  { %307 = vmatpush.msrb.mxu1 %v2080_v24 }
  0x32   :  { %323 = vmatpush.msrb.mxu2 %v1997_v10  ;;  %347 = vmatpush.msrb.mxu3 %v2194_v43 }
  0x33   :  { %308 = vmatpush.msrb.mxu1 %v2104_v28 }
  0x34   :  { %324 = vmatpush.msrb.mxu2 %v2015_v13  ;;  %348 = vmatpush.msrb.mxu3 %v2218_v47 }
  0x35   :  { %309 = vmatpush.msrb.mxu1 %v2128_v32 }
  0x36   :  { %325 = vmatpush.msrb.mxu2 %v2033_v16  ;;  %349 = vmatpush.msrb.mxu3 %v2242_v51 }
  0x37   :  { %310 = vmatpush.msrb.mxu1 %v2152_v36 }
  0x38   :  { %326 = vmatpush.msrb.mxu2 %v2061_v21  ;;  %350 = vmatpush.msrb.mxu3 %v2266_v55 }
  0x39   :  { %311 = vmatpush.msrb.mxu1 %v2176_v40 }
  0x3a   :  { %327 = vmatpush.msrb.mxu2 %v2085_v25  ;;  %351 = vmatpush.msrb.mxu3 %v2294_v59 }
  0x3b   :  { %312 = vmatpush.msrb.mxu1 %v2200_v44 }
  0x3c   :  { %328 = vmatpush.msrb.mxu2 %v2109_v29  ;;  %352 = vmatpush.msrb.mxu3 %v2308_v62 }
  0x3d   :  { %313 = vmatpush.msrb.mxu1 %v2224_v48 }
  0x3e   :  { %329 = vmatpush.msrb.mxu2 %v2133_v33  ;;  %353 = vmatpush.msrb.mxu3 %v2320_v58 }
  0x3f   :  { %314 = vmatpush.msrb.mxu1 %v2248_v52 }
  0x40   :  { %330 = vmatpush.msrb.mxu2 %v2157_v37  ;;  %354 = vmatpush.msrb.mxu3 %v2334_v54  ;;  %v3872_v54 = vld [vmem:[#allocation30_spill] sm:$0xff] }
  0x41   :  { %315 = vmatpush.msrb.mxu1 %v2272_v56 }
  0x42   :  { %331 = vmatpush.msrb.mxu2 %v2181_v41  ;;  %355 = vmatpush.msrb.mxu3 %v2348_v17  ;;  %v115_v17 = vld [vmem:[%s3689_s0 + $0x18] sm:$0xff] }
  0x43   :  { %447 = vmatpush.msra.mxu1 %v2299_v60 }
  0x44   :  { %502 = vmatpush.msra.mxu3 %v1946_v1  ;;  %332 = vmatpush.msrb.mxu2 %v2205_v45 }
  0x45   :  { %448 = vmatpush.msra.mxu1 %v2313_v63 }
  0x46   :  { %503 = vmatpush.msra.mxu3 %v1963_v4  ;;  %333 = vmatpush.msrb.mxu2 %v2229_v49 }
  0x47   :  { %449 = vmatpush.msra.mxu1 %v2325_v61 }
  0x48   :  { %504 = vmatpush.msra.mxu3 %v1979_v7  ;;  %334 = vmatpush.msrb.mxu2 %v2253_v53 }
  0x49   :  { %450 = vmatpush.msra.mxu1 %v2339_v50 }
  0x4a   :  { %505 = vmatpush.msra.mxu3 %v1997_v10  ;;  %335 = vmatpush.msrb.mxu2 %v2277_v57 }
  0x4b   :  { %451 = vmatpush.msra.mxu1 %v2353_v46 }
  0x4c   :  { %482 = vmatpush.msra.mxu2 %v1941_v0  ;;  %506 = vmatpush.msra.mxu3 %v2015_v13  ;;  %v113_v13 = vld [vmem:[%s3689_s0 + $0x8] sm:$0xff] }
  0x4d   :  { %452 = vmatpush.msra.mxu1 %v2444_v19 }
  0x4e   :  { %483 = vmatpush.msra.mxu2 %v1958_v3  ;;  %507 = vmatpush.msra.mxu3 %v2033_v16  ;;  %v112_v16 = vld [vmem:[%s3689_s0] sm:$0xff] }
  0x50   :  { %484 = vmatpush.msra.mxu2 %v1974_v6  ;;  %508 = vmatpush.msra.mxu3 %v2061_v21  ;;  %v2514_v21 = vld [vmem:[%s3687_s3] sm:$0xff] }
  0x51   :  { %3869 = vst [vmem:[#allocation45_spill] sm:$0xff] %v2514_v21 }
  0x52   :  { %485 = vmatpush.msra.mxu2 %v1992_v9  ;;  %509 = vmatpush.msra.mxu3 %v2085_v25  ;;  %v2507_v25 = vld [vmem:[%s3687_s3 + $0x8] sm:$0xff] }
  0x53   :  { %3868 = vst [vmem:[#allocation44_spill] sm:$0xff] %v2507_v25 }
  0x54   :  { %486 = vmatpush.msra.mxu2 %v2010_v12  ;;  %510 = vmatpush.msra.mxu3 %v2109_v29  ;;  %v2500_v29 = vld [vmem:[%s3687_s3 + $0x10] sm:$0xff] }
  0x55   :  { %3867 = vst [vmem:[#allocation43_spill] sm:$0xff] %v2500_v29 }
  0x56   :  { %487 = vmatpush.msra.mxu2 %v2028_v15  ;;  %511 = vmatpush.msra.mxu3 %v2133_v33  ;;  %v2493_v33 = vld [vmem:[%s3687_s3 + $0x18] sm:$0xff] }
  0x57   :  { %3866 = vst [vmem:[#allocation42_spill] sm:$0xff] %v2493_v33 }
  0x58   :  { %488 = vmatpush.msra.mxu2 %v2056_v20  ;;  %512 = vmatpush.msra.mxu3 %v2157_v37  ;;  %v2486_v37 = vld [vmem:[%s3687_s3 + $0x20] sm:$0xff] }
  0x59   :  { %3865 = vst [vmem:[#allocation41_spill] sm:$0xff] %v2486_v37 }
  0x5a   :  { %489 = vmatpush.msra.mxu2 %v2080_v24  ;;  %513 = vmatpush.msra.mxu3 %v2181_v41  ;;  %v2479_v41 = vld [vmem:[%s3687_s3 + $0x28] sm:$0xff] }
  0x5b   :  { %3864 = vst [vmem:[#allocation40_spill] sm:$0xff] %v2479_v41 }
  0x5c   :  { %490 = vmatpush.msra.mxu2 %v2104_v28  ;;  %514 = vmatpush.msra.mxu3 %v2205_v45  ;;  %v2472_v45 = vld [vmem:[%s3687_s3 + $0x30] sm:$0xff] }
  0x5e   :  { %491 = vmatpush.msra.mxu2 %v2128_v32  ;;  %515 = vmatpush.msra.mxu3 %v2229_v49  ;;  %v2465_v49 = vld [vmem:[%s3687_s3 + $0x38] sm:$0xff] }
  0x60   :  { %492 = vmatpush.msra.mxu2 %v2152_v36  ;;  %516 = vmatpush.msra.mxu3 %v2253_v53  ;;  %v2458_v53 = vld [vmem:[%s3687_s3 + $0x40] sm:$0xff] }
  0x62   :  { %493 = vmatpush.msra.mxu2 %v2176_v40  ;;  %517 = vmatpush.msra.mxu3 %v2277_v57  ;;  %v2451_v57 = vld [vmem:[%s3687_s3 + $0x48] sm:$0xff]  ;;  %v1907_v40 = vmov 0  }
  0x63   :  { %272 = vmatpush.msrb.mxu0 %v2451_v57  ;;  %453 = vmatpush.msra.mxu1 %v2451_v57 }
  0x64   :  { %494 = vmatpush.msra.mxu2 %v2200_v44  ;;  %v287_v44 = vld [vmem:[%s3690_s1] sm:$0xff]  ;;  %1638 = vset.pattern.permute.xlu0 %v1907_v40 }
  0x65   :  { %273 = vmatpush.msrb.mxu0 %v2458_v53  ;;  %454 = vmatpush.msra.mxu1 %v2458_v53 }
  0x66   :  { %495 = vmatpush.msra.mxu2 %v2224_v48  ;;  %v3873_v48 = vld [vmem:[#allocation34_spill] sm:$0xff]  ;;  %1639 = vset.pattern.permute.xlu1 %v1907_v40 }
  0x67   :  { %274 = vmatpush.msrb.mxu0 %v2465_v49  ;;  %455 = vmatpush.msra.mxu1 %v2465_v49 }
  0x68   :  { %496 = vmatpush.msra.mxu2 %v2248_v52  ;;  %290 = vperm.xlu0 %1638, %v287_v44  }
  0x69   :  { %275 = vmatpush.msrb.mxu0 %v2472_v45  ;;  %456 = vmatpush.msra.mxu1 %v2472_v45 }
  0x6a   :  { %497 = vmatpush.msra.mxu2 %v2272_v56  ;;  %1640 = vset.pattern.permute.xlu2 %v1907_v40 }
  0x6b   :  { %276 = vmatpush.msrb.mxu0 %v2479_v41  ;;  %457 = vmatpush.msra.mxu1 %v2479_v41 }
  0x6d   :  { %277 = vmatpush.msrb.mxu0 %v2486_v37  ;;  %458 = vmatpush.msra.mxu1 %v2486_v37 }
  0x6f   :  { %278 = vmatpush.msrb.mxu0 %v2493_v33  ;;  %459 = vmatpush.msra.mxu1 %v2493_v33 }
  0x71   :  { %279 = vmatpush.msrb.mxu0 %v2500_v29  ;;  %460 = vmatpush.msra.mxu1 %v2500_v29 }
  0x73   :  { %280 = vmatpush.msrb.mxu0 %v2507_v25  ;;  %461 = vmatpush.msra.mxu1 %v2507_v25 }
  0x75   :  { %281 = vmatpush.msrb.mxu0 %v2514_v21  ;;  %462 = vmatpush.msra.mxu1 %v2514_v21 }
  0x77   :  { %360 = vmatpush.msra.mxu0 %v1951_v2 }
  0x79   :  { %361 = vmatpush.msra.mxu0 %v1968_v5 }
  0x7b   :  { %362 = vmatpush.msra.mxu0 %v1986_v8 }
  0x7d   :  { %363 = vmatpush.msra.mxu0 %v2004_v11 }
  0x7f   :  { %364 = vmatpush.msra.mxu0 %v2022_v14 }
  0x81   :  { %365 = vmatpush.msra.mxu0 %v2045_v18 }
  0x83   :  { %366 = vmatpush.msra.mxu0 %v2069_v22 }
  0x85   :  { %367 = vmatpush.msra.mxu0 %v2093_v26 }
  0x87   :  { %368 = vmatpush.msra.mxu0 %v2117_v30 }
  0x89   :  { %369 = vmatpush.msra.mxu0 %v2141_v34 }
  0x8b   :  { %370 = vmatpush.msra.mxu0 %v2165_v38 }
  0x8d   :  { %371 = vmatpush.msra.mxu0 %v2189_v42 }
  0x9e   :  { %v133_v10 = vpop.f32.mrf.mxu0 }
  0x9f   :  { %v196_v7 = vadd.f32 %v133_v10, %v112_v16  ;;  %v153_v4 = vpop.f32.mrf.mxu1  ;;  %v3870_v16 = vld [vmem:[#allocation24_spill] sm:$0xff] }
  0xa0   :  { %v197_v56 = vadd.f32 %v153_v4, %v113_v13  ;;  %372 = vmatpush.msra.mxu0 %v3870_v16 }
  0xa1   :  { %v1577_v1 = vmul.f32 -1.442695, %v196_v7 }
  0xa2   :  { %v1578_v21 = vmul.f32 -1.442695, %v197_v56 }
  0xa3   :  { %1642 = vpow2.f32 %v1577_v1 }
  0xa4   :  { %1644 = vpow2.f32 %v1578_v21  ;;  %v3871_v21 = vld [vmem:[#allocation27_spill] sm:$0xff] }
  0xa5   :  { %v193_v52 = vpop.f32.mrf.mxu3  ;;  %373 = vmatpush.msra.mxu0 %v3871_v21 }
  0xa6   :  { %v199_v25 = vadd.f32 %v193_v52, %v115_v17  ;;  %v114_v17 = vld [vmem:[%s3689_s0 + $0x10] sm:$0xff] }
  0xa7   :  { %374 = vmatpush.msra.mxu0 %v3872_v54 }
  0xa8   :  { %v1579_v10 = vmul.f32 -1.442695, %v199_v25 }
  0xa9   :  { %v1643_v4 = vpop.eup %1642  ;;  %375 = vmatpush.msra.mxu0 %v3873_v48 }
  0xaa   :  { %v1645_v7 = vpop.eup %1644  ;;  %v203_v13 = vadd.f32 1.0, %v1643_v4  ;;  %1646 = vpow2.f32 %v1579_v10 }
  0xab   :  { %v222_v1 = vadd.f32 1.0, %v1645_v7 }
  0xac   :  { %1648 = vrcp.f32 %v203_v13  ;;  %v215_v62 = vand.u32 2147483648, %v203_v13  ;;  %vm209_vm2 = vweird.f32 %v203_v13 }
  0xad   :  { %1650 = vrcp.f32 %v222_v1  ;;  %v173_v25 = vpop.f32.mrf.mxu2  ;;  %v232_v54 = vand.u32 2147483647, %v222_v1  ;;  %vm228_vm3 = vweird.f32 %v222_v1 }
  0xae   :  { %v198_v56 = vadd.f32 %v173_v25, %v114_v17  ;;  %v234_v17 = vand.u32 2147483648, %v222_v1 }
  0xaf   :  { %vm233_vm7 = vcmp.eq.f32.partialorder %v232_v54, 8.507059e+37 }
  0xb0   :  { %v1647_v52 = vpop.eup %1646  ;;  %v235_v36 = vor.u32 1.1754944e-38, %v234_v17  ;;  %v3900_v17 = vld [vmem:[#allocation32_spill] sm:$0xff] }
  0xb1   :  { %v242_v4 = vadd.f32 1.0, %v1647_v52  ;;  %v213_v52 = vand.u32 2147483647, %v203_v13 }
  0xb2   :  { %v1649_v10 = vpop.eup %1648 }
  0xb3   :  { %v1651_v7 = vpop.eup %1650  ;;  %v205_v29 = vmul.f32 %v1649_v10, %v203_v13  ;;  %1652 = vrcp.f32 %v242_v4  ;;  %vm210_vm0 = vweird.f32 %v1649_v10  ;;  %vm214_vm5 = vcmp.eq.f32.partialorder %v213_v52, 8.507059e+37  ;;  %v3901_v52 = vld [vmem:[#allocation5_spill] sm:$0xff] }
  0xb4   :  { %v224_v58 = vmul.f32 %v1651_v7, %v222_v1  ;;  %1654 = vtanh.f32 %v198_v56  ;;  %vm229_vm1 = vweird.f32 %v1651_v7  ;;  %vm211_vm4 = vmor %vm209_vm2, %vm210_vm0  ;;  %v254_v1 = vand.u32 2147483648, %v242_v4 }
  0xb5   :  { %v206_v33 = vsub.f32 1.0, %v205_v29  ;;  %vm230_vm6 = vmor %vm228_vm3, %vm229_vm1  ;;  %vm248_vm9 = vweird.f32 %v242_v4 }
  0xb6   :  { %v225_v21 = vsub.f32 1.0, %v224_v58  ;;  %v216_v58 = vor.u32 1.1754944e-38, %v215_v62 }
  0xb7   :  { %v207_v25 = vmul.f32 %v1649_v10, %v206_v33 }
  0xb8   :  { %v226_v48 = vmul.f32 %v1651_v7, %v225_v21 }
  0xb9   :  { %v1653_v56 = vpop.eup %1652  ;;  %v208_v16 = vadd.f32 %v1649_v10, %v207_v25 }
  0xba   :  { %v1655_v37 = vpop.eup %1654  ;;  %v244_v29 = vmul.f32 %v1653_v56, %v242_v4  ;;  %v227_v59 = vadd.f32 %v1651_v7, %v226_v48  ;;  %vm249_vm8 = vweird.f32 %v1653_v56  ;;  %v252_v48 = vand.u32 2147483647, %v242_v4  ;;  %v3897_v4 = vld [vmem:[#allocation39_spill] sm:$0xff] }
  0xbb   :  { %v212_v42 = vsel %vm211_vm4, %v1649_v10, %v208_v16  ;;  %vm250_vm10 = vmor %vm248_vm9, %vm249_vm8  ;;  %v255_v16 = vor.u32 1.1754944e-38, %v254_v1  ;;  %v3898_v10 = vld [vmem:[#allocation45_spill] sm:$0xff]  ;;  %v3910_v1 = vld [vmem:[#allocation18_spill] sm:$0xff] }
  0xbc   :  { %v245_v33 = vsub.f32 1.0, %v244_v29  ;;  %v217_v41 = vsel %vm214_vm5, %v216_v58, %v212_v42  ;;  %v231_v44 = vsel %vm230_vm6, %v1651_v7, %v227_v59  ;;  %vm253_vm11 = vcmp.eq.f32.partialorder %v252_v48, 8.507059e+37  ;;  %v3899_v7 = vld [vmem:[#allocation4_spill] sm:$0xff]  ;;  %v3903_v29 = vld [vmem:[#allocation7_spill] sm:$0xff] }
  0xbd   :  { %v236_v40 = vsel %vm233_vm7, %v235_v36, %v231_v44  ;;  %v259_v21 = vmul.f32 %v1655_v37, %v217_v41  ;;  %v3875_v36 = vld [vmem:[#allocation11_spill] sm:$0xff]  ;;  %v3894_v37 = vld [vmem:[#allocation44_spill] sm:$0xff]  ;;  %v3895_v41 = vld [vmem:[#allocation34_spill] sm:$0xff] }
  0xbe   :  { %v246_v55 = vmul.f32 %v1653_v56, %v245_v33  ;;  %v258_v32 = vmul.f32 0.0, %v236_v40  ;;  %v3904_v58 = vld [vmem:[#allocation8_spill] sm:$0xff]  ;;  %v3905_v33 = vld [vmem:[#allocation9_spill] sm:$0xff] }
  0xbf   :  { %v3906_v44 = vld [vmem:[#allocation12_spill] sm:$0xff]  ;;  %v3907_v40 = vld [vmem:[#allocation13_spill] sm:$0xff] }
  0xc0   :  { %v2549_v25 = vadd.f32 %v259_v21, %v258_v32  ;;  %v247_v13 = vadd.f32 %v1653_v56, %v246_v55  ;;  %v3874_v32 = vld [vmem:[#allocation10_spill] sm:$0xff]  ;;  %v3896_v55 = vld [vmem:[#allocation28_spill] sm:$0xff] }
  0xc1   :  { %v3908_v21 = vld [vmem:[#allocation14_spill] sm:$0xff]  ;;  %v3911_v48 = vld [vmem:[#allocation20_spill] sm:$0xff] }
  0xc2   :  { %1656 = vtanh.f32 %v2549_v25  ;;  %v251_v62 = vsel %vm250_vm10, %v1653_v56, %v247_v13  ;;  %v3902_v56 = vld [vmem:[#allocation6_spill] sm:$0xff]  ;;  %v3909_v13 = vld [vmem:[#allocation16_spill] sm:$0xff] }
  0xc3   :  { %v256_v59 = vsel %vm253_vm11, %v255_v16, %v251_v62  ;;  %v3912_v62 = vld [vmem:[#allocation23_spill] sm:$0xff]  ;;  %v3913_v16 = vld [vmem:[#allocation26_spill] sm:$0xff] }
  0xc8   :  { %v1657_v42 = vpop.eup %1656 }
  0xc9   :  { %v262_v54 = vmul.f32 %v1657_v42, %v256_v59  ;;  %v3914_v42 = vld [vmem:[#allocation29_spill] sm:$0xff] }
  0xca   :  { %v3915_v59 = vld [vmem:[#allocation33_spill] sm:$0xff] }
  0xcb   :  { %282 = vmatmul.f32.vlgmr.msrb.gmra.mxu0 %v262_v54  ;;  %316 = vmatmul.f32.vlgmr.msrb.gmra.mxu1 %v262_v54 }
  0xcc   :  { %336 = vmatmul.f32.vlgmr.msrb.gmra.mxu2 %v262_v54  ;;  %356 = vmatmul.f32.vlgmr.msrb.gmra.mxu3 %v262_v54 }
  0xcd   :  { %522 = vmatpush.msrb.mxu0 %v3874_v32  ;;  %542 = vmatpush.msrb.mxu1 %v1951_v2  ;;  %v3877_v2 = vld [vmem:[#allocation31_spill] sm:$0xff] }
  0xce   :  { %629 = vmatpush.msrb.mxu2 %v2299_v60  ;;  %664 = vmatpush.msrb.mxu3 %v1941_v0  ;;  %v3876_v0 = vld [vmem:[#allocation15_spill] sm:$0xff] }
  0xcf   :  { %523 = vmatpush.msrb.mxu0 %v3875_v36  ;;  %543 = vmatpush.msrb.mxu1 %v1968_v5  ;;  %v3879_v5 = vld [vmem:[#allocation21_spill] sm:$0xff] }
  0xd0   :  { %630 = vmatpush.msrb.mxu2 %v2313_v63  ;;  %665 = vmatpush.msrb.mxu3 %v1958_v3  ;;  %v3878_v3 = vld [vmem:[#allocation40_spill] sm:$0xff] }
  0xd1   :  { %524 = vmatpush.msrb.mxu0 %v2074_v23  ;;  %544 = vmatpush.msrb.mxu1 %v1986_v8  ;;  %v3881_v8 = vld [vmem:[#allocation35_spill] sm:$0xff] }
  0xd2   :  { %631 = vmatpush.msrb.mxu2 %v2325_v61  ;;  %666 = vmatpush.msrb.mxu3 %v1974_v6  ;;  %v3880_v6 = vld [vmem:[#allocation17_spill] sm:$0xff] }
  0xd3   :  { %376 = vmatmul.f32.vlgmr.msra.gmra.mxu0 %v262_v54  ;;  %545 = vmatpush.msrb.mxu1 %v2004_v11  ;;  %v3883_v11 = vld [vmem:[#allocation24_spill] sm:$0xff]  ;;  %v3916_v54 = vmov 0.0  }
  0xd4   :  { %525 = vmatpush.msrb.mxu0 %v2098_v27  ;;  %632 = vmatpush.msrb.mxu2 %v2339_v50  ;;  %27 = vst.msk [vmem:[%s3691_s5] sm:$0xff] %vm26_vm12, %v3916_v54 }
  0xd5   :  { %546 = vmatpush.msrb.mxu1 %v2022_v14  ;;  %667 = vmatpush.msrb.mxu3 %v1992_v9  ;;  %v3882_v9 = vld [vmem:[#allocation41_spill] sm:$0xff]  ;;  %v3885_v14 = vld [vmem:[#allocation36_spill] sm:$0xff] }
  0xd6   :  { %526 = vmatpush.msrb.mxu0 %v2122_v31  ;;  %633 = vmatpush.msrb.mxu2 %v2353_v46 }
  0xd7   :  { %547 = vmatpush.msrb.mxu1 %v2045_v18  ;;  %668 = vmatpush.msrb.mxu3 %v2010_v12  ;;  %v3884_v12 = vld [vmem:[#allocation19_spill] sm:$0xff] }
  0xd8   :  { %527 = vmatpush.msrb.mxu0 %v2146_v35  ;;  %634 = vmatpush.msrb.mxu2 %v2444_v19  ;;  %v3887_v18 = vld [vmem:[#allocation27_spill] sm:$0xff] }
  0xd9   :  { %548 = vmatpush.msrb.mxu1 %v2069_v22  ;;  %669 = vmatpush.msrb.mxu3 %v2028_v15  ;;  %v3886_v15 = vld [vmem:[#allocation42_spill] sm:$0xff]  ;;  %v3889_v22 = vld [vmem:[#allocation37_spill] sm:$0xff] }
  0xda   :  { %528 = vmatpush.msrb.mxu0 %v2170_v39  ;;  %635 = vmatpush.msrb.mxu2 %v2451_v57 }
  0xdb   :  { %549 = vmatpush.msrb.mxu1 %v2093_v26  ;;  %670 = vmatpush.msrb.mxu3 %v2056_v20  ;;  %v3888_v20 = vld [vmem:[#allocation22_spill] sm:$0xff] }
  0xdc   :  { %529 = vmatpush.msrb.mxu0 %v2194_v43  ;;  %636 = vmatpush.msrb.mxu2 %v2458_v53  ;;  %v3891_v26 = vld [vmem:[#allocation30_spill] sm:$0xff] }
  0xdd   :  { %550 = vmatpush.msrb.mxu1 %v2117_v30  ;;  %671 = vmatpush.msrb.mxu3 %v2080_v24  ;;  %v3890_v24 = vld [vmem:[#allocation43_spill] sm:$0xff]  ;;  %v3893_v30 = vld [vmem:[#allocation38_spill] sm:$0xff] }
  0xde   :  { %530 = vmatpush.msrb.mxu0 %v2218_v47  ;;  %637 = vmatpush.msrb.mxu2 %v2465_v49 }
  0xdf   :  { %551 = vmatpush.msrb.mxu1 %v2141_v34  ;;  %672 = vmatpush.msrb.mxu3 %v2104_v28  ;;  %v3892_v28 = vld [vmem:[#allocation25_spill] sm:$0xff] }
  0xe0   :  { %531 = vmatpush.msrb.mxu0 %v2242_v51  ;;  %638 = vmatpush.msrb.mxu2 %v2472_v45 }
  0xe1   :  { %552 = vmatpush.msrb.mxu1 %v2165_v38  ;;  %673 = vmatpush.msrb.mxu3 %v3876_v0  ;;  %v1580_v0 = vld [vmem:[%s3689_s0 + $0x20] sm:$0xff] }
  0xe2   :  { %532 = vmatpush.msrb.mxu0 %v3877_v2  ;;  %639 = vmatpush.msrb.mxu2 %v3878_v3 }
  0xe3   :  { %553 = vmatpush.msrb.mxu1 %v3879_v5  ;;  %674 = vmatpush.msrb.mxu3 %v3880_v6 }
  0xe4   :  { %533 = vmatpush.msrb.mxu0 %v3881_v8  ;;  %640 = vmatpush.msrb.mxu2 %v3882_v9 }
  0xe5   :  { %554 = vmatpush.msrb.mxu1 %v3883_v11  ;;  %675 = vmatpush.msrb.mxu3 %v3884_v12 }
  0xe6   :  { %534 = vmatpush.msrb.mxu0 %v3885_v14  ;;  %641 = vmatpush.msrb.mxu2 %v3886_v15 }
  0xe7   :  { %555 = vmatpush.msrb.mxu1 %v3887_v18  ;;  %676 = vmatpush.msrb.mxu3 %v3888_v20 }
  0xe8   :  { %535 = vmatpush.msrb.mxu0 %v3889_v22  ;;  %642 = vmatpush.msrb.mxu2 %v3890_v24 }
  0xe9   :  { %556 = vmatpush.msrb.mxu1 %v3891_v26  ;;  %677 = vmatpush.msrb.mxu3 %v3892_v28 }
  0xea   :  { %536 = vmatpush.msrb.mxu0 %v3893_v30  ;;  %643 = vmatpush.msrb.mxu2 %v3894_v37 }
  0xeb   :  { %557 = vmatpush.msrb.mxu1 %v3895_v41  ;;  %678 = vmatpush.msrb.mxu3 %v3896_v55 }
  0xec   :  { %537 = vmatpush.msrb.mxu0 %v3897_v4  ;;  %644 = vmatpush.msrb.mxu2 %v3898_v10 }
  0xed   :  { %679 = vmatpush.msrb.mxu3 %v3900_v17 }
  0xee   :  { %684 = vmatpush.msra.mxu0 %v3899_v7 }
  0xf0   :  { %685 = vmatpush.msra.mxu0 %v3901_v52 }
  0xf2   :  { %686 = vmatpush.msra.mxu0 %v3902_v56 }
  0xf4   :  { %687 = vmatpush.msra.mxu0 %v3903_v29  ;;  %v1581_v29 = vld [vmem:[%s3689_s0 + $0x28] sm:$0xff] }
  0xf6   :  { %688 = vmatpush.msra.mxu0 %v3904_v58  ;;  %v1583_v58 = vld [vmem:[%s3689_s0 + $0x38] sm:$0xff] }
  0xf8   :  { %689 = vmatpush.msra.mxu0 %v3905_v33 }
  0xfa   :  { %690 = vmatpush.msra.mxu0 %v3906_v44 }
  0xfc   :  { %691 = vmatpush.msra.mxu0 %v3907_v40 }
  0xfe   :  { %692 = vmatpush.msra.mxu0 %v3908_v21 }
 0x100   :  { %693 = vmatpush.msra.mxu0 %v3909_v13 }
 0x102   :  { %694 = vmatpush.msra.mxu0 %v3910_v1 }
 0x104   :  { %695 = vmatpush.msra.mxu0 %v3911_v48 }
 0x106   :  { %696 = vmatpush.msra.mxu0 %v3912_v62 }
 0x108   :  { %697 = vmatpush.msra.mxu0 %v3913_v16 }
 0x10a   :  { %698 = vmatpush.msra.mxu0 %v3914_v42 }
 0x10c   :  { %699 = vmatpush.msra.mxu0 %v3915_v59 }
 0x148   :  { %v2640_v6 = vpop.f32.mrf.mxu0  ;;  %v317_v7 = vpop.f32.mrf.mxu1 }
 0x149   :  { %3917 = vst [vmem:[#allocation10_spill] sm:$0xff] %v2640_v6  ;;  %v380_v52 = vadd.f32 %v1580_v0, %v317_v7 }
 0x14b   :  { %v1584_v56 = vmul.f32 -1.442695, %v380_v52 }
 0x14d   :  { %1658 = vpow2.f32 %v1584_v56 }
 0x14f   :  { %v337_v33 = vpop.f32.mrf.mxu2 }
 0x150   :  { %v381_v44 = vadd.f32 %v1581_v29, %v337_v33  ;;  %v377_v40 = vpop.f32.mrf.mxu0  ;;  %v1582_v29 = vld [vmem:[%s3689_s0 + $0x30] sm:$0xff] }
 0x151   :  { %v383_v21 = vadd.f32 %v1583_v58, %v377_v40  ;;  %v357_v58 = vpop.f32.mrf.mxu3 }
 0x152   :  { %v1585_v13 = vmul.f32 -1.442695, %v381_v44  ;;  %v382_v40 = vadd.f32 %v1582_v29, %v357_v58 }
 0x153   :  { %v1659_v1 = vpop.eup %1658  ;;  %v1586_v48 = vmul.f32 -1.442695, %v383_v21  ;;  %v1587_v21 = vld [vmem:[%s3690_s1 + $0x8] sm:$0xff] }
 0x154   :  { %v387_v62 = vadd.f32 1.0, %v1659_v1  ;;  %1660 = vpow2.f32 %v1585_v13  ;;  %472 = vperm.xlu0 %1638, %v1587_v21  }
 0x155   :  { %1662 = vpow2.f32 %v1586_v48 }
 0x156   :  { %1664 = vrcp.f32 %v387_v62  ;;  %vm393_vm14 = vweird.f32 %v387_v62  ;;  %v397_v6 = vand.u32 2147483647, %v387_v62 }
 0x158   :  { %vm398_vm2 = vcmp.eq.f32.partialorder %v397_v6, 8.507059e+37 }
 0x15a   :  { %v1661_v16 = vpop.eup %1660 }
 0x15b   :  { %v1663_v42 = vpop.eup %1662  ;;  %v406_v54 = vadd.f32 1.0, %v1661_v16  ;;  %v399_v16 = vand.u32 2147483648, %v387_v62 }
 0x15c   :  { %v1665_v0 = vpop.eup %1664  ;;  %v426_v7 = vadd.f32 1.0, %v1663_v42 }
 0x15d   :  { %v389_v52 = vmul.f32 %v1665_v0, %v387_v62  ;;  %1666 = vrcp.f32 %v406_v54  ;;  %vm394_vm13 = vweird.f32 %v1665_v0  ;;  %v418_v59 = vand.u32 2147483648, %v406_v54 }
 0x15e   :  { %1668 = vrcp.f32 %v426_v7  ;;  %vm395_vm15 = vmor %vm393_vm14, %vm394_vm13  ;;  %v416_v58 = vand.u32 2147483647, %v406_v54  ;;  %v400_v17 = vor.u32 1.1754944e-38, %v399_v16  ;;  %vm412_vm1 = vweird.f32 %v406_v54  ;;  %v3940_v16 = vld [vmem:[#allocation33_spill] sm:$0xff] }
 0x15f   :  { %v390_v56 = vsub.f32 1.0, %v389_v52  ;;  %1670 = vtanh.f32 %v382_v40  ;;  %vm432_vm6 = vweird.f32 %v426_v7  ;;  %v436_v6 = vand.u32 2147483647, %v426_v7 }
 0x160   :  { %vm417_vm4 = vcmp.eq.f32.partialorder %v416_v58, 8.507059e+37  ;;  %v291_v58 = vpop.permute.xlu0 %290 }
 0x161   :  { %v391_v33 = vmul.f32 %v1665_v0, %v390_v56  ;;  %vm437_vm8 = vcmp.eq.f32.partialorder %v436_v6, 8.507059e+37  ;;  %v1591_v6 = vld [vmem:[%s3689_s0 + $0x58] sm:$0xff] }
 0x163   :  { %v1667_v44 = vpop.eup %1666  ;;  %v392_v48 = vadd.f32 %v1665_v0, %v391_v33  ;;  %v419_v33 = vor.u32 1.1754944e-38, %v418_v59 }
 0x164   :  { %v1669_v13 = vpop.eup %1668  ;;  %v408_v1 = vmul.f32 %v1667_v44, %v406_v54  ;;  %vm413_vm0 = vweird.f32 %v1667_v44  ;;  %v438_v54 = vand.u32 2147483648, %v426_v7 }
 0x165   :  { %v428_v42 = vmul.f32 %v1669_v13, %v426_v7  ;;  %v396_v29 = vsel %vm395_vm15, %v1665_v0, %v392_v48  ;;  %vm414_vm3 = vmor %vm412_vm1, %vm413_vm0  ;;  %vm433_vm5 = vweird.f32 %v1669_v13  ;;  %v2773_v7 = vld [vmem:[%s3686_s2 + $0x100] sm:$0xff]  ;;  %v2909_v48 = vld [vmem:[%s3686_s2 + $0x28] sm:$0xff] }
 0x166   :  { %v409_v52 = vsub.f32 1.0, %v408_v1  ;;  %v401_v21 = vsel %vm398_vm2, %v400_v17, %v396_v29  ;;  %v1671_v1 = vpop.eup %1670  ;;  %vm434_vm7 = vmor %vm432_vm6, %vm433_vm5  ;;  %v439_v17 = vor.u32 1.1754944e-38, %v438_v54  ;;  %3939 = vst [vmem:[#allocation43_spill] sm:$0xff] %v2909_v48 }
 0x167   :  { %v429_v10 = vsub.f32 1.0, %v428_v42  ;;  %v443_v40 = vmul.f32 %v1671_v1, %v401_v21  ;;  %v2916_v42 = vld [vmem:[%s3688_s4] ss:$0 sm:$0xff] }
 0x168   :  { %v410_v56 = vmul.f32 %v1667_v44, %v409_v52  ;;  %3941 = vst [vmem:[#allocation30_spill] sm:$0xff] %v2916_v42 }
 0x169   :  { %v430_v62 = vmul.f32 %v1669_v13, %v429_v10  ;;  %v2759_v10 = vld [vmem:[%s3686_s2 + $0x120] sm:$0xff] }
 0x16a   :  { %v411_v4 = vadd.f32 %v1667_v44, %v410_v56  ;;  %v3942_v56 = vld [vmem:[#allocation10_spill] sm:$0xff] }
 0x16b   :  { %v431_v0 = vadd.f32 %v1669_v13, %v430_v62  ;;  %v284_v29 = vadd.f32 %v2916_v42, %v3942_v56  ;;  %v1588_v62 = vld [vmem:[%s3689_s0 + $0x40] sm:$0xff] }
 0x16c   :  { %v415_v55 = vsel %vm414_vm3, %v1667_v44, %v411_v4 }
 0x16d   :  { %v420_v41 = vsel %vm417_vm4, %v419_v33, %v415_v55  ;;  %v435_v59 = vsel %vm434_vm7, %v1669_v13, %v431_v0  ;;  %v2903_v13 = vld [vmem:[%s3686_s2 + $0x48] sm:$0xff] }
 0x16e   :  { %v442_v37 = vmul.f32 %v420_v41, %v2549_v25  ;;  %v440_v44 = vsel %vm437_vm8, %v439_v17, %v435_v59  ;;  %v2662_v25 = vld [vmem:[%s3686_s2 + $0x1f8] sm:$0xff]  ;;  %v2717_v41 = vld [vmem:[%s3686_s2 + $0x180] sm:$0xff]  ;;  %3938 = vst [vmem:[#allocation37_spill] sm:$0xff] %v2903_v13 }
 0x16f   :  { %v111_v59 = vld [vmem:[%s3691_s5] sm:$0xff] }
 0x170   :  { %v2655_v52 = vadd.f32 %v443_v40, %v442_v37  ;;  %v2669_v37 = vld [vmem:[%s3686_s2 + $0x1e0] sm:$0xff]  ;;  %v1589_v40 = vld [vmem:[%s3689_s0 + $0x48] sm:$0xff] }
 0x172   :  { %1672 = vtanh.f32 %v2655_v52 }
 0x173   :  { %1674 = vtanh.f32 %v284_v29 }
 0x178   :  { %v1673_v4 = vpop.eup %1672 }
 0x179   :  { %v446_v55 = vmul.f32 %v1673_v4, %v440_v44  ;;  %v1675_v1 = vpop.eup %1674 }
 0x17a   :  { %v293_v0 = vmul.f32 %v1675_v1, %v291_v58 }
 0x17b   :  { %463 = vmatmul.f32.vlgmr.msra.gmra.mxu1 %v446_v55  ;;  %498 = vmatmul.f32.vlgmr.msra.gmra.mxu2 %v446_v55 }
 0x17c   :  { %518 = vmatmul.f32.vlgmr.msra.gmra.mxu3 %v446_v55  ;;  %538 = vmatmul.f32.vlgmr.msrb.gmra.mxu0 %v446_v55 }
 0x17d   :  { %704 = vmatpush.msra.mxu1 %v3874_v32  ;;  %724 = vmatpush.msra.mxu2 %v2662_v25  ;;  %v2676_v32 = vld [vmem:[%s3686_s2 + $0x1d8] sm:$0xff] }
 0x17e   :  { %811 = vmatpush.msra.mxu3 %v2299_v60  ;;  %846 = vmatpush.msrb.mxu0 %v2669_v37  ;;  %v2683_v60 = vld [vmem:[%s3686_s2 + $0x1c0] sm:$0xff] }
 0x17f   :  { %705 = vmatpush.msra.mxu1 %v3875_v36  ;;  %725 = vmatpush.msra.mxu2 %v2676_v32  ;;  %v2690_v36 = vld [vmem:[%s3686_s2 + $0x1b8] sm:$0xff] }
 0x180   :  { %812 = vmatpush.msra.mxu3 %v2313_v63  ;;  %847 = vmatpush.msrb.mxu0 %v2683_v60  ;;  %v2697_v63 = vld [vmem:[%s3686_s2 + $0x1a0] sm:$0xff] }
 0x181   :  { %706 = vmatpush.msra.mxu1 %v2074_v23  ;;  %726 = vmatpush.msra.mxu2 %v2690_v36  ;;  %v2703_v23 = vld [vmem:[%s3686_s2 + $0x198] sm:$0xff] }
 0x182   :  { %813 = vmatpush.msra.mxu3 %v2325_v61  ;;  %848 = vmatpush.msrb.mxu0 %v2697_v63  ;;  %v2711_v61 = vld [vmem:[%s3686_s2 + $0x178] sm:$0xff] }
 0x183   :  { %558 = vmatmul.f32.vlgmr.msrb.gmra.mxu1 %v446_v55  ;;  %727 = vmatpush.msra.mxu2 %v2703_v23 }
 0x184   :  { %707 = vmatpush.msra.mxu1 %v2098_v27  ;;  %814 = vmatpush.msra.mxu3 %v2339_v50  ;;  %v2725_v27 = vld [vmem:[%s3686_s2 + $0x158] sm:$0xff]  ;;  %v2731_v50 = vld [vmem:[%s3686_s2 + $0x160] sm:$0xff] }
 0x185   :  { %728 = vmatpush.msra.mxu2 %v2711_v61  ;;  %849 = vmatpush.msrb.mxu0 %v2717_v41 }
 0x186   :  { %708 = vmatpush.msra.mxu1 %v2122_v31  ;;  %815 = vmatpush.msra.mxu3 %v2353_v46  ;;  %v2739_v31 = vld [vmem:[%s3686_s2 + $0x138] sm:$0xff]  ;;  %v2745_v46 = vld [vmem:[%s3686_s2 + $0x140] sm:$0xff] }
 0x187   :  { %729 = vmatpush.msra.mxu2 %v2725_v27  ;;  %850 = vmatpush.msrb.mxu0 %v2731_v50 }
 0x188   :  { %709 = vmatpush.msra.mxu1 %v2146_v35  ;;  %816 = vmatpush.msra.mxu3 %v2444_v19  ;;  %v2753_v35 = vld [vmem:[%s3686_s2 + $0x118] sm:$0xff] }
 0x189   :  { %730 = vmatpush.msra.mxu2 %v2739_v31  ;;  %851 = vmatpush.msrb.mxu0 %v2745_v46 }
 0x18a   :  { %710 = vmatpush.msra.mxu1 %v2170_v39  ;;  %817 = vmatpush.msra.mxu3 %v2451_v57  ;;  %v2767_v39 = vld [vmem:[%s3686_s2 + $0xf8] sm:$0xff] }
 0x18b   :  { %731 = vmatpush.msra.mxu2 %v2753_v35  ;;  %852 = vmatpush.msrb.mxu0 %v2759_v10 }
 0x18c   :  { %711 = vmatpush.msra.mxu1 %v2194_v43  ;;  %818 = vmatpush.msra.mxu3 %v2458_v53  ;;  %v2782_v43 = vld [vmem:[%s3686_s2 + $0xe0] sm:$0xff] }
 0x18d   :  { %732 = vmatpush.msra.mxu2 %v2767_v39  ;;  %853 = vmatpush.msrb.mxu0 %v2773_v7 }
 0x18e   :  { %712 = vmatpush.msra.mxu1 %v2218_v47  ;;  %819 = vmatpush.msra.mxu3 %v2465_v49  ;;  %v2791_v47 = vld [vmem:[%s3686_s2 + $0xc0] sm:$0xff] }
 0x18f   :  { %733 = vmatpush.msra.mxu2 %v2141_v34  ;;  %854 = vmatpush.msrb.mxu0 %v2782_v43  ;;  %v2800_v34 = vld [vmem:[%s3686_s2 + $0xa0] sm:$0xff] }
 0x190   :  { %713 = vmatpush.msra.mxu1 %v2242_v51  ;;  %820 = vmatpush.msra.mxu3 %v2472_v45  ;;  %3918 = vst [vmem:[#allocation11_spill] sm:$0xff] %v2800_v34  ;;  %v3920_v45 = vld [vmem:[#allocation34_spill] sm:$0xff]  ;;  %v3921_v51 = vld [vmem:[#allocation28_spill] sm:$0xff] }
 0x191   :  { %734 = vmatpush.msra.mxu2 %v2165_v38  ;;  %855 = vmatpush.msrb.mxu0 %v2791_v47  ;;  %v3919_v38 = vld [vmem:[#allocation44_spill] sm:$0xff] }
 0x192   :  { %714 = vmatpush.msra.mxu1 %v3877_v2  ;;  %821 = vmatpush.msra.mxu3 %v3878_v3  ;;  %v3922_v2 = vld [vmem:[#allocation39_spill] sm:$0xff]  ;;  %v3923_v3 = vld [vmem:[#allocation45_spill] sm:$0xff] }
 0x193   :  { %735 = vmatpush.msra.mxu2 %v3879_v5  ;;  %856 = vmatpush.msrb.mxu0 %v2800_v34  ;;  %v2824_v5 = vld [vmem:[%s3686_s2 + $0x1e8] sm:$0xff] }
 0x194   :  { %715 = vmatpush.msra.mxu1 %v3881_v8  ;;  %822 = vmatpush.msra.mxu3 %v3882_v9  ;;  %3924 = vst [vmem:[#allocation15_spill] sm:$0xff] %v2824_v5  ;;  %v3925_v8 = vld [vmem:[#allocation32_spill] sm:$0xff]  ;;  %v2831_v9 = vld [vmem:[%s3686_s2 + $0x1c8] sm:$0xff] }
 0x195   :  { %736 = vmatpush.msra.mxu2 %v3883_v11  ;;  %857 = vmatpush.msrb.mxu0 %v3884_v12  ;;  %3926 = vst [vmem:[#allocation31_spill] sm:$0xff] %v2831_v9  ;;  %v2837_v11 = vld [vmem:[%s3686_s2 + $0x1a8] sm:$0xff] }
 0x196   :  { %716 = vmatpush.msra.mxu1 %v3885_v14  ;;  %823 = vmatpush.msra.mxu3 %v3886_v15  ;;  %3927 = vst [vmem:[#allocation40_spill] sm:$0xff] %v2837_v11  ;;  %v2843_v12 = vld [vmem:[%s3686_s2 + $0x188] sm:$0xff] }
 0x197   :  { %737 = vmatpush.msra.mxu2 %v3887_v18  ;;  %858 = vmatpush.msrb.mxu0 %v3888_v20  ;;  %3928 = vst [vmem:[#allocation21_spill] sm:$0xff] %v2843_v12  ;;  %v2849_v14 = vld [vmem:[%s3686_s2 + $0x168] sm:$0xff] }
 0x198   :  { %717 = vmatpush.msra.mxu1 %v3889_v22  ;;  %824 = vmatpush.msra.mxu3 %v3890_v24  ;;  %3929 = vst [vmem:[#allocation17_spill] sm:$0xff] %v2849_v14  ;;  %v2855_v15 = vld [vmem:[%s3686_s2 + $0x148] sm:$0xff] }
 0x199   :  { %738 = vmatpush.msra.mxu2 %v3891_v26  ;;  %859 = vmatpush.msrb.mxu0 %v3892_v28  ;;  %3930 = vst [vmem:[#allocation35_spill] sm:$0xff] %v2855_v15  ;;  %v2861_v18 = vld [vmem:[%s3686_s2 + $0x128] sm:$0xff] }
 0x19a   :  { %718 = vmatpush.msra.mxu1 %v3893_v30  ;;  %825 = vmatpush.msra.mxu3 %v3919_v38  ;;  %3931 = vst [vmem:[#allocation41_spill] sm:$0xff] %v2861_v18  ;;  %v2867_v20 = vld [vmem:[%s3686_s2 + $0x108] sm:$0xff] }
 0x19b   :  { %739 = vmatpush.msra.mxu2 %v3920_v45  ;;  %860 = vmatpush.msrb.mxu0 %v3921_v51  ;;  %3932 = vst [vmem:[#allocation24_spill] sm:$0xff] %v2867_v20  ;;  %v2873_v22 = vld [vmem:[%s3686_s2 + $0xe8] sm:$0xff] }
 0x19c   :  { %719 = vmatpush.msra.mxu1 %v3922_v2  ;;  %826 = vmatpush.msra.mxu3 %v3923_v3  ;;  %3933 = vst [vmem:[#allocation19_spill] sm:$0xff] %v2873_v22  ;;  %v2879_v24 = vld [vmem:[%s3686_s2 + $0xc8] sm:$0xff]  ;;  %v294_v3 = vadd.f32 %v293_v0, %v111_v59  ;;  %v1590_v0 = vld [vmem:[%s3689_s0 + $0x50] sm:$0xff] }
 0x19d   :  { %861 = vmatpush.msrb.mxu0 %v3925_v8  ;;  %3934 = vst [vmem:[#allocation36_spill] sm:$0xff] %v2879_v24  ;;  %v2885_v26 = vld [vmem:[%s3686_s2 + $0xa8] sm:$0xff] }
 0x19e   :  { %866 = vmatpush.msrb.mxu1 %v2824_v5  ;;  %3935 = vst [vmem:[#allocation42_spill] sm:$0xff] %v2885_v26  ;;  %v2891_v28 = vld [vmem:[%s3686_s2 + $0x88] sm:$0xff] }
 0x19f   :  { %3936 = vst [vmem:[#allocation27_spill] sm:$0xff] %v2891_v28  ;;  %v2897_v30 = vld [vmem:[%s3686_s2 + $0x68] sm:$0xff] }
 0x1a0   :  { %867 = vmatpush.msrb.mxu1 %v2831_v9  ;;  %3937 = vst [vmem:[#allocation22_spill] sm:$0xff] %v2897_v30 }
 0x1a2   :  { %868 = vmatpush.msrb.mxu1 %v2837_v11 }
 0x1a4   :  { %869 = vmatpush.msrb.mxu1 %v2843_v12 }
 0x1a6   :  { %870 = vmatpush.msrb.mxu1 %v2849_v14 }
 0x1a8   :  { %871 = vmatpush.msrb.mxu1 %v2855_v15 }
 0x1aa   :  { %872 = vmatpush.msrb.mxu1 %v2861_v18 }
 0x1ac   :  { %873 = vmatpush.msrb.mxu1 %v2867_v20 }
 0x1ae   :  { %874 = vmatpush.msrb.mxu1 %v2873_v22 }
 0x1b0   :  { %875 = vmatpush.msrb.mxu1 %v2879_v24 }
 0x1b2   :  { %876 = vmatpush.msrb.mxu1 %v2885_v26 }
 0x1b4   :  { %877 = vmatpush.msrb.mxu1 %v2891_v28 }
 0x1b6   :  { %878 = vmatpush.msrb.mxu1 %v2897_v30 }
 0x1b8   :  { %879 = vmatpush.msrb.mxu1 %v2903_v13 }
 0x1ba   :  { %880 = vmatpush.msrb.mxu1 %v2909_v48 }
 0x1bc   :  { %881 = vmatpush.msrb.mxu1 %v3940_v16 }
 0x1c6   :  { %v473_v44 = vpop.permute.xlu0 %472 }
 0x1f8   :  { %v464_v33 = vpop.f32.mrf.mxu1 }
 0x1f9   :  { %v465_v21 = vadd.f32 %v2916_v42, %v464_v33 }
 0x1fb   :  { %1676 = vtanh.f32 %v465_v21 }
 0x1fe   :  { %v499_v54 = vpop.f32.mrf.mxu2 }
 0x1ff   :  { %v562_v17 = vadd.f32 %v1588_v62, %v499_v54  ;;  %v519_v4 = vpop.f32.mrf.mxu3  ;;  %v539_v54 = vpop.f32.mrf.mxu0 }
 0x200   :  { %v563_v55 = vadd.f32 %v1589_v40, %v519_v4  ;;  %v559_v38 = vpop.f32.mrf.mxu1  ;;  %v564_v59 = vadd.f32 %v1590_v0, %v539_v54 }
 0x201   :  { %v1677_v45 = vpop.eup %1676  ;;  %v1592_v51 = vmul.f32 -1.442695, %v562_v17  ;;  %v565_v2 = vadd.f32 %v1591_v6, %v559_v38 }
 0x202   :  { %v1593_v8 = vmul.f32 -1.442695, %v563_v55  ;;  %v475_v16 = vmul.f32 %v1677_v45, %v473_v44  ;;  %v1595_v44 = vld [vmem:[%s3690_s1 + $0x10] sm:$0xff] }
 0x203   :  { %1678 = vpow2.f32 %v1592_v51  ;;  %v1594_v56 = vmul.f32 -1.442695, %v565_v2  ;;  %654 = vperm.xlu1 %1639, %v1595_v44  }
 0x204   :  { %1680 = vpow2.f32 %v1593_v8  ;;  %v2933_v29 = vadd.f32 %v475_v16, %v294_v3 }
 0x205   :  { %1682 = vpow2.f32 %v1594_v56 }
 0x206   :  { %3943 = vst [vmem:[#allocation25_spill] sm:$0xff] %v2933_v29 }
 0x209   :  { %v1679_v58 = vpop.eup %1678 }
 0x20a   :  { %v1681_v33 = vpop.eup %1680  ;;  %v569_v21 = vadd.f32 1.0, %v1679_v58 }
 0x20b   :  { %v1683_v1 = vpop.eup %1682  ;;  %v588_v62 = vadd.f32 1.0, %v1681_v33 }
 0x20c   :  { %1684 = vrcp.f32 %v569_v21  ;;  %v608_v40 = vadd.f32 1.0, %v1683_v1  ;;  %v579_v51 = vand.u32 2147483647, %v569_v21  ;;  %v581_v2 = vand.u32 2147483648, %v569_v21 }
 0x20d   :  { %1686 = vrcp.f32 %v588_v62  ;;  %v600_v16 = vand.u32 2147483648, %v588_v62  ;;  %v598_v33 = vand.u32 2147483647, %v588_v62  ;;  %vm575_vm11 = vweird.f32 %v569_v21 }
 0x20e   :  { %1688 = vrcp.f32 %v608_v40  ;;  %v582_v54 = vor.u32 1.1754944e-38, %v581_v2  ;;  %vm594_vm14 = vweird.f32 %v588_v62  ;;  %vm580_vm15 = vcmp.eq.f32.partialorder %v579_v51, 8.507059e+37 }
 0x20f   :  { %1690 = vtanh.f32 %v564_v59  ;;  %v601_v59 = vor.u32 1.1754944e-38, %v600_v16  ;;  %vm599_vm1 = vcmp.eq.f32.partialorder %v598_v33, 8.507059e+37  ;;  %v620_v2 = vand.u32 2147483648, %v608_v40  ;;  %v3005_v33 = vld [vmem:[%s3686_s2 + $0x170] sm:$0xff] }
 0x210   :  { %vm614_vm3 = vweird.f32 %v608_v40 }
 0x211   :  { %v621_v51 = vor.u32 1.1754944e-38, %v620_v2  ;;  %v3110_v2 = vld [vmem:[%s3686_s2 + $0x78] sm:$0xff] }
 0x212   :  { %v1685_v6 = vpop.eup %1684  ;;  %3946 = vst [vmem:[#allocation5_spill] sm:$0xff] %v3110_v2 }
 0x213   :  { %v1687_v17 = vpop.eup %1686  ;;  %v571_v4 = vmul.f32 %v1685_v6, %v569_v21  ;;  %vm576_vm9 = vweird.f32 %v1685_v6 }
 0x214   :  { %v590_v55 = vmul.f32 %v1687_v17, %v588_v62  ;;  %v1689_v45 = vpop.eup %1688  ;;  %vm595_vm10 = vweird.f32 %v1687_v17  ;;  %vm577_vm13 = vmor %vm575_vm11, %vm576_vm9  ;;  %v618_v62 = vand.u32 2147483647, %v608_v40 }
 0x215   :  { %v572_v38 = vsub.f32 1.0, %v571_v4  ;;  %v610_v56 = vmul.f32 %v1689_v45, %v608_v40  ;;  %vm596_vm0 = vmor %vm594_vm14, %vm595_vm10  ;;  %v1691_v44 = vpop.eup %1690  ;;  %vm615_vm2 = vweird.f32 %v1689_v45  ;;  %v2976_v40 = vld [vmem:[%s3686_s2 + $0x1b0] sm:$0xff] }
 0x216   :  { %v591_v3 = vsub.f32 1.0, %v590_v55  ;;  %vm616_vm4 = vmor %vm614_vm3, %vm615_vm2  ;;  %vm619_vm5 = vcmp.eq.f32.partialorder %v618_v62, 8.507059e+37  ;;  %v3116_v62 = vld [vmem:[%s3686_s2 + $0x80] sm:$0xff] }
 0x217   :  { %v573_v8 = vmul.f32 %v1685_v6, %v572_v38  ;;  %v611_v0 = vsub.f32 1.0, %v610_v56  ;;  %v2991_v56 = vld [vmem:[%s3686_s2 + $0x190] sm:$0xff]  ;;  %3947 = vst [vmem:[#allocation6_spill] sm:$0xff] %v3116_v62 }
 0x218   :  { %v592_v58 = vmul.f32 %v1687_v17, %v591_v3 }
 0x219   :  { %v574_v1 = vadd.f32 %v1685_v6, %v573_v8  ;;  %v612_v3 = vmul.f32 %v1689_v45, %v611_v0  ;;  %v3019_v0 = vld [vmem:[%s3686_s2 + $0x150] sm:$0xff] }
 0x21a   :  { %v593_v29 = vadd.f32 %v1687_v17, %v592_v58  ;;  %v2997_v58 = vld [vmem:[%s3687_s3 + $0x60] sm:$0xff] }
 0x21b   :  { %v578_v4 = vsel %vm577_vm13, %v1685_v6, %v574_v1  ;;  %v613_v21 = vadd.f32 %v1689_v45, %v612_v3  ;;  %v3011_v1 = vld [vmem:[%s3687_s3 + $0x58] sm:$0xff]  ;;  %v3098_v3 = vld [vmem:[%s3686_s2 + $0x90] sm:$0xff] }
 0x21c   :  { %v583_v55 = vsel %vm580_vm15, %v582_v54, %v578_v4  ;;  %v597_v38 = vsel %vm596_vm0, %v1687_v17, %v593_v29  ;;  %v3028_v54 = vld [vmem:[%s3686_s2 + $0x130] sm:$0xff]  ;;  %v3053_v4 = vld [vmem:[%s3686_s2 + $0xd8] sm:$0xff]  ;;  %3944 = vst [vmem:[#allocation38_spill] sm:$0xff] %v3098_v3 }
 0x21d   :  { %v625_v42 = vmul.f32 %v1691_v44, %v583_v55  ;;  %v602_v48 = vsel %vm599_vm1, %v601_v59, %v597_v38  ;;  %v617_v6 = vsel %vm616_vm4, %v1689_v45, %v613_v21  ;;  %v2983_v45 = vld [vmem:[%s3687_s3 + $0x68] sm:$0xff]  ;;  %v3072_v59 = vld [vmem:[%s3686_s2 + $0xb8] sm:$0xff]  ;;  %v3079_v44 = vld [vmem:[%s3686_s2 + $0xb0] sm:$0xff] }
 0x21e   :  { %v624_v13 = vmul.f32 %v602_v48, %v2655_v52  ;;  %v622_v17 = vsel %vm619_vm5, %v621_v51, %v617_v6  ;;  %v2948_v52 = vld [vmem:[%s3686_s2 + $0x1f0] sm:$0xff]  ;;  %v3085_v55 = vld [vmem:[%s3687_s3 + $0x28] sm:$0xff]  ;;  %v3091_v38 = vld [vmem:[%s3686_s2 + $0x98] sm:$0xff] }
 0x21f   :  { %v2962_v48 = vld [vmem:[%s3686_s2 + $0x1d0] sm:$0xff]  ;;  %v3104_v21 = vld [vmem:[%s3687_s3 + $0x20] sm:$0xff]  ;;  %v3128_v51 = vld [vmem:[%s3687_s3 + $0x18] sm:$0xff] }
 0x220   :  { %v2942_v8 = vadd.f32 %v625_v42, %v624_v13  ;;  %v2955_v13 = vld [vmem:[%s3687_s3 + $0x78] sm:$0xff]  ;;  %v2969_v42 = vld [vmem:[%s3687_s3 + $0x70] sm:$0xff]  ;;  %3945 = vst [vmem:[#allocation4_spill] sm:$0xff] %v3104_v21 }
 0x221   :  { %v3122_v6 = vld [vmem:[%s3686_s2 + $0x70] sm:$0xff]  ;;  %3949 = vst [vmem:[#allocation8_spill] sm:$0xff] %v3128_v51 }
 0x222   :  { %1692 = vtanh.f32 %v2942_v8  ;;  %3948 = vst [vmem:[#allocation7_spill] sm:$0xff] %v3122_v6 }
 0x228   :  { %v1693_v29 = vpop.eup %1692 }
 0x229   :  { %v628_v16 = vmul.f32 %v1693_v29, %v622_v17  ;;  %v3134_v29 = vld [vmem:[%s3686_s2 + $0x58] sm:$0xff]  ;;  %v3140_v17 = vld [vmem:[%s3686_s2 + $0x60] sm:$0xff] }
 0x22a   :  { %3950 = vst [vmem:[#allocation9_spill] sm:$0xff] %v3134_v29 }
 0x22b   :  { %645 = vmatmul.f32.vlgmr.msrb.gmra.mxu2 %v628_v16  ;;  %680 = vmatmul.f32.vlgmr.msrb.gmra.mxu3 %v628_v16  ;;  %3951 = vst [vmem:[#allocation12_spill] sm:$0xff] %v3140_v17 }
 0x22c   :  { %700 = vmatmul.f32.vlgmr.msra.gmra.mxu0 %v628_v16  ;;  %720 = vmatmul.f32.vlgmr.msra.gmra.mxu1 %v628_v16 }
 0x22d   :  { %886 = vmatpush.msrb.mxu2 %v2948_v52  ;;  %906 = vmatpush.msrb.mxu3 %v2662_v25 }
 0x22e   :  { %993 = vmatpush.msra.mxu0 %v2955_v13  ;;  %1028 = vmatpush.msra.mxu1 %v2669_v37 }
 0x22f   :  { %887 = vmatpush.msrb.mxu2 %v2962_v48  ;;  %907 = vmatpush.msrb.mxu3 %v2676_v32 }
 0x230   :  { %994 = vmatpush.msra.mxu0 %v2969_v42  ;;  %1029 = vmatpush.msra.mxu1 %v2683_v60 }
 0x231   :  { %888 = vmatpush.msrb.mxu2 %v2976_v40  ;;  %908 = vmatpush.msrb.mxu3 %v2690_v36 }
 0x232   :  { %995 = vmatpush.msra.mxu0 %v2983_v45  ;;  %1030 = vmatpush.msra.mxu1 %v2697_v63 }
 0x233   :  { %740 = vmatmul.f32.vlgmr.msra.gmra.mxu2 %v628_v16  ;;  %909 = vmatpush.msrb.mxu3 %v2703_v23  ;;  %v3146_v16 = vld [vmem:[%s3686_s2 + $0x50] sm:$0xff] }
 0x234   :  { %889 = vmatpush.msrb.mxu2 %v2991_v56  ;;  %996 = vmatpush.msra.mxu0 %v2997_v58  ;;  %3952 = vst [vmem:[#allocation13_spill] sm:$0xff] %v3146_v16 }
 0x235   :  { %910 = vmatpush.msrb.mxu3 %v2711_v61  ;;  %1031 = vmatpush.msra.mxu1 %v2717_v41 }
 0x236   :  { %890 = vmatpush.msrb.mxu2 %v3005_v33  ;;  %997 = vmatpush.msra.mxu0 %v3011_v1 }
 0x237   :  { %911 = vmatpush.msrb.mxu3 %v2725_v27  ;;  %1032 = vmatpush.msra.mxu1 %v2731_v50 }
 0x238   :  { %891 = vmatpush.msrb.mxu2 %v3019_v0  ;;  %998 = vmatpush.msra.mxu0 %v2444_v19  ;;  %v3037_v19 = vld [vmem:[%s3686_s2 + $0x110] sm:$0xff] }
 0x239   :  { %912 = vmatpush.msrb.mxu3 %v2739_v31  ;;  %1033 = vmatpush.msra.mxu1 %v2745_v46 }
 0x23a   :  { %892 = vmatpush.msrb.mxu2 %v3028_v54  ;;  %999 = vmatpush.msra.mxu0 %v2451_v57  ;;  %v3046_v57 = vld [vmem:[%s3686_s2 + $0xf0] sm:$0xff] }
 0x23b   :  { %913 = vmatpush.msrb.mxu3 %v2753_v35  ;;  %1034 = vmatpush.msra.mxu1 %v2759_v10 }
 0x23c   :  { %893 = vmatpush.msrb.mxu2 %v3037_v19  ;;  %1000 = vmatpush.msra.mxu0 %v2458_v53  ;;  %v3060_v53 = vld [vmem:[%s3686_s2 + $0xd0] sm:$0xff] }
 0x23d   :  { %914 = vmatpush.msrb.mxu3 %v2767_v39  ;;  %1035 = vmatpush.msra.mxu1 %v2773_v7 }
 0x23e   :  { %894 = vmatpush.msrb.mxu2 %v3046_v57  ;;  %1001 = vmatpush.msra.mxu0 %v2465_v49  ;;  %v3066_v49 = vld [vmem:[%s3687_s3 + $0x30] sm:$0xff] }
 0x23f   :  { %915 = vmatpush.msrb.mxu3 %v3053_v4  ;;  %1036 = vmatpush.msra.mxu1 %v2782_v43 }
 0x240   :  { %895 = vmatpush.msrb.mxu2 %v3060_v53  ;;  %1002 = vmatpush.msra.mxu0 %v3066_v49 }
 0x241   :  { %916 = vmatpush.msrb.mxu3 %v3072_v59  ;;  %1037 = vmatpush.msra.mxu1 %v2791_v47 }
 0x242   :  { %896 = vmatpush.msrb.mxu2 %v3079_v44  ;;  %1003 = vmatpush.msra.mxu0 %v3085_v55 }
 0x243   :  { %917 = vmatpush.msrb.mxu3 %v3091_v38  ;;  %1038 = vmatpush.msra.mxu1 %v2800_v34 }
 0x244   :  { %897 = vmatpush.msrb.mxu2 %v3098_v3  ;;  %1004 = vmatpush.msra.mxu0 %v3104_v21 }
 0x245   :  { %918 = vmatpush.msrb.mxu3 %v3110_v2  ;;  %1039 = vmatpush.msra.mxu1 %v3116_v62 }
 0x246   :  { %898 = vmatpush.msrb.mxu2 %v3122_v6  ;;  %1005 = vmatpush.msra.mxu0 %v3128_v51  ;;  %v3152_v51 = vld [vmem:[%s3687_s3 + $0x10] sm:$0xff] }
 0x247   :  { %919 = vmatpush.msrb.mxu3 %v3134_v29  ;;  %1040 = vmatpush.msra.mxu1 %v3140_v17  ;;  %3953 = vst [vmem:[#allocation14_spill] sm:$0xff] %v3152_v51  ;;  %v3158_v29 = vld [vmem:[%s3686_s2 + $0x38] sm:$0xff]  ;;  %v3164_v17 = vld [vmem:[%s3686_s2 + $0x40] sm:$0xff] }
 0x248   :  { %899 = vmatpush.msrb.mxu2 %v3146_v16  ;;  %1006 = vmatpush.msra.mxu0 %v3152_v51  ;;  %3954 = vst [vmem:[#allocation16_spill] sm:$0xff] %v3158_v29  ;;  %v3170_v16 = vld [vmem:[%s3686_s2 + $0x30] sm:$0xff]  ;;  %v3176_v51 = vld [vmem:[%s3687_s3 + $0x8] sm:$0xff] }
 0x249   :  { %920 = vmatpush.msrb.mxu3 %v3158_v29  ;;  %3955 = vst [vmem:[#allocation18_spill] sm:$0xff] %v3164_v17  ;;  %1041 = vmatpush.msra.mxu1 %v3164_v17  ;;  %v3182_v29 = vld [vmem:[%s3686_s2 + $0x18] sm:$0xff]  ;;  %v3188_v17 = vld [vmem:[%s3686_s2 + $0x20] sm:$0xff] }
 0x24a   :  { %3956 = vst [vmem:[#allocation20_spill] sm:$0xff] %v3170_v16  ;;  %900 = vmatpush.msrb.mxu2 %v3170_v16  ;;  %1007 = vmatpush.msra.mxu0 %v3176_v51  ;;  %v3194_v16 = vld [vmem:[%s3686_s2 + $0x10] sm:$0xff] }
 0x24b   :  { %3957 = vst [vmem:[#allocation23_spill] sm:$0xff] %v3176_v51  ;;  %921 = vmatpush.msrb.mxu3 %v3182_v29  ;;  %1042 = vmatpush.msra.mxu1 %v3188_v17  ;;  %v3200_v51 = vld [vmem:[%s3687_s3] sm:$0xff] }
 0x24c   :  { %3958 = vst [vmem:[#allocation26_spill] sm:$0xff] %v3182_v29  ;;  %901 = vmatpush.msrb.mxu2 %v3194_v16  ;;  %1008 = vmatpush.msra.mxu0 %v3200_v51 }
 0x24d   :  { %3959 = vst [vmem:[#allocation29_spill] sm:$0xff] %v3188_v17  ;;  %v3207_v17 = vld [vmem:[%s3686_s2] sm:$0xff] }
 0x24e   :  { %3960 = vst [vmem:[#allocation44_spill] sm:$0xff] %v3194_v16  ;;  %1048 = vmatpush.msra.mxu2 %v2824_v5  ;;  %1043 = vmatpush.msra.mxu1 %v3207_v17 }
 0x24f   :  { %3961 = vst [vmem:[#allocation34_spill] sm:$0xff] %v3200_v51 }
 0x250   :  { %3962 = vst [vmem:[#allocation28_spill] sm:$0xff] %v3207_v17  ;;  %1049 = vmatpush.msra.mxu2 %v2831_v9 }
 0x252   :  { %1050 = vmatpush.msra.mxu2 %v2837_v11  ;;  %v3963_v11 = vld [vmem:[#allocation37_spill] sm:$0xff] }
 0x254   :  { %1051 = vmatpush.msra.mxu2 %v2843_v12  ;;  %v3964_v12 = vld [vmem:[#allocation43_spill] sm:$0xff] }
 0x256   :  { %1052 = vmatpush.msra.mxu2 %v2849_v14 }
 0x258   :  { %1053 = vmatpush.msra.mxu2 %v2855_v15 }
 0x25a   :  { %1054 = vmatpush.msra.mxu2 %v2861_v18  ;;  %v3227_v18 = vld [vmem:[%s3686_s2 + $0x8] sm:$0xff] }
 0x25b   :  { %3965 = vst [vmem:[#allocation39_spill] sm:$0xff] %v3227_v18 }
 0x25c   :  { %1055 = vmatpush.msra.mxu2 %v2867_v20  ;;  %v3966_v20 = vld [vmem:[#allocation30_spill] sm:$0xff] }
 0x25e   :  { %1056 = vmatpush.msra.mxu2 %v2873_v22 }
 0x260   :  { %1057 = vmatpush.msra.mxu2 %v2879_v24  ;;  %v1597_v24 = vld [vmem:[%s3689_s0 + $0x68] sm:$0xff] }
 0x262   :  { %1058 = vmatpush.msra.mxu2 %v2885_v26 }
 0x264   :  { %1059 = vmatpush.msra.mxu2 %v2891_v28 }
 0x266   :  { %1060 = vmatpush.msra.mxu2 %v2897_v30 }
 0x268   :  { %1061 = vmatpush.msra.mxu2 %v3963_v11  ;;  %v1596_v11 = vld [vmem:[%s3689_s0 + $0x60] sm:$0xff] }
 0x26a   :  { %1062 = vmatpush.msra.mxu2 %v3964_v12 }
 0x26c   :  { %1063 = vmatpush.msra.mxu2 %v3227_v18 }
 0x2a9   :  { %v701_v26 = vpop.f32.mrf.mxu0 }
 0x2aa   :  { %v745_v22 = vadd.f32 %v1597_v24, %v701_v26  ;;  %v1599_v24 = vld [vmem:[%s3689_s0 + $0x78] sm:$0xff] }
 0x2ac   :  { %v1601_v28 = vmul.f32 -1.442695, %v745_v22  ;;  %v655_v22 = vpop.permute.xlu1 %654 }
 0x2ae   :  { %1694 = vpow2.f32 %v1601_v28  ;;  %v646_v12 = vpop.f32.mrf.mxu2  ;;  %v681_v30 = vpop.f32.mrf.mxu3 }
 0x2af   :  { %v647_v15 = vadd.f32 %v3966_v20, %v646_v12  ;;  %v744_v14 = vadd.f32 %v1596_v11, %v681_v30  ;;  %v3967_v12 = vld [vmem:[#allocation25_spill] sm:$0xff] }
 0x2b1   :  { %1696 = vtanh.f32 %v647_v15  ;;  %v1600_v9 = vmul.f32 -1.442695, %v744_v14  ;;  %v1598_v15 = vld [vmem:[%s3689_s0 + $0x70] sm:$0xff] }
 0x2b3   :  { %1698 = vpow2.f32 %v1600_v9 }
 0x2b4   :  { %v1695_v18 = vpop.eup %1694 }
 0x2b5   :  { %v770_v17 = vadd.f32 1.0, %v1695_v18  ;;  %v721_v18 = vpop.f32.mrf.mxu1 }
 0x2b6   :  { %v741_v26 = vpop.f32.mrf.mxu2  ;;  %v746_v20 = vadd.f32 %v1598_v15, %v721_v18 }
 0x2b7   :  { %v1697_v5 = vpop.eup %1696  ;;  %1700 = vrcp.f32 %v770_v17  ;;  %v747_v51 = vadd.f32 %v1599_v24, %v741_v26  ;;  %vm776_vm7 = vweird.f32 %v770_v17 }
 0x2b8   :  { %v657_v28 = vmul.f32 %v1697_v5, %v655_v22  ;;  %v1603_v5 = vld [vmem:[%s3690_s1 + $0x18] sm:$0xff] }
 0x2b9   :  { %v1699_v16 = vpop.eup %1698  ;;  %v1602_v6 = vmul.f32 -1.442695, %v747_v51  ;;  %836 = vperm.xlu1 %1639, %v1603_v5  }
 0x2ba   :  { %v751_v29 = vadd.f32 1.0, %v1699_v16  ;;  %v3241_v11 = vadd.f32 %v657_v28, %v3967_v12  ;;  %v780_v28 = vand.u32 2147483647, %v770_v17 }
 0x2bc   :  { %3968 = vst [vmem:[#allocation45_spill] sm:$0xff] %v3241_v11  ;;  %1702 = vrcp.f32 %v751_v29  ;;  %vm781_vm10 = vcmp.eq.f32.partialorder %v780_v28, 8.507059e+37  ;;  %vm757_vm11 = vweird.f32 %v751_v29 }
 0x2bd   :  { %v1701_v9 = vpop.eup %1700  ;;  %1704 = vpow2.f32 %v1602_v6  ;;  %v782_v6 = vand.u32 2147483648, %v770_v17 }
 0x2be   :  { %v772_v14 = vmul.f32 %v1701_v9, %v770_v17  ;;  %vm777_vm6 = vweird.f32 %v1701_v9  ;;  %1706 = vtanh.f32 %v746_v20 }
 0x2bf   :  { %vm778_vm8 = vmor %vm776_vm7, %vm777_vm6  ;;  %v783_v11 = vor.u32 1.1754944e-38, %v782_v6 }
 0x2c0   :  { %v773_v30 = vsub.f32 1.0, %v772_v14  ;;  %v763_v14 = vand.u32 2147483648, %v751_v29 }
 0x2c2   :  { %v1703_v62 = vpop.eup %1702  ;;  %v774_v24 = vmul.f32 %v1701_v9, %v773_v30  ;;  %v761_v30 = vand.u32 2147483647, %v751_v29 }
 0x2c3   :  { %v1705_v51 = vpop.eup %1704  ;;  %v753_v16 = vmul.f32 %v1703_v62, %v751_v29  ;;  %vm758_vm9 = vweird.f32 %v1703_v62 }
 0x2c4   :  { %v775_v22 = vadd.f32 %v1701_v9, %v774_v24  ;;  %v790_v26 = vadd.f32 1.0, %v1705_v51  ;;  %vm759_vm13 = vmor %vm757_vm11, %vm758_vm9  ;;  %v764_v24 = vor.u32 1.1754944e-38, %v763_v14  ;;  %v1707_v5 = vpop.eup %1706  ;;  %vm762_vm14 = vcmp.eq.f32.partialorder %v761_v30, 8.507059e+37  ;;  %v3990_v30 = vld [vmem:[#allocation31_spill] sm:$0xff] }
 0x2c5   :  { %v754_v12 = vsub.f32 1.0, %v753_v16 }
 0x2c6   :  { %1708 = vrcp.f32 %v790_v26  ;;  %v779_v15 = vsel %vm778_vm8, %v1701_v9, %v775_v22  ;;  %v802_v6 = vand.u32 2147483648, %v790_v26  ;;  %v800_v29 = vand.u32 2147483647, %v790_v26 }
 0x2c7   :  { %v755_v18 = vmul.f32 %v1703_v62, %v754_v12  ;;  %v784_v21 = vsel %vm781_vm10, %v783_v11, %v779_v15  ;;  %vm796_vm0 = vweird.f32 %v790_v26  ;;  %v3988_v15 = vld [vmem:[#allocation15_spill] sm:$0xff] }
 0x2c8   :  { %v806_v16 = vmul.f32 %v784_v21, %v2942_v8  ;;  %vm801_vm2 = vcmp.eq.f32.partialorder %v800_v29, 8.507059e+37  ;;  %v3986_v21 = vld [vmem:[#allocation44_spill] sm:$0xff]  ;;  %v4000_v29 = vld [vmem:[#allocation27_spill] sm:$0xff] }
 0x2c9   :  { %v756_v2 = vadd.f32 %v1703_v62, %v755_v18  ;;  %v3989_v18 = vld [vmem:[#allocation28_spill] sm:$0xff] }
 0x2cb   :  { %v760_v51 = vsel %vm759_vm13, %v1703_v62, %v756_v2  ;;  %v803_v2 = vor.u32 1.1754944e-38, %v802_v6  ;;  %v3999_v6 = vld [vmem:[#allocation42_spill] sm:$0xff] }
 0x2cc   :  { %v1709_v17 = vpop.eup %1708  ;;  %v765_v20 = vsel %vm762_vm14, %v764_v24, %v760_v51  ;;  %v3991_v24 = vld [vmem:[#allocation40_spill] sm:$0xff]  ;;  %v3993_v51 = vld [vmem:[#allocation17_spill] sm:$0xff] }
 0x2cd   :  { %v807_v3 = vmul.f32 %v1707_v5, %v765_v20  ;;  %v792_v34 = vmul.f32 %v1709_v17, %v790_v26  ;;  %vm797_vm15 = vweird.f32 %v1709_v17  ;;  %v3987_v26 = vld [vmem:[#allocation34_spill] sm:$0xff]  ;;  %v3992_v5 = vld [vmem:[#allocation21_spill] sm:$0xff] }
 0x2ce   :  { %vm798_vm1 = vmor %vm796_vm0, %vm797_vm15  ;;  %v3995_v20 = vld [vmem:[#allocation41_spill] sm:$0xff] }
 0x2cf   :  { %v793_v9 = vsub.f32 1.0, %v792_v34  ;;  %v3250_v22 = vadd.f32 %v807_v3, %v806_v16  ;;  %v3984_v34 = vld [vmem:[#allocation26_spill] sm:$0xff]  ;;  %v3985_v3 = vld [vmem:[#allocation29_spill] sm:$0xff]  ;;  %v3996_v16 = vld [vmem:[#allocation24_spill] sm:$0xff] }
 0x2d1   :  { %v794_v12 = vmul.f32 %v1709_v17, %v793_v9  ;;  %1710 = vtanh.f32 %v3250_v22  ;;  %v3997_v9 = vld [vmem:[#allocation19_spill] sm:$0xff] }
 0x2d3   :  { %v795_v11 = vadd.f32 %v1709_v17, %v794_v12  ;;  %v3998_v12 = vld [vmem:[#allocation36_spill] sm:$0xff] }
 0x2d5   :  { %v799_v62 = vsel %vm798_vm1, %v1709_v17, %v795_v11  ;;  %v3994_v17 = vld [vmem:[#allocation35_spill] sm:$0xff]  ;;  %v4001_v11 = vld [vmem:[#allocation22_spill] sm:$0xff] }
 0x2d6   :  { %v804_v14 = vsel %vm801_vm2, %v803_v2, %v799_v62  ;;  %v4002_v2 = vld [vmem:[#allocation37_spill] sm:$0xff]  ;;  %v4003_v62 = vld [vmem:[#allocation43_spill] sm:$0xff] }
 0x2d7   :  { %v1711_v28 = vpop.eup %1710 }
 0x2d8   :  { %v810_v8 = vmul.f32 %v1711_v28, %v804_v14  ;;  %v4004_v28 = vld [vmem:[#allocation39_spill] sm:$0xff]  ;;  %v1604_v14 = vld [vmem:[%s3689_s0 + $0x80] sm:$0xff] }
 0x2da   :  { %827 = vmatmul.f32.vlgmr.msra.gmra.mxu3 %v810_v8  ;;  %862 = vmatmul.f32.vlgmr.msrb.gmra.mxu0 %v810_v8 }
 0x2db   :  { %882 = vmatmul.f32.vlgmr.msrb.gmra.mxu1 %v810_v8  ;;  %902 = vmatmul.f32.vlgmr.msrb.gmra.mxu2 %v810_v8 }
 0x2dc   :  { %1068 = vmatpush.msra.mxu3 %v2948_v52  ;;  %1088 = vmatpush.msrb.mxu0 %v2662_v25  ;;  %v3278_v25 = vld [vmem:[%s3687_s3 + $0x50] sm:$0xff] }
 0x2dd   :  { %1175 = vmatpush.msrb.mxu1 %v2955_v13  ;;  %1210 = vmatpush.msrb.mxu2 %v2669_v37  ;;  %v3287_v37 = vld [vmem:[%s3687_s3 + $0x48] sm:$0xff] }
 0x2de   :  { %1069 = vmatpush.msra.mxu3 %v2962_v48  ;;  %1089 = vmatpush.msrb.mxu0 %v2676_v32  ;;  %v3296_v32 = vld [vmem:[%s3687_s3 + $0x40] sm:$0xff] }
 0x2df   :  { %1176 = vmatpush.msrb.mxu1 %v2969_v42  ;;  %1211 = vmatpush.msrb.mxu2 %v2683_v60  ;;  %v3305_v60 = vld [vmem:[%s3687_s3 + $0x38] sm:$0xff] }
 0x2e0   :  { %1070 = vmatpush.msra.mxu3 %v2976_v40  ;;  %1090 = vmatpush.msrb.mxu0 %v2690_v36  ;;  %v3969_v36 = vld [vmem:[#allocation11_spill] sm:$0xff] }
 0x2e1   :  { %1177 = vmatpush.msrb.mxu1 %v2983_v45  ;;  %1212 = vmatpush.msrb.mxu2 %v2697_v63  ;;  %v3970_v63 = vld [vmem:[#allocation38_spill] sm:$0xff] }
 0x2e2   :  { %922 = vmatmul.f32.vlgmr.msrb.gmra.mxu3 %v810_v8  ;;  %1091 = vmatpush.msrb.mxu0 %v2703_v23  ;;  %v3971_v23 = vld [vmem:[#allocation4_spill] sm:$0xff]  ;;  %v1605_v8 = vld [vmem:[%s3689_s0 + $0x88] sm:$0xff] }
 0x2e3   :  { %1071 = vmatpush.msra.mxu3 %v2991_v56  ;;  %1178 = vmatpush.msrb.mxu1 %v2997_v58 }
 0x2e4   :  { %1092 = vmatpush.msrb.mxu0 %v2711_v61  ;;  %1213 = vmatpush.msrb.mxu2 %v2717_v41  ;;  %v3972_v61 = vld [vmem:[#allocation5_spill] sm:$0xff]  ;;  %v3973_v41 = vld [vmem:[#allocation6_spill] sm:$0xff] }
 0x2e5   :  { %1072 = vmatpush.msra.mxu3 %v3005_v33  ;;  %1179 = vmatpush.msrb.mxu1 %v3011_v1 }
 0x2e6   :  { %1093 = vmatpush.msrb.mxu0 %v2725_v27  ;;  %1214 = vmatpush.msrb.mxu2 %v2731_v50  ;;  %v3974_v27 = vld [vmem:[#allocation7_spill] sm:$0xff]  ;;  %v3975_v50 = vld [vmem:[#allocation8_spill] sm:$0xff] }
 0x2e7   :  { %1073 = vmatpush.msra.mxu3 %v3019_v0  ;;  %1180 = vmatpush.msrb.mxu1 %v3278_v25 }
 0x2e8   :  { %1094 = vmatpush.msrb.mxu0 %v2739_v31  ;;  %1215 = vmatpush.msrb.mxu2 %v2745_v46  ;;  %v3976_v31 = vld [vmem:[#allocation9_spill] sm:$0xff]  ;;  %v3977_v46 = vld [vmem:[#allocation12_spill] sm:$0xff] }
 0x2e9   :  { %1074 = vmatpush.msra.mxu3 %v3028_v54  ;;  %1181 = vmatpush.msrb.mxu1 %v3287_v37 }
 0x2ea   :  { %1095 = vmatpush.msrb.mxu0 %v2753_v35  ;;  %1216 = vmatpush.msrb.mxu2 %v2759_v10  ;;  %v3978_v35 = vld [vmem:[#allocation13_spill] sm:$0xff]  ;;  %v3979_v10 = vld [vmem:[#allocation14_spill] sm:$0xff] }
 0x2eb   :  { %1075 = vmatpush.msra.mxu3 %v3037_v19  ;;  %1182 = vmatpush.msrb.mxu1 %v3296_v32 }
 0x2ec   :  { %1096 = vmatpush.msrb.mxu0 %v2767_v39  ;;  %1217 = vmatpush.msrb.mxu2 %v2773_v7  ;;  %v3980_v39 = vld [vmem:[#allocation16_spill] sm:$0xff]  ;;  %v3981_v7 = vld [vmem:[#allocation18_spill] sm:$0xff] }
 0x2ed   :  { %1076 = vmatpush.msra.mxu3 %v3046_v57  ;;  %1183 = vmatpush.msrb.mxu1 %v3305_v60 }
 0x2ee   :  { %1097 = vmatpush.msrb.mxu0 %v3053_v4  ;;  %1218 = vmatpush.msrb.mxu2 %v2782_v43  ;;  %v3982_v43 = vld [vmem:[#allocation20_spill] sm:$0xff] }
 0x2ef   :  { %1077 = vmatpush.msra.mxu3 %v3060_v53  ;;  %1184 = vmatpush.msrb.mxu1 %v3066_v49 }
 0x2f0   :  { %1098 = vmatpush.msrb.mxu0 %v3072_v59  ;;  %1219 = vmatpush.msrb.mxu2 %v2791_v47  ;;  %v3983_v47 = vld [vmem:[#allocation23_spill] sm:$0xff] }
 0x2f1   :  { %1078 = vmatpush.msra.mxu3 %v3079_v44  ;;  %1185 = vmatpush.msrb.mxu1 %v3085_v55 }
 0x2f2   :  { %1099 = vmatpush.msrb.mxu0 %v3091_v38  ;;  %1220 = vmatpush.msrb.mxu2 %v3969_v36 }
 0x2f3   :  { %1079 = vmatpush.msra.mxu3 %v3970_v63  ;;  %1186 = vmatpush.msrb.mxu1 %v3971_v23 }
 0x2f4   :  { %1100 = vmatpush.msrb.mxu0 %v3972_v61  ;;  %1221 = vmatpush.msrb.mxu2 %v3973_v41 }
 0x2f5   :  { %1080 = vmatpush.msra.mxu3 %v3974_v27  ;;  %1187 = vmatpush.msrb.mxu1 %v3975_v50 }
 0x2f6   :  { %1101 = vmatpush.msrb.mxu0 %v3976_v31  ;;  %1222 = vmatpush.msrb.mxu2 %v3977_v46 }
 0x2f7   :  { %1081 = vmatpush.msra.mxu3 %v3978_v35  ;;  %1188 = vmatpush.msrb.mxu1 %v3979_v10 }
 0x2f8   :  { %1102 = vmatpush.msrb.mxu0 %v3980_v39  ;;  %1223 = vmatpush.msrb.mxu2 %v3981_v7 }
 0x2f9   :  { %1082 = vmatpush.msra.mxu3 %v3982_v43  ;;  %1189 = vmatpush.msrb.mxu1 %v3983_v47 }
 0x2fa   :  { %1103 = vmatpush.msrb.mxu0 %v3984_v34  ;;  %1224 = vmatpush.msrb.mxu2 %v3985_v3 }
 0x2fb   :  { %1083 = vmatpush.msra.mxu3 %v3986_v21  ;;  %1190 = vmatpush.msrb.mxu1 %v3987_v26 }
 0x2fc   :  { %1225 = vmatpush.msrb.mxu2 %v3989_v18 }
 0x2fd   :  { %1230 = vmatpush.msrb.mxu3 %v3988_v15 }
 0x2ff   :  { %1231 = vmatpush.msrb.mxu3 %v3990_v30 }
 0x301   :  { %1232 = vmatpush.msrb.mxu3 %v3991_v24 }
 0x303   :  { %1233 = vmatpush.msrb.mxu3 %v3992_v5 }
 0x305   :  { %1234 = vmatpush.msrb.mxu3 %v3993_v51 }
 0x307   :  { %1235 = vmatpush.msrb.mxu3 %v3994_v17 }
 0x309   :  { %1236 = vmatpush.msrb.mxu3 %v3995_v20  ;;  %v4005_v20 = vld [vmem:[#allocation30_spill] sm:$0xff] }
 0x30b   :  { %1237 = vmatpush.msrb.mxu3 %v3996_v16 }
 0x30d   :  { %1238 = vmatpush.msrb.mxu3 %v3997_v9 }
 0x30f   :  { %1239 = vmatpush.msrb.mxu3 %v3998_v12 }
 0x311   :  { %1240 = vmatpush.msrb.mxu3 %v3999_v6 }
 0x313   :  { %1241 = vmatpush.msrb.mxu3 %v4000_v29 }
 0x315   :  { %1242 = vmatpush.msrb.mxu3 %v4001_v11  ;;  %v1607_v11 = vld [vmem:[%s3689_s0 + $0x98] sm:$0xff] }
 0x317   :  { %1243 = vmatpush.msrb.mxu3 %v4002_v2 }
 0x319   :  { %1244 = vmatpush.msrb.mxu3 %v4003_v62 }
 0x31b   :  { %1245 = vmatpush.msrb.mxu3 %v4004_v28 }
 0x32b   :  { %v837_v2 = vpop.permute.xlu1 %836 }
 0x357   :  { %v863_v36 = vpop.f32.mrf.mxu0 }
 0x358   :  { %v926_v15 = vadd.f32 %v1604_v14, %v863_v36  ;;  %v883_v30 = vpop.f32.mrf.mxu1 }
 0x359   :  { %v927_v24 = vadd.f32 %v1605_v8, %v883_v30 }
 0x35a   :  { %v1608_v5 = vmul.f32 -1.442695, %v926_v15  ;;  %v1606_v15 = vld [vmem:[%s3689_s0 + $0x90] sm:$0xff] }
 0x35b   :  { %v1609_v51 = vmul.f32 -1.442695, %v927_v24 }
 0x35c   :  { %1712 = vpow2.f32 %v1608_v5  ;;  %v4006_v5 = vld [vmem:[#allocation45_spill] sm:$0xff] }
 0x35d   :  { %1714 = vpow2.f32 %v1609_v51  ;;  %v828_v17 = vpop.f32.mrf.mxu3 }
 0x35e   :  { %v829_v16 = vadd.f32 %v4005_v20, %v828_v17  ;;  %v903_v30 = vpop.f32.mrf.mxu2 }
 0x35f   :  { %v928_v20 = vadd.f32 %v1606_v15, %v903_v30 }
 0x360   :  { %1716 = vtanh.f32 %v829_v16 }
 0x362   :  { %v1713_v9 = vpop.eup %1712 }
 0x363   :  { %v1715_v12 = vpop.eup %1714  ;;  %v933_v6 = vadd.f32 1.0, %v1713_v9 }
 0x364   :  { %v952_v29 = vadd.f32 1.0, %v1715_v12 }
 0x365   :  { %1718 = vrcp.f32 %v933_v6  ;;  %v923_v62 = vpop.f32.mrf.mxu3  ;;  %v945_v26 = vand.u32 2147483648, %v933_v6  ;;  %vm939_vm5 = vweird.f32 %v933_v6 }
 0x366   :  { %v1717_v14 = vpop.eup %1716  ;;  %1720 = vrcp.f32 %v952_v29  ;;  %v929_v8 = vadd.f32 %v1607_v11, %v923_v62  ;;  %v1611_v11 = vld [vmem:[%s3690_s1 + $0x20] sm:$0xff]  ;;  %v962_v15 = vand.u32 2147483647, %v952_v29  ;;  %vm958_vm6 = vweird.f32 %v952_v29 }
 0x367   :  { %v839_v36 = vmul.f32 %v1717_v14, %v837_v2  ;;  %v964_v2 = vand.u32 2147483648, %v952_v29  ;;  %v943_v14 = vand.u32 2147483647, %v933_v6  ;;  %1018 = vperm.xlu2 %1640, %v1611_v11  }
 0x368   :  { %v1610_v24 = vmul.f32 -1.442695, %v929_v8  ;;  %vm963_vm10 = vcmp.eq.f32.partialorder %v962_v15, 8.507059e+37  ;;  %v1867_v15 = vld [vmem:[%s3686_s2 + $0x1e0] sm:$0xff] }
 0x369   :  { %v3367_v51 = vadd.f32 %v839_v36, %v4006_v5  ;;  %v946_v5 = vor.u32 1.1754944e-38, %v945_v26  ;;  %vm944_vm9 = vcmp.eq.f32.partialorder %v943_v14, 8.507059e+37 }
 0x36a   :  { %1722 = vpow2.f32 %v1610_v24 }
 0x36b   :  { %4007 = vst [vmem:[#allocation32_spill] sm:$0xff] %v3367_v51  ;;  %v1719_v17 = vpop.eup %1718  ;;  %1724 = vtanh.f32 %v928_v20 }
 0x36c   :  { %v1721_v16 = vpop.eup %1720  ;;  %v935_v9 = vmul.f32 %v1719_v17, %v933_v6  ;;  %vm940_vm3 = vweird.f32 %v1719_v17 }
 0x36d   :  { %v954_v12 = vmul.f32 %v1721_v16, %v952_v29  ;;  %vm959_vm4 = vweird.f32 %v1721_v16  ;;  %vm941_vm7 = vmor %vm939_vm5, %vm940_vm3 }
 0x36e   :  { %v936_v28 = vsub.f32 1.0, %v935_v9  ;;  %vm960_vm8 = vmor %vm958_vm6, %vm959_vm4  ;;  %v965_v9 = vor.u32 1.1754944e-38, %v964_v2 }
 0x36f   :  { %v955_v18 = vsub.f32 1.0, %v954_v12 }
 0x370   :  { %v937_v62 = vmul.f32 %v1719_v17, %v936_v28  ;;  %v1723_v8 = vpop.eup %1722 }
 0x371   :  { %v956_v36 = vmul.f32 %v1721_v16, %v955_v18  ;;  %v972_v24 = vadd.f32 1.0, %v1723_v8  ;;  %v1725_v28 = vpop.eup %1724 }
 0x372   :  { %v938_v30 = vadd.f32 %v1719_v17, %v937_v62 }
 0x373   :  { %v957_v20 = vadd.f32 %v1721_v16, %v956_v36  ;;  %1726 = vrcp.f32 %v972_v24  ;;  %v984_v26 = vand.u32 2147483648, %v972_v24  ;;  %vm978_vm13 = vweird.f32 %v972_v24 }
 0x374   :  { %v942_v12 = vsel %vm941_vm7, %v1719_v17, %v938_v30  ;;  %v982_v17 = vand.u32 2147483647, %v972_v24  ;;  %v3412_v30 = vld [vmem:[%s3686_s2 + $0x198] sm:$0xff] }
 0x375   :  { %v947_v51 = vsel %vm944_vm9, %v946_v5, %v942_v12  ;;  %v961_v21 = vsel %vm960_vm8, %v1721_v16, %v957_v20  ;;  %v985_v16 = vor.u32 1.1754944e-38, %v984_v26  ;;  %v1874_v5 = vld [vmem:[%s3686_s2 + $0x180] sm:$0xff]  ;;  %v3431_v20 = vld [vmem:[%s3686_s2 + $0x158] sm:$0xff] }
 0x376   :  { %v966_v11 = vsel %vm963_vm10, %v965_v9, %v961_v21  ;;  %v989_v18 = vmul.f32 %v1725_v28, %v947_v51  ;;  %vm983_vm15 = vcmp.eq.f32.partialorder %v982_v17, 8.507059e+37  ;;  %v1876_v9 = vld [vmem:[%s3686_s2 + $0x160] sm:$0xff]  ;;  %v3442_v12 = vld [vmem:[%s3686_s2 + $0x138] sm:$0xff] }
 0x377   :  { %v988_v3 = vmul.f32 %v966_v11, %v3250_v22  ;;  %v1878_v28 = vld [vmem:[%s3686_s2 + $0x140] sm:$0xff]  ;;  %v3453_v11 = vld [vmem:[%s3686_s2 + $0x118] sm:$0xff] }
 0x378   :  { %v1884_v26 = vld [vmem:[%s3686_s2 + $0xc0] sm:$0xff] }
 0x379   :  { %v1727_v62 = vpop.eup %1726  ;;  %v3373_v6 = vadd.f32 %v989_v18, %v988_v3  ;;  %v3380_v3 = vld [vmem:[%s3686_s2 + $0x1f8] sm:$0xff]  ;;  %v1880_v18 = vld [vmem:[%s3686_s2 + $0x120] sm:$0xff] }
 0x37a   :  { %v974_v29 = vmul.f32 %v1727_v62, %v972_v24  ;;  %vm979_vm11 = vweird.f32 %v1727_v62  ;;  %v3420_v24 = vld [vmem:[%s3686_s2 + $0x178] sm:$0xff]  ;;  %v4009_v17 = vld [vmem:[#allocation44_spill] sm:$0xff] }
 0x37b   :  { %1728 = vtanh.f32 %v3373_v6  ;;  %vm980_vm14 = vmor %vm978_vm13, %vm979_vm11 }
 0x37c   :  { %v975_v8 = vsub.f32 1.0, %v974_v29  ;;  %v1882_v29 = vld [vmem:[%s3686_s2 + $0x100] sm:$0xff] }
 0x37e   :  { %v976_v2 = vmul.f32 %v1727_v62, %v975_v8  ;;  %v1883_v8 = vld [vmem:[%s3686_s2 + $0xe0] sm:$0xff] }
 0x380   :  { %v977_v14 = vadd.f32 %v1727_v62, %v976_v2  ;;  %v1885_v2 = vld [vmem:[%s3686_s2 + $0xa0] sm:$0xff] }
 0x381   :  { %v1729_v21 = vpop.eup %1728 }
 0x382   :  { %v981_v36 = vsel %vm980_vm14, %v1727_v62, %v977_v14  ;;  %v3464_v62 = vld [vmem:[%s3686_s2 + $0xf8] sm:$0xff]  ;;  %v4010_v14 = vld [vmem:[#allocation34_spill] sm:$0xff] }
 0x383   :  { %v986_v51 = vsel %vm983_vm15, %v985_v16, %v981_v36  ;;  %v4011_v16 = vld [vmem:[#allocation28_spill] sm:$0xff]  ;;  %v1888_v36 = vld [vmem:[%s3686_s2 + $0x1a8] sm:$0xff] }
 0x384   :  { %v992_v22 = vmul.f32 %v1729_v21, %v986_v51  ;;  %v1889_v21 = vld [vmem:[%s3686_s2 + $0x188] sm:$0xff] }
 0x385   :  { %v1890_v51 = vld [vmem:[%s3686_s2 + $0x168] sm:$0xff] }
 0x386   :  { %1009 = vmatmul.f32.vlgmr.msra.gmra.mxu0 %v992_v22  ;;  %1044 = vmatmul.f32.vlgmr.msra.gmra.mxu1 %v992_v22 }
 0x387   :  { %1064 = vmatmul.f32.vlgmr.msra.gmra.mxu2 %v992_v22  ;;  %1084 = vmatmul.f32.vlgmr.msra.gmra.mxu3 %v992_v22 }
 0x388   :  { %1250 = vmatpush.msra.mxu0 %v2948_v52  ;;  %1270 = vmatpush.msra.mxu1 %v3380_v3  ;;  %v3391_v52 = vld [vmem:[%s3686_s2 + $0x1d8] sm:$0xff] }
 0x389   :  { %1357 = vmatpush.msra.mxu2 %v2955_v13  ;;  %1392 = vmatpush.msra.mxu3 %v1867_v15  ;;  %v1869_v13 = vld [vmem:[%s3686_s2 + $0x1c0] sm:$0xff]  ;;  %v1892_v15 = vld [vmem:[%s3686_s2 + $0x128] sm:$0xff] }
 0x38a   :  { %1251 = vmatpush.msra.mxu0 %v2962_v48  ;;  %1271 = vmatpush.msra.mxu1 %v3391_v52  ;;  %v3402_v48 = vld [vmem:[%s3686_s2 + $0x1b8] sm:$0xff] }
 0x38b   :  { %1358 = vmatpush.msra.mxu2 %v2969_v42  ;;  %1393 = vmatpush.msra.mxu3 %v1869_v13  ;;  %v1871_v42 = vld [vmem:[%s3686_s2 + $0x1a0] sm:$0xff]  ;;  %v1893_v13 = vld [vmem:[%s3686_s2 + $0x108] sm:$0xff] }
 0x38c   :  { %1252 = vmatpush.msra.mxu0 %v2976_v40  ;;  %1272 = vmatpush.msra.mxu1 %v3402_v48 }
 0x38d   :  { %1359 = vmatpush.msra.mxu2 %v2983_v45  ;;  %1394 = vmatpush.msra.mxu3 %v1871_v42  ;;  %v1894_v42 = vld [vmem:[%s3686_s2 + $0xe8] sm:$0xff] }
 0x38e   :  { %1104 = vmatmul.f32.vlgmr.msrb.gmra.mxu0 %v992_v22  ;;  %1273 = vmatpush.msra.mxu1 %v3412_v30  ;;  %v1891_v22 = vld [vmem:[%s3686_s2 + $0x148] sm:$0xff] }
 0x38f   :  { %1253 = vmatpush.msra.mxu0 %v2991_v56  ;;  %1360 = vmatpush.msra.mxu2 %v2997_v58 }
 0x390   :  { %1274 = vmatpush.msra.mxu1 %v3420_v24  ;;  %1395 = vmatpush.msra.mxu3 %v1874_v5  ;;  %v1895_v5 = vld [vmem:[%s3686_s2 + $0xc8] sm:$0xff] }
 0x391   :  { %1254 = vmatpush.msra.mxu0 %v3005_v33  ;;  %1361 = vmatpush.msra.mxu2 %v3011_v1 }
 0x392   :  { %1275 = vmatpush.msra.mxu1 %v3431_v20  ;;  %1396 = vmatpush.msra.mxu3 %v1876_v9  ;;  %v1896_v9 = vld [vmem:[%s3686_s2 + $0xa8] sm:$0xff] }
 0x393   :  { %1255 = vmatpush.msra.mxu0 %v3019_v0  ;;  %1362 = vmatpush.msra.mxu2 %v3278_v25 }
 0x394   :  { %1276 = vmatpush.msra.mxu1 %v3442_v12  ;;  %1397 = vmatpush.msra.mxu3 %v1878_v28  ;;  %v1897_v28 = vld [vmem:[%s3686_s2 + $0x88] sm:$0xff] }
 0x395   :  { %1256 = vmatpush.msra.mxu0 %v3028_v54  ;;  %1363 = vmatpush.msra.mxu2 %v3287_v37 }
 0x396   :  { %1277 = vmatpush.msra.mxu1 %v3453_v11  ;;  %1398 = vmatpush.msra.mxu3 %v1880_v18  ;;  %v1898_v18 = vld [vmem:[%s3686_s2 + $0x68] sm:$0xff] }
 0x397   :  { %1257 = vmatpush.msra.mxu0 %v3037_v19  ;;  %1364 = vmatpush.msra.mxu2 %v3296_v32 }
 0x398   :  { %1278 = vmatpush.msra.mxu1 %v3464_v62  ;;  %1399 = vmatpush.msra.mxu3 %v1882_v29  ;;  %v1899_v29 = vld [vmem:[%s3686_s2 + $0x48] sm:$0xff] }
 0x399   :  { %1258 = vmatpush.msra.mxu0 %v3046_v57  ;;  %1365 = vmatpush.msra.mxu2 %v3305_v60 }
 0x39a   :  { %1279 = vmatpush.msra.mxu1 %v3053_v4  ;;  %1400 = vmatpush.msra.mxu3 %v1883_v8  ;;  %v1900_v8 = vld [vmem:[%s3686_s2 + $0x28] sm:$0xff] }
 0x39b   :  { %1259 = vmatpush.msra.mxu0 %v3060_v53  ;;  %1366 = vmatpush.msra.mxu2 %v3066_v49 }
 0x39c   :  { %1280 = vmatpush.msra.mxu1 %v3072_v59  ;;  %1401 = vmatpush.msra.mxu3 %v1884_v26  ;;  %v4012_v26 = vld [vmem:[#allocation39_spill] sm:$0xff] }
 0x39d   :  { %1260 = vmatpush.msra.mxu0 %v3079_v44  ;;  %1367 = vmatpush.msra.mxu2 %v3085_v55 }
 0x39e   :  { %1281 = vmatpush.msra.mxu1 %v3091_v38  ;;  %1402 = vmatpush.msra.mxu3 %v1885_v2  ;;  %v1612_v2 = vld [vmem:[%s3689_s0 + $0xa0] sm:$0xff] }
 0x39f   :  { %1261 = vmatpush.msra.mxu0 %v3970_v63  ;;  %1368 = vmatpush.msra.mxu2 %v3971_v23 }
 0x3a0   :  { %1282 = vmatpush.msra.mxu1 %v3972_v61  ;;  %1403 = vmatpush.msra.mxu3 %v3973_v41  ;;  %v4008_v41 = vld [vmem:[#allocation29_spill] sm:$0xff] }
 0x3a1   :  { %1262 = vmatpush.msra.mxu0 %v3974_v27  ;;  %1369 = vmatpush.msra.mxu2 %v3975_v50 }
 0x3a2   :  { %1283 = vmatpush.msra.mxu1 %v3976_v31  ;;  %1404 = vmatpush.msra.mxu3 %v3977_v46  ;;  %v1886_v46 = vld [vmem:[%s3686_s2 + $0x1e8] sm:$0xff] }
 0x3a3   :  { %1263 = vmatpush.msra.mxu0 %v3978_v35  ;;  %1370 = vmatpush.msra.mxu2 %v3979_v10 }
 0x3a4   :  { %1284 = vmatpush.msra.mxu1 %v3980_v39  ;;  %1405 = vmatpush.msra.mxu3 %v3981_v7  ;;  %v1887_v7 = vld [vmem:[%s3686_s2 + $0x1c8] sm:$0xff] }
 0x3a5   :  { %1264 = vmatpush.msra.mxu0 %v3982_v43  ;;  %1371 = vmatpush.msra.mxu2 %v3983_v47 }
 0x3a6   :  { %1285 = vmatpush.msra.mxu1 %v3984_v34  ;;  %1406 = vmatpush.msra.mxu3 %v4008_v41 }
 0x3a7   :  { %1265 = vmatpush.msra.mxu0 %v4009_v17  ;;  %1372 = vmatpush.msra.mxu2 %v4010_v14 }
 0x3a8   :  { %1407 = vmatpush.msra.mxu3 %v4011_v16  ;;  %v3559_v16 = vld [vmem:[%s3688_s4] ss:$0 sm:$0xff] }
 0x3a9   :  { %1412 = vmatpush.msrb.mxu0 %v1886_v46  ;;  %4013 = vst [vmem:[#allocation33_spill] sm:$0xff] %v3559_v16 }
 0x3ab   :  { %1413 = vmatpush.msrb.mxu0 %v1887_v7 }
 0x3ad   :  { %1414 = vmatpush.msrb.mxu0 %v1888_v36 }
 0x3af   :  { %1415 = vmatpush.msrb.mxu0 %v1889_v21 }
 0x3b1   :  { %1416 = vmatpush.msrb.mxu0 %v1890_v51  ;;  %v1613_v51 = vld [vmem:[%s3689_s0 + $0xa8] sm:$0xff] }
 0x3b3   :  { %1417 = vmatpush.msrb.mxu0 %v1891_v22  ;;  %v1615_v22 = vld [vmem:[%s3689_s0 + $0xb8] sm:$0xff] }
 0x3b5   :  { %1418 = vmatpush.msrb.mxu0 %v1892_v15 }
 0x3b7   :  { %1419 = vmatpush.msrb.mxu0 %v1893_v13 }
 0x3b9   :  { %1420 = vmatpush.msrb.mxu0 %v1894_v42 }
 0x3bb   :  { %1421 = vmatpush.msrb.mxu0 %v1895_v5 }
 0x3bd   :  { %1422 = vmatpush.msrb.mxu0 %v1896_v9 }
 0x3bf   :  { %1423 = vmatpush.msrb.mxu0 %v1897_v28 }
 0x3c1   :  { %1424 = vmatpush.msrb.mxu0 %v1898_v18  ;;  %v1019_v13 = vpop.permute.xlu2 %1018 }
 0x3c3   :  { %1425 = vmatpush.msrb.mxu0 %v1899_v29 }
 0x3c5   :  { %1426 = vmatpush.msrb.mxu0 %v1900_v8 }
 0x3c7   :  { %1427 = vmatpush.msrb.mxu0 %v4012_v26 }
 0x403   :  { %v1010_v41 = vpop.f32.mrf.mxu0  ;;  %v1045_v46 = vpop.f32.mrf.mxu1 }
 0x404   :  { %v1011_v7 = vadd.f32 %v3559_v16, %v1010_v41  ;;  %v1108_v36 = vadd.f32 %v1612_v2, %v1045_v46  ;;  %v4014_v41 = vld [vmem:[#allocation32_spill] sm:$0xff] }
 0x406   :  { %1730 = vtanh.f32 %v1011_v7  ;;  %v1616_v21 = vmul.f32 -1.442695, %v1108_v36 }
 0x408   :  { %1732 = vpow2.f32 %v1616_v21 }
 0x40a   :  { %v1065_v15 = vpop.f32.mrf.mxu2 }
 0x40b   :  { %v1109_v42 = vadd.f32 %v1613_v51, %v1065_v15  ;;  %v1105_v5 = vpop.f32.mrf.mxu0  ;;  %v1614_v15 = vld [vmem:[%s3689_s0 + $0xb0] sm:$0xff] }
 0x40c   :  { %v1731_v9 = vpop.eup %1730  ;;  %v1111_v28 = vadd.f32 %v1615_v22, %v1105_v5 }
 0x40d   :  { %v1617_v18 = vmul.f32 -1.442695, %v1109_v42  ;;  %v1021_v29 = vmul.f32 %v1731_v9, %v1019_v13  ;;  %v1085_v13 = vpop.f32.mrf.mxu3 }
 0x40e   :  { %v1733_v8 = vpop.eup %1732  ;;  %v1618_v26 = vmul.f32 -1.442695, %v1111_v28  ;;  %v1110_v9 = vadd.f32 %v1614_v15, %v1085_v13  ;;  %v1619_v28 = vld [vmem:[%s3690_s1 + $0x28] sm:$0xff] }
 0x40f   :  { %v1115_v2 = vadd.f32 1.0, %v1733_v8  ;;  %1734 = vpow2.f32 %v1617_v18  ;;  %v3569_v46 = vadd.f32 %v1021_v29, %v4014_v41  ;;  %1200 = vperm.xlu2 %1640, %v1619_v28  }
 0x410   :  { %1736 = vpow2.f32 %v1618_v26 }
 0x411   :  { %4015 = vst [vmem:[#allocation10_spill] sm:$0xff] %v3569_v46  ;;  %1738 = vrcp.f32 %v1115_v2  ;;  %v1127_v26 = vand.u32 2147483648, %v1115_v2  ;;  %vm1121_vm1 = vweird.f32 %v1115_v2 }
 0x413   :  { %v1128_v46 = vor.u32 1.1754944e-38, %v1127_v26 }
 0x415   :  { %v1735_v7 = vpop.eup %1734 }
 0x416   :  { %v1737_v36 = vpop.eup %1736  ;;  %v1134_v21 = vadd.f32 1.0, %v1735_v7 }
 0x417   :  { %v1739_v16 = vpop.eup %1738  ;;  %v1154_v14 = vadd.f32 1.0, %v1737_v36  ;;  %v1125_v36 = vand.u32 2147483647, %v1115_v2 }
 0x418   :  { %v1117_v51 = vmul.f32 %v1739_v16, %v1115_v2  ;;  %1740 = vrcp.f32 %v1134_v21  ;;  %vm1122_vm0 = vweird.f32 %v1739_v16  ;;  %v1144_v13 = vand.u32 2147483647, %v1134_v21 }
 0x419   :  { %1742 = vrcp.f32 %v1154_v14  ;;  %vm1123_vm2 = vmor %vm1121_vm1, %vm1122_vm0  ;;  %vm1140_vm4 = vweird.f32 %v1134_v21  ;;  %vm1126_vm5 = vcmp.eq.f32.partialorder %v1125_v36, 8.507059e+37  ;;  %vm1160_vm9 = vweird.f32 %v1154_v14 }
 0x41a   :  { %v1118_v22 = vsub.f32 1.0, %v1117_v51  ;;  %v1146_v51 = vand.u32 2147483648, %v1134_v21  ;;  %1744 = vtanh.f32 %v1110_v9  ;;  %vm1145_vm7 = vcmp.eq.f32.partialorder %v1144_v13, 8.507059e+37 }
 0x41c   :  { %v1119_v42 = vmul.f32 %v1739_v16, %v1118_v22 }
 0x41e   :  { %v1741_v5 = vpop.eup %1740  ;;  %v1120_v8 = vadd.f32 %v1739_v16, %v1119_v42  ;;  %v1147_v42 = vor.u32 1.1754944e-38, %v1146_v51 }
 0x41f   :  { %v1743_v18 = vpop.eup %1742  ;;  %v1136_v29 = vmul.f32 %v1741_v5, %v1134_v21  ;;  %vm1141_vm3 = vweird.f32 %v1741_v5  ;;  %v1166_v21 = vand.u32 2147483648, %v1154_v14 }
 0x420   :  { %v1156_v41 = vmul.f32 %v1743_v18, %v1154_v14  ;;  %v1124_v15 = vsel %vm1123_vm2, %v1739_v16, %v1120_v8  ;;  %vm1142_vm6 = vmor %vm1140_vm4, %vm1141_vm3  ;;  %vm1161_vm8 = vweird.f32 %v1743_v18  ;;  %v1164_v8 = vand.u32 2147483647, %v1154_v14  ;;  %v1627_v14 = vld [vmem:[%s3690_s1 + $0x30] sm:$0xff] }
 0x421   :  { %v1137_v7 = vsub.f32 1.0, %v1136_v29  ;;  %v1129_v28 = vsel %vm1126_vm5, %v1128_v46, %v1124_v15  ;;  %v1745_v29 = vpop.eup %1744  ;;  %vm1162_vm10 = vmor %vm1160_vm9, %vm1161_vm8  ;;  %v1167_v46 = vor.u32 1.1754944e-38, %v1166_v21  ;;  %1382 = vperm.xlu0 %1638, %v1627_v14  }
 0x422   :  { %v1157_v17 = vsub.f32 1.0, %v1156_v41  ;;  %v1171_v9 = vmul.f32 %v1745_v29, %v1129_v28  ;;  %vm1165_vm11 = vcmp.eq.f32.partialorder %v1164_v8, 8.507059e+37 }
 0x423   :  { %v1138_v22 = vmul.f32 %v1741_v5, %v1137_v7 }
 0x424   :  { %v1158_v2 = vmul.f32 %v1743_v18, %v1157_v17  ;;  %v1905_v17 = vld [vmem:[%s3687_s3 + $0x70] sm:$0xff] }
 0x425   :  { %v1139_v34 = vadd.f32 %v1741_v5, %v1138_v22 }
 0x426   :  { %v1159_v16 = vadd.f32 %v1743_v18, %v1158_v2 }
 0x427   :  { %v1143_v47 = vsel %vm1142_vm6, %v1741_v5, %v1139_v34 }
 0x428   :  { %v1148_v43 = vsel %vm1145_vm7, %v1147_v42, %v1143_v47  ;;  %v1163_v26 = vsel %vm1162_vm10, %v1743_v18, %v1159_v16 }
 0x429   :  { %v1170_v39 = vmul.f32 %v1148_v43, %v3373_v6  ;;  %v1168_v5 = vsel %vm1165_vm11, %v1167_v46, %v1163_v26  ;;  %v1903_v43 = vld [vmem:[%s3687_s3 + $0x78] sm:$0xff]  ;;  %v1904_v6 = vld [vmem:[%s3686_s2 + $0x1d0] sm:$0xff] }
 0x42b   :  { %v3578_v7 = vadd.f32 %v1171_v9, %v1170_v39  ;;  %v1902_v39 = vld [vmem:[%s3686_s2 + $0x1f0] sm:$0xff] }
 0x42d   :  { %1746 = vtanh.f32 %v3578_v7 }
 0x433   :  { %v1747_v34 = vpop.eup %1746 }
 0x434   :  { %v1174_v47 = vmul.f32 %v1747_v34, %v1168_v5 }
 0x436   :  { %1191 = vmatmul.f32.vlgmr.msrb.gmra.mxu1 %v1174_v47  ;;  %1226 = vmatmul.f32.vlgmr.msrb.gmra.mxu2 %v1174_v47 }
 0x437   :  { %1246 = vmatmul.f32.vlgmr.msrb.gmra.mxu3 %v1174_v47  ;;  %1266 = vmatmul.f32.vlgmr.msra.gmra.mxu0 %v1174_v47 }
 0x438   :  { %1432 = vmatpush.msrb.mxu1 %v1902_v39  ;;  %1452 = vmatpush.msrb.mxu2 %v3380_v3 }
 0x439   :  { %1539 = vmatpush.msrb.mxu3 %v1903_v43 }
 0x43a   :  { %1433 = vmatpush.msrb.mxu1 %v1904_v6  ;;  %1453 = vmatpush.msrb.mxu2 %v3391_v52 }
 0x43b   :  { %1540 = vmatpush.msrb.mxu3 %v1905_v17 }
 0x43c   :  { %1434 = vmatpush.msrb.mxu1 %v2976_v40  ;;  %1454 = vmatpush.msrb.mxu2 %v3402_v48  ;;  %v4016_v40 = vld [vmem:[#allocation16_spill] sm:$0xff] }
 0x43d   :  { %1541 = vmatpush.msrb.mxu3 %v2983_v45  ;;  %v4017_v45 = vld [vmem:[#allocation20_spill] sm:$0xff] }
 0x43e   :  { %1286 = vmatmul.f32.vlgmr.msra.gmra.mxu1 %v1174_v47  ;;  %1455 = vmatpush.msrb.mxu2 %v3412_v30  ;;  %v1622_v30 = vld [vmem:[%s3689_s0 + $0xd0] sm:$0xff] }
 0x43f   :  { %1435 = vmatpush.msrb.mxu1 %v2991_v56  ;;  %1542 = vmatpush.msrb.mxu3 %v2997_v58  ;;  %v4018_v56 = vld [vmem:[#allocation23_spill] sm:$0xff]  ;;  %v4019_v58 = vld [vmem:[#allocation26_spill] sm:$0xff] }
 0x440   :  { %1456 = vmatpush.msrb.mxu2 %v3420_v24 }
 0x441   :  { %1436 = vmatpush.msrb.mxu1 %v3005_v33  ;;  %1543 = vmatpush.msrb.mxu3 %v3011_v1  ;;  %v4020_v33 = vld [vmem:[#allocation44_spill] sm:$0xff]  ;;  %v4021_v1 = vld [vmem:[#allocation34_spill] sm:$0xff] }
 0x442   :  { %1457 = vmatpush.msrb.mxu2 %v3431_v20 }
 0x443   :  { %1437 = vmatpush.msrb.mxu1 %v3019_v0  ;;  %1544 = vmatpush.msrb.mxu3 %v3278_v25 }
 0x444   :  { %1458 = vmatpush.msrb.mxu2 %v3442_v12 }
 0x445   :  { %1438 = vmatpush.msrb.mxu1 %v3028_v54  ;;  %1545 = vmatpush.msrb.mxu3 %v3287_v37  ;;  %v4022_v54 = vld [vmem:[#allocation33_spill] sm:$0xff] }
 0x446   :  { %1459 = vmatpush.msrb.mxu2 %v3453_v11 }
 0x447   :  { %1439 = vmatpush.msrb.mxu1 %v3037_v19  ;;  %1546 = vmatpush.msrb.mxu3 %v3296_v32 }
 0x448   :  { %1460 = vmatpush.msrb.mxu2 %v3464_v62 }
 0x449   :  { %1440 = vmatpush.msrb.mxu1 %v3046_v57  ;;  %1547 = vmatpush.msrb.mxu3 %v3305_v60  ;;  %v1620_v57 = vld [vmem:[%s3689_s0 + $0xc0] sm:$0xff] }
 0x44a   :  { %1461 = vmatpush.msrb.mxu2 %v3053_v4  ;;  %v1621_v4 = vld [vmem:[%s3689_s0 + $0xc8] sm:$0xff] }
 0x44b   :  { %1441 = vmatpush.msrb.mxu1 %v3060_v53  ;;  %1548 = vmatpush.msrb.mxu3 %v3066_v49  ;;  %v1623_v49 = vld [vmem:[%s3689_s0 + $0xd8] sm:$0xff] }
 0x44c   :  { %1462 = vmatpush.msrb.mxu2 %v3072_v59 }
 0x44d   :  { %1442 = vmatpush.msrb.mxu1 %v3079_v44  ;;  %1549 = vmatpush.msrb.mxu3 %v3085_v55 }
 0x44e   :  { %1463 = vmatpush.msrb.mxu2 %v3091_v38 }
 0x44f   :  { %1443 = vmatpush.msrb.mxu1 %v3970_v63  ;;  %1550 = vmatpush.msrb.mxu3 %v3971_v23 }
 0x450   :  { %1464 = vmatpush.msrb.mxu2 %v3972_v61 }
 0x451   :  { %1444 = vmatpush.msrb.mxu1 %v3974_v27  ;;  %1551 = vmatpush.msrb.mxu3 %v3975_v50  ;;  %v4023_v27 = vld [vmem:[#allocation10_spill] sm:$0xff] }
 0x452   :  { %1465 = vmatpush.msrb.mxu2 %v3976_v31 }
 0x453   :  { %1445 = vmatpush.msrb.mxu1 %v3978_v35  ;;  %1552 = vmatpush.msrb.mxu3 %v3979_v10 }
 0x454   :  { %1466 = vmatpush.msrb.mxu2 %v4016_v40 }
 0x455   :  { %1446 = vmatpush.msrb.mxu1 %v4017_v45  ;;  %1553 = vmatpush.msrb.mxu3 %v4018_v56 }
 0x456   :  { %1467 = vmatpush.msrb.mxu2 %v4019_v58 }
 0x457   :  { %1447 = vmatpush.msrb.mxu1 %v4020_v33  ;;  %1554 = vmatpush.msrb.mxu3 %v4021_v1 }
 0x469   :  { %v1201_v55 = vpop.permute.xlu2 %1200 }
 0x4b3   :  { %v1192_v0 = vpop.f32.mrf.mxu1 }
 0x4b4   :  { %v1193_v19 = vadd.f32 %v4022_v54, %v1192_v0  ;;  %v1267_v24 = vpop.f32.mrf.mxu0 }
 0x4b5   :  { %v1292_v12 = vadd.f32 %v1622_v30, %v1267_v24  ;;  %v1635_v30 = vld [vmem:[%s3690_s1 + $0x38] sm:$0xff] }
 0x4b6   :  { %1748 = vtanh.f32 %v1193_v19  ;;  %1564 = vperm.xlu1 %1639, %v1635_v30  }
 0x4b9   :  { %v1227_v53 = vpop.f32.mrf.mxu2 }
 0x4ba   :  { %v1290_v59 = vadd.f32 %v1620_v57, %v1227_v53  ;;  %v1247_v44 = vpop.f32.mrf.mxu3 }
 0x4bb   :  { %v1291_v38 = vadd.f32 %v1621_v4, %v1247_v44  ;;  %v1287_v25 = vpop.f32.mrf.mxu1 }
 0x4bc   :  { %v1749_v37 = vpop.eup %1748  ;;  %v1624_v32 = vmul.f32 -1.442695, %v1290_v59  ;;  %v1293_v60 = vadd.f32 %v1623_v49, %v1287_v25  ;;  %v1628_v59 = vld [vmem:[%s3689_s0 + $0xe0] sm:$0xff] }
 0x4bd   :  { %v1625_v63 = vmul.f32 -1.442695, %v1291_v38  ;;  %v1203_v23 = vmul.f32 %v1749_v37, %v1201_v55 }
 0x4be   :  { %1750 = vpow2.f32 %v1624_v32  ;;  %v1626_v61 = vmul.f32 -1.442695, %v1293_v60 }
 0x4bf   :  { %1752 = vpow2.f32 %v1625_v63  ;;  %v3648_v50 = vadd.f32 %v1203_v23, %v4023_v27  ;;  %v1631_v63 = vld [vmem:[%s3689_s0 + $0xf8] sm:$0xff]  ;;  %v1383_v23 = vpop.permute.xlu0 %1382 }
 0x4c0   :  { %1754 = vpow2.f32 %v1626_v61 }
 0x4c4   :  { %v1751_v31 = vpop.eup %1750 }
 0x4c5   :  { %v1753_v35 = vpop.eup %1752  ;;  %v1297_v10 = vadd.f32 1.0, %v1751_v31 }
 0x4c6   :  { %v1755_v3 = vpop.eup %1754  ;;  %v1316_v52 = vadd.f32 1.0, %v1753_v35 }
 0x4c7   :  { %1756 = vrcp.f32 %v1297_v10  ;;  %v1336_v48 = vadd.f32 1.0, %v1755_v3  ;;  %v1307_v51 = vand.u32 2147483647, %v1297_v10  ;;  %v1309_v22 = vand.u32 2147483648, %v1297_v10 }
 0x4c8   :  { %1758 = vrcp.f32 %v1316_v52  ;;  %v1328_v42 = vand.u32 2147483648, %v1316_v52  ;;  %v1326_v2 = vand.u32 2147483647, %v1316_v52  ;;  %vm1303_vm15 = vweird.f32 %v1297_v10 }
 0x4c9   :  { %1760 = vrcp.f32 %v1336_v48  ;;  %v1310_v21 = vor.u32 1.1754944e-38, %v1309_v22  ;;  %vm1322_vm1 = vweird.f32 %v1316_v52  ;;  %vm1308_vm2 = vcmp.eq.f32.partialorder %v1307_v51, 8.507059e+37 }
 0x4ca   :  { %1762 = vtanh.f32 %v1292_v12  ;;  %v1329_v46 = vor.u32 1.1754944e-38, %v1328_v42  ;;  %vm1327_vm4 = vcmp.eq.f32.partialorder %v1326_v2, 8.507059e+37  ;;  %v1348_v56 = vand.u32 2147483648, %v1336_v48  ;;  %v1630_v12 = vld [vmem:[%s3689_s0 + $0xf0] sm:$0xff] }
 0x4cb   :  { %vm1342_vm6 = vweird.f32 %v1336_v48  ;;  %v1346_v58 = vand.u32 2147483647, %v1336_v48 }
 0x4cc   :  { %v1349_v1 = vor.u32 1.1754944e-38, %v1348_v56 }
 0x4cd   :  { %v1757_v20 = vpop.eup %1756  ;;  %vm1347_vm8 = vcmp.eq.f32.partialorder %v1346_v58, 8.507059e+37 }
 0x4ce   :  { %v1759_v11 = vpop.eup %1758  ;;  %v1299_v62 = vmul.f32 %v1757_v20, %v1297_v10  ;;  %vm1304_vm13 = vweird.f32 %v1757_v20 }
 0x4cf   :  { %v1318_v18 = vmul.f32 %v1759_v11, %v1316_v52  ;;  %v1761_v36 = vpop.eup %1760  ;;  %vm1323_vm14 = vweird.f32 %v1759_v11  ;;  %vm1305_vm0 = vmor %vm1303_vm15, %vm1304_vm13 }
 0x4d0   :  { %v1300_v41 = vsub.f32 1.0, %v1299_v62  ;;  %v1338_v28 = vmul.f32 %v1761_v36, %v1336_v48  ;;  %vm1324_vm3 = vmor %vm1322_vm1, %vm1323_vm14  ;;  %v1763_v34 = vpop.eup %1762  ;;  %vm1343_vm5 = vweird.f32 %v1761_v36 }
 0x4d1   :  { %v1319_v15 = vsub.f32 1.0, %v1318_v18  ;;  %vm1344_vm7 = vmor %vm1342_vm6, %vm1343_vm5 }
 0x4d2   :  { %v1301_v13 = vmul.f32 %v1757_v20, %v1300_v41  ;;  %v1339_v16 = vsub.f32 1.0, %v1338_v28 }
 0x4d3   :  { %v1320_v29 = vmul.f32 %v1759_v11, %v1319_v15 }
 0x4d4   :  { %v1302_v9 = vadd.f32 %v1757_v20, %v1301_v13  ;;  %v1340_v6 = vmul.f32 %v1761_v36, %v1339_v16 }
 0x4d5   :  { %v1321_v8 = vadd.f32 %v1759_v11, %v1320_v29 }
 0x4d6   :  { %v1306_v26 = vsel %vm1305_vm0, %v1757_v20, %v1302_v9  ;;  %v1341_v45 = vadd.f32 %v1761_v36, %v1340_v6 }
 0x4d7   :  { %v1311_v5 = vsel %vm1308_vm2, %v1310_v21, %v1306_v26  ;;  %v1325_v47 = vsel %vm1324_vm3, %v1759_v11, %v1321_v8 }
 0x4d8   :  { %v1353_v39 = vmul.f32 %v1763_v34, %v1311_v5  ;;  %v1330_v43 = vsel %vm1327_vm4, %v1329_v46, %v1325_v47  ;;  %v1345_v33 = vsel %vm1344_vm7, %v1761_v36, %v1341_v45 }
 0x4d9   :  { %v1352_v17 = vmul.f32 %v1330_v43, %v3578_v7  ;;  %v1350_v19 = vsel %vm1347_vm8, %v1349_v1, %v1345_v33  ;;  %v1629_v7 = vld [vmem:[%s3689_s0 + $0xe8] sm:$0xff] }
 0x4db   :  { %v3657_v40 = vadd.f32 %v1353_v39, %v1352_v17 }
 0x4dd   :  { %1764 = vtanh.f32 %v3657_v40 }
 0x4e3   :  { %v1765_v0 = vpop.eup %1764 }
 0x4e4   :  { %v1356_v57 = vmul.f32 %v1765_v0, %v1350_v19 }
 0x4e6   :  { %1373 = vmatmul.f32.vlgmr.msra.gmra.mxu2 %v1356_v57  ;;  %1408 = vmatmul.f32.vlgmr.msra.gmra.mxu3 %v1356_v57 }
 0x4e7   :  { %1428 = vmatmul.f32.vlgmr.msrb.gmra.mxu0 %v1356_v57  ;;  %1448 = vmatmul.f32.vlgmr.msrb.gmra.mxu1 %v1356_v57 }
 0x4ee   :  { %1468 = vmatmul.f32.vlgmr.msrb.gmra.mxu2 %v1356_v57 }
 0x564   :  { %v1429_v4 = vpop.f32.mrf.mxu0  ;;  %v1449_v11 = vpop.f32.mrf.mxu1 }
 0x565   :  { %v1473_v53 = vadd.f32 %v1629_v7, %v1429_v4  ;;  %v1474_v14 = vadd.f32 %v1630_v12, %v1449_v11 }
 0x567   :  { %v1633_v49 = vmul.f32 -1.442695, %v1473_v53 }
 0x569   :  { %1766 = vpow2.f32 %v1633_v49  ;;  %v1374_v44 = vpop.f32.mrf.mxu2  ;;  %v1409_v55 = vpop.f32.mrf.mxu3 }
 0x56a   :  { %v1375_v38 = vadd.f32 %v4022_v54, %v1374_v44  ;;  %v1472_v25 = vadd.f32 %v1628_v59, %v1409_v55  ;;  %v1565_v59 = vpop.permute.xlu1 %1564 }
 0x56c   :  { %1768 = vtanh.f32 %v1375_v38  ;;  %v1632_v37 = vmul.f32 -1.442695, %v1472_v25 }
 0x56e   :  { %1770 = vpow2.f32 %v1632_v37 }
 0x56f   :  { %v1767_v32 = vpop.eup %1766 }
 0x570   :  { %v1498_v60 = vadd.f32 1.0, %v1767_v32 }
 0x571   :  { %v1469_v61 = vpop.f32.mrf.mxu2 }
 0x572   :  { %v1769_v27 = vpop.eup %1768  ;;  %1772 = vrcp.f32 %v1498_v60  ;;  %v1475_v31 = vadd.f32 %v1631_v63, %v1469_v61  ;;  %v1510_v22 = vand.u32 2147483648, %v1498_v60  ;;  %vm1504_vm10 = vweird.f32 %v1498_v60 }
 0x573   :  { %v1385_v35 = vmul.f32 %v1769_v27, %v1383_v23  ;;  %v1508_v13 = vand.u32 2147483647, %v1498_v60 }
 0x574   :  { %v1771_v10 = vpop.eup %1770  ;;  %v1634_v52 = vmul.f32 -1.442695, %v1475_v31  ;;  %v1511_v16 = vor.u32 1.1754944e-38, %v1510_v22 }
 0x575   :  { %v1479_v3 = vadd.f32 1.0, %v1771_v10  ;;  %v3671_v48 = vadd.f32 %v1385_v35, %v3648_v50  ;;  %vm1509_vm14 = vcmp.eq.f32.partialorder %v1508_v13, 8.507059e+37 }
 0x577   :  { %1774 = vrcp.f32 %v1479_v3  ;;  %v1491_v28 = vand.u32 2147483648, %v1479_v3  ;;  %v1489_v9 = vand.u32 2147483647, %v1479_v3  ;;  %vm1485_vm15 = vweird.f32 %v1479_v3 }
 0x578   :  { %v1773_v24 = vpop.eup %1772  ;;  %1776 = vpow2.f32 %v1634_v52 }
 0x579   :  { %v1500_v20 = vmul.f32 %v1773_v24, %v1498_v60  ;;  %vm1505_vm9 = vweird.f32 %v1773_v24  ;;  %1778 = vtanh.f32 %v1474_v14  ;;  %v1492_v8 = vor.u32 1.1754944e-38, %v1491_v28 }
 0x57a   :  { %vm1506_vm11 = vmor %vm1504_vm10, %vm1505_vm9  ;;  %vm1490_vm1 = vcmp.eq.f32.partialorder %v1489_v9, 8.507059e+37 }
 0x57b   :  { %v1501_v62 = vsub.f32 1.0, %v1500_v20 }
 0x57d   :  { %v1775_v18 = vpop.eup %1774  ;;  %v1502_v41 = vmul.f32 %v1773_v24, %v1501_v62 }
 0x57e   :  { %v1777_v50 = vpop.eup %1776  ;;  %v1481_v36 = vmul.f32 %v1775_v18, %v1479_v3  ;;  %vm1486_vm13 = vweird.f32 %v1775_v18 }
 0x57f   :  { %v1503_v51 = vadd.f32 %v1773_v24, %v1502_v41  ;;  %v1518_v15 = vadd.f32 1.0, %v1777_v50  ;;  %vm1487_vm0 = vmor %vm1485_vm15, %vm1486_vm13  ;;  %v1779_v46 = vpop.eup %1778 }
 0x580   :  { %v1482_v42 = vsub.f32 1.0, %v1481_v36 }
 0x581   :  { %1780 = vrcp.f32 %v1518_v15  ;;  %v1507_v29 = vsel %vm1506_vm11, %v1773_v24, %v1503_v51  ;;  %v1530_v58 = vand.u32 2147483648, %v1518_v15  ;;  %v1528_v33 = vand.u32 2147483647, %v1518_v15 }
 0x582   :  { %v1483_v2 = vmul.f32 %v1775_v18, %v1482_v42  ;;  %v1512_v26 = vsel %vm1509_vm14, %v1511_v16, %v1507_v29  ;;  %vm1524_vm3 = vweird.f32 %v1518_v15 }
 0x583   :  { %v1534_v43 = vmul.f32 %v1512_v26, %v3657_v40  ;;  %v1531_v19 = vor.u32 1.1754944e-38, %v1530_v58  ;;  %vm1529_vm5 = vcmp.eq.f32.partialorder %v1528_v33, 8.507059e+37 }
 0x584   :  { %v1484_v21 = vadd.f32 %v1775_v18, %v1483_v2 }
 0x586   :  { %v1488_v34 = vsel %vm1487_vm0, %v1775_v18, %v1484_v21 }
 0x587   :  { %v1781_v5 = vpop.eup %1780  ;;  %v1493_v47 = vsel %vm1490_vm1, %v1492_v8, %v1488_v34 }
 0x588   :  { %v1520_v39 = vmul.f32 %v1781_v5, %v1518_v15  ;;  %v1535_v6 = vmul.f32 %v1779_v46, %v1493_v47  ;;  %vm1525_vm2 = vweird.f32 %v1781_v5 }
 0x589   :  { %vm1526_vm4 = vmor %vm1524_vm3, %vm1525_vm2 }
 0x58a   :  { %v1521_v17 = vsub.f32 1.0, %v1520_v39  ;;  %v1536_v45 = vadd.f32 %v1535_v6, %v1534_v43 }
 0x58c   :  { %v1522_v56 = vmul.f32 %v1781_v5, %v1521_v17  ;;  %1782 = vtanh.f32 %v1536_v45 }
 0x58e   :  { %v1523_v1 = vadd.f32 %v1781_v5, %v1522_v56 }
 0x590   :  { %v1527_v0 = vsel %vm1526_vm4, %v1781_v5, %v1523_v1 }
 0x591   :  { %v1532_v7 = vsel %vm1529_vm5, %v1531_v19, %v1527_v0 }
 0x592   :  { %v1783_v57 = vpop.eup %1782 }
 0x593   :  { %v1538_v4 = vmul.f32 %v1783_v57, %v1532_v7 }
 0x595   :  { %1555 = vmatmul.f32.vlgmr.msrb.gmra.mxu3 %v1538_v4 }
 0x618   :  { %v1556_v53 = vpop.f32.mrf.mxu3 }
 0x619   :  { %v1557_v40 = vadd.f32 %v4022_v54, %v1556_v53 }
 0x61b   :  { %1784 = vtanh.f32 %v1557_v40 }
 0x621   :  { %v1785_v49 = vpop.eup %1784 }
 0x622   :  { %v1567_v44 = vmul.f32 %v1785_v49, %v1565_v59 }
 0x624   :  { %v1568_v55 = vadd.f32 %v1567_v44, %v3671_v48 }
 0x626   :  { %1572 = vst.msk [vmem:[%s3691_s5] sm:$0xff] %vm26_vm12, %v1568_v55 }

</bundles_post_ra>
